<compile_context>
chip_gen: v5e
topology: v5e:2x2
jax: 0.10.0
libtpu: 0.0.40
codegen_flags: <defaults>
</compile_context>

<pallas_src>
import math

import jax
import jax.numpy as jnp
import numpy as np
from jax import lax
from jax.experimental import pallas as pl
from jax.experimental.pallas import tpu as pltpu

D_MODEL = 32
N_HEADS = 4
D_HEAD = D_MODEL // N_HEADS
D_FF = 64
N_LAYERS = 2
EPS = 1e-6
NEG_INF = -1e9     # additive bias for masked positions within a batch block
CROSS_NEG = -2e9   # additive bias for cross-batch positions (block-diagonal attention)


# ----------------------------- in-kernel helpers -----------------------------

def _layer_norm(x, a, b):
    # x: (rows, d);  a, b: (1, d).  Unbiased std, eps added to std.  Exact math.
    mean = jnp.mean(x, axis=-1, keepdims=True)
    d = x - mean
    var = jnp.sum(d * d, axis=-1, keepdims=True) * (1.0 / (x.shape[-1] - 1))
    return a * (d / (jnp.sqrt(var) + EPS)) + b


def _softmax(x):
    m = jnp.max(x, axis=-1, keepdims=True)
    e = jnp.exp(x - m)
    return e / jnp.sum(e, axis=-1, keepdims=True)


def _mha(q, k, v, bias, wo):
    """Multi-head attention over flattened rows.

    q: (R, d) — already scaled by 1/sqrt(d_head) (folded into Wq/bq).
    k, v: (Rk, d).  bias: (R, Rk) additive (0 keep, -1e9 masked, -2e9 cross-batch).
    wo: (d, d).  Heads are accumulated as (p_h @ v_h) @ Wo[h*dh:(h+1)*dh, :]
    which is algebraically identical to concat(heads) @ Wo but needs no relayout.
    """
    out = None
    for h in range(N_HEADS):
        sl = slice(h * D_HEAD, (h + 1) * D_HEAD)
        scores = lax.dot_general(q[:, sl], k[:, sl], (((1,), (1,)), ((), ())),
                                 preferred_element_type=jnp.float32) + bias
        p = _softmax(scores)
        oh = jnp.dot(jnp.dot(p, v[:, sl], preferred_element_type=jnp.float32),
                     wo[sl, :], preferred_element_type=jnp.float32)
        out = oh if out is None else out + oh
    return out


# --------------------------------- fused kernel -------------------------------

def decoder_kernel(x_ref, mem_ref, tbias_ref, sbias_ref,
                   ln_a_ref, ln_b_ref,
                   wqkv_s_ref, bqkv_s_ref, wo_s_ref, bo_s_ref,
                   wq_x_ref, bq_x_ref, wkv_x_ref, bkv_x_ref, wo_x_ref, bo_x_ref,
                   w1_ref, b1_ref, w2_ref, b2_ref,
                   o_ref):
    x = x_ref[...]            # (R, d)   R = B*T  (residual stream, flattened batch)
    mem = mem_ref[...]        # (Rm, d)  Rm = B*S
    tbias = tbias_ref[...]    # (R, R)   block-diagonal additive self-attn bias
    sbias = sbias_ref[...]    # (R, Rm)  block-diagonal additive src-attn bias
    d = x.shape[-1]

    for l in range(N_LAYERS):            # static layer loop, everything VMEM-resident
        # ---- sublayer 0: masked self-attention (pre-norm + residual) ----
        xn = _layer_norm(x, ln_a_ref[3 * l + 0], ln_b_ref[3 * l + 0])
        qkv = jnp.dot(xn, wqkv_s_ref[l],
                      preferred_element_type=jnp.float32) + bqkv_s_ref[l]
        attn = _mha(qkv[:, :d], qkv[:, d:2 * d], qkv[:, 2 * d:], tbias, wo_s_ref[l])
        x = x + attn + bo_s_ref[l]

        # ---- sublayer 1: source attention over memory ----
        xn = _layer_norm(x, ln_a_ref[3 * l + 1], ln_b_ref[3 * l + 1])
        q = jnp.dot(xn, wq_x_ref[l], preferred_element_type=jnp.float32) + bq_x_ref[l]
        kv = jnp.dot(mem, wkv_x_ref[l], preferred_element_type=jnp.float32) + bkv_x_ref[l]
        attn = _mha(q, kv[:, :d], kv[:, d:], sbias, wo_x_ref[l])
        x = x + attn + bo_x_ref[l]

        # ---- sublayer 2: position-wise feed-forward ----
        xn = _layer_norm(x, ln_a_ref[3 * l + 2], ln_b_ref[3 * l + 2])
        h = jnp.maximum(
            jnp.dot(xn, w1_ref[l], preferred_element_type=jnp.float32) + b1_ref[l], 0.0)
        x = x + jnp.dot(h, w2_ref[l], preferred_element_type=jnp.float32) + b2_ref[l]

    # final LayerNorm
    o_ref[...] = _layer_norm(x, ln_a_ref[3 * N_LAYERS],
                             ln_b_ref[3 * N_LAYERS]).astype(o_ref.dtype)


# ------------------------------ parameter packing ------------------------------

def pack_params(layers, final_ln):
    """Stack per-layer params into layer-indexed arrays; fuse QKV; fold 1/sqrt(dh)."""
    scale = 1.0 / math.sqrt(D_HEAD)
    ln_a, ln_b = [], []
    wqkv_s, bqkv_s, wo_s, bo_s = [], [], [], []
    wq_x, bq_x, wkv_x, bkv_x, wo_x, bo_x = [], [], [], [], [], []
    w1s, b1s, w2s, b2s = [], [], [], []
    for p in layers:
        ln_a += [p["ln0_a"], p["ln1_a"], p["ln2_a"]]
        ln_b += [p["ln0_b"], p["ln1_b"], p["ln2_b"]]
        wq, bq, wk, bk, wv, bv, wo, bo = p["self_attn"]
        wqkv_s.append(jnp.concatenate([wq * scale, wk, wv], axis=1))
        bqkv_s.append(jnp.concatenate([bq * scale, bk, bv], axis=1))
        wo_s.append(wo); bo_s.append(bo)
        wq, bq, wk, bk, wv, bv, wo, bo = p["src_attn"]
        wq_x.append(wq * scale); bq_x.append(bq * scale)
        wkv_x.append(jnp.concatenate([wk, wv], axis=1))
        bkv_x.append(jnp.concatenate([bk, bv], axis=1))
        wo_x.append(wo); bo_x.append(bo)
        w1, b1, w2, b2 = p["ff"]
        w1s.append(w1); b1s.append(b1); w2s.append(w2); b2s.append(b2)
    ln_a.append(final_ln[0]); ln_b.append(final_ln[1])
    st = lambda xs: jnp.stack(xs, axis=0)
    return (st(ln_a), st(ln_b),
            st(wqkv_s), st(bqkv_s), st(wo_s), st(bo_s),
            st(wq_x), st(bq_x), st(wkv_x), st(bkv_x), st(wo_x), st(bo_x),
            st(w1s), st(b1s), st(w2s), st(b2s))


def block_diag_bias(mask):
    """mask (B, T, S) float (1 keep / 0 masked) -> additive bias (B*T, B*S).

    Within-batch masked positions get -1e9; cross-batch positions get -2e9 so a
    fully-masked row would still softmax uniformly over its OWN batch block
    (same behavior as the per-batch reference).
    """
    B, T, S = mask.shape
    inblock = (1.0 - mask) * NEG_INF                               # (B, T, S)
    same = (jnp.arange(B)[:, None, None, None] ==
            jnp.arange(B)[None, None, :, None])                    # (B, 1, B, 1)
    big = jnp.where(same, inblock[:, :, None, :], CROSS_NEG)       # (B, T, B, S)
    return big.reshape(B * T, B * S).astype(jnp.float32)


# ------------------------------ decoder forward --------------------------------

def decoder_forward(x, memory, src_mask, tgt_mask, layers, final_ln):
    B, T, d = x.shape
    S = memory.shape[1]
    params = pack_params(layers, final_ln)

    tgt_b = jnp.broadcast_to(tgt_mask, (B, T, T)).astype(jnp.float32)
    src_b = jnp.broadcast_to(src_mask, (B, T, S)).astype(jnp.float32)
    tbias = block_diag_bias(tgt_b)      # (B*T, B*T)
    sbias = block_diag_bias(src_b)      # (B*T, B*S)

    args = (x.reshape(B * T, d), memory.reshape(B * S, d), tbias, sbias) + params
    out = pl.pallas_call(
        decoder_kernel,
        out_shape=jax.ShapeDtypeStruct((B * T, d), x.dtype),
        in_specs=[pl.BlockSpec(memory_space=pltpu.MemorySpace.VMEM)] * len(args),
        out_specs=pl.BlockSpec(memory_space=pltpu.MemorySpace.VMEM),
    )(*args)
    return out.reshape(B, T, d)


# ------------------------------ pure-JAX reference -----------------------------

def _ref_layer_norm(x, a, b):
    mean = jnp.mean(x, axis=-1, keepdims=True)
    dd = x - mean
    var = jnp.sum(dd * dd, axis=-1, keepdims=True) / (x.shape[-1] - 1)
    return a * dd / (jnp.sqrt(var) + EPS) + b


def _ref_mha(xq, xkv, mask, wq, bq, wk, bk, wv, bv, wo, bo):
    B, T, d = xq.shape
    S = xkv.shape[1]
    q = xq @ wq + bq
    k = xkv @ wk + bk
    v = xkv @ wv + bv
    q = q.reshape(B, T, N_HEADS, D_HEAD).transpose(0, 2, 1, 3)
    k = k.reshape(B, S, N_HEADS, D_HEAD).transpose(0, 2, 1, 3)
    v = v.reshape(B, S, N_HEADS, D_HEAD).transpose(0, 2, 1, 3)
    scores = jnp.einsum("bhtd,bhsd->bhts", q, k) / math.sqrt(D_HEAD)
    scores = jnp.where(mask[:, None, :, :] > 0, scores, NEG_INF)
    p = jax.nn.softmax(scores, axis=-1)
    o = jnp.einsum("bhts,bhsd->bhtd", p, v).transpose(0, 2, 1, 3).reshape(B, T, d)
    return o @ wo + bo


def decoder_reference(x, memory, src_mask, tgt_mask, layers, final_ln):
    B, T, d = x.shape
    S = memory.shape[1]
    tgt_mask_b = jnp.broadcast_to(tgt_mask, (B, T, T)).astype(jnp.float32)
    src_mask_b = jnp.broadcast_to(src_mask, (B, T, S)).astype(jnp.float32)
    for p in layers:
        xn = _ref_layer_norm(x, p["ln0_a"], p["ln0_b"])
        x = x + _ref_mha(xn, xn, tgt_mask_b, *p["self_attn"])
        xn = _ref_layer_norm(x, p["ln1_a"], p["ln1_b"])
        x = x + _ref_mha(xn, memory, src_mask_b, *p["src_attn"])
        xn = _ref_layer_norm(x, p["ln2_a"], p["ln2_b"])
        w1, b1, w2, b2 = p["ff"]
        x = x + (jnp.maximum(xn @ w1 + b1, 0.0) @ w2 + b2)
    return _ref_layer_norm(x, final_ln[0], final_ln[1])


# ---------------------------------- params ------------------------------------

def init_params(key, n_layers, d, d_ff):
    def linear(k, din, dout):
        k1, k2 = jax.random.split(k)
        w = jax.random.normal(k1, (din, dout), jnp.float32) / math.sqrt(din)
        bb = 0.01 * jax.random.normal(k2, (1, dout), jnp.float32)
        return w, bb

    layers = []
    for _ in range(n_layers):
        key, *ks = jax.random.split(key, 11)
        wq, bq = linear(ks[0], d, d)
        wk, bk = linear(ks[1], d, d)
        wv, bv = linear(ks[2], d, d)
        wo, bo = linear(ks[3], d, d)
        wq2, bq2 = linear(ks[4], d, d)
        wk2, bk2 = linear(ks[5], d, d)
        wv2, bv2 = linear(ks[6], d, d)
        wo2, bo2 = linear(ks[7], d, d)
        w1, b1 = linear(ks[8], d, d_ff)
        w2, b2 = linear(ks[9], d_ff, d)
        layers.append(dict(
            ln0_a=jnp.ones((1, d), jnp.float32), ln0_b=jnp.zeros((1, d), jnp.float32),
            ln1_a=jnp.ones((1, d), jnp.float32), ln1_b=jnp.zeros((1, d), jnp.float32),
            ln2_a=jnp.ones((1, d), jnp.float32), ln2_b=jnp.zeros((1, d), jnp.float32),
            self_attn=(wq, bq, wk, bk, wv, bv, wo, bo),
            src_attn=(wq2, bq2, wk2, bk2, wv2, bv2, wo2, bo2),
            ff=(w1, b1, w2, b2),
        ))
    final_ln = (jnp.ones((1, d), jnp.float32), jnp.zeros((1, d), jnp.float32))
    return layers, final_ln


# ----------------------------------- main --------------------------------------

if __name__ == "__main__":
    B, T, S = 2, 8, 8
    key = jax.random.PRNGKey(0)
    k_x, k_m, k_p = jax.random.split(key, 3)

    x = jax.random.normal(k_x, (B, T, D_MODEL), jnp.float32)
    memory = jax.random.normal(k_m, (B, S, D_MODEL), jnp.float32)
    # tgt_mask: causal (1, T, T); src_mask: all-ones (B, 1, S)
    tgt_mask = jnp.tril(jnp.ones((1, T, T), jnp.float32))
    src_mask = jnp.ones((B, 1, S), jnp.float32)

    layers, final_ln = init_params(k_p, N_LAYERS, D_MODEL, D_FF)

    fwd = jax.jit(decoder_forward)
    out = jax.block_until_ready(fwd(x, memory, src_mask, tgt_mask, layers, final_ln))

    ref = jax.block_until_ready(
        decoder_reference(x, memory, src_mask, tgt_mask, layers, final_ln))
    # Kernel math (norms/softmax) is exact; remaining difference is only MXU
    # default-precision f32 matmuls with a different (fused / per-head) op order
    # than the XLA reference, so allow ~1e-2 over the 6-sublayer residual stream.
    np.testing.assert_allclose(np.asarray(out), np.asarray(ref), rtol=1e-2, atol=1e-2)

    print("KERNEL_OK")
</pallas_src>

<mosaic_0001>
module attributes {stable_mosaic.version = 11 : i64} {
  func.func @decoder_kernel(%arg0: memref<16x32xf32, #tpu.memory_space<vmem>>, %arg1: memref<16x32xf32, #tpu.memory_space<vmem>>, %arg2: memref<16x16xf32, #tpu.memory_space<vmem>>, %arg3: memref<16x16xf32, #tpu.memory_space<vmem>>, %arg4: memref<7x1x32xf32, #tpu.memory_space<vmem>>, %arg5: memref<7x1x32xf32, #tpu.memory_space<vmem>>, %arg6: memref<2x32x96xf32, #tpu.memory_space<vmem>>, %arg7: memref<2x1x96xf32, #tpu.memory_space<vmem>>, %arg8: memref<2x32x32xf32, #tpu.memory_space<vmem>>, %arg9: memref<2x1x32xf32, #tpu.memory_space<vmem>>, %arg10: memref<2x32x32xf32, #tpu.memory_space<vmem>>, %arg11: memref<2x1x32xf32, #tpu.memory_space<vmem>>, %arg12: memref<2x32x64xf32, #tpu.memory_space<vmem>>, %arg13: memref<2x1x64xf32, #tpu.memory_space<vmem>>, %arg14: memref<2x32x32xf32, #tpu.memory_space<vmem>>, %arg15: memref<2x1x32xf32, #tpu.memory_space<vmem>>, %arg16: memref<2x32x64xf32, #tpu.memory_space<vmem>>, %arg17: memref<2x1x64xf32, #tpu.memory_space<vmem>>, %arg18: memref<2x64x32xf32, #tpu.memory_space<vmem>>, %arg19: memref<2x1x32xf32, #tpu.memory_space<vmem>>, %arg20: memref<16x32xf32, #tpu.memory_space<vmem>>) attributes {dimension_semantics = [], scalar_prefetch = 0 : i64, scratch_operands = 0 : i64, tpu.core_type = #tpu.core_type<tc>} {
    %c0 = arith.constant 0 : index
    %c0_0 = arith.constant 0 : index
    %0 = vector.load %arg0[%c0, %c0_0] : memref<16x32xf32, #tpu.memory_space<vmem>>, vector<16x32xf32>
    %c0_1 = arith.constant 0 : index
    %c0_2 = arith.constant 0 : index
    %1 = vector.load %arg1[%c0_1, %c0_2] : memref<16x32xf32, #tpu.memory_space<vmem>>, vector<16x32xf32>
    %c0_3 = arith.constant 0 : index
    %c0_4 = arith.constant 0 : index
    %2 = vector.load %arg2[%c0_3, %c0_4] : memref<16x16xf32, #tpu.memory_space<vmem>>, vector<16x16xf32>
    %c0_5 = arith.constant 0 : index
    %c0_6 = arith.constant 0 : index
    %3 = vector.load %arg3[%c0_5, %c0_6] : memref<16x16xf32, #tpu.memory_space<vmem>>, vector<16x16xf32>
    %c0_7 = arith.constant 0 : index
    %c0_8 = arith.constant 0 : index
    %c0_9 = arith.constant 0 : index
    %4 = vector.load %arg4[%c0_7, %c0_8, %c0_9] : memref<7x1x32xf32, #tpu.memory_space<vmem>>, vector<1x1x32xf32>
    %5 = vector.shape_cast %4 : vector<1x1x32xf32> to vector<1x32xf32>
    %c0_10 = arith.constant 0 : index
    %c0_11 = arith.constant 0 : index
    %c0_12 = arith.constant 0 : index
    %6 = vector.load %arg5[%c0_10, %c0_11, %c0_12] : memref<7x1x32xf32, #tpu.memory_space<vmem>>, vector<1x1x32xf32>
    %7 = vector.shape_cast %6 : vector<1x1x32xf32> to vector<1x32xf32>
    %cst = arith.constant dense<0.000000e+00> : vector<16xf32>
    %8 = vector.multi_reduction <add>, %0, %cst [1] : vector<16x32xf32> to vector<16xf32>
    %9 = vector.shape_cast %8 : vector<16xf32> to vector<16x1xf32>
    %cst_13 = arith.constant 3.200000e+01 : f32
    %10 = vector.broadcast %cst_13 : f32 to vector<16x1xf32>
    %11 = arith.divf %9, %10 : vector<16x1xf32>
    %12 = vector.broadcast %11 : vector<16x1xf32> to vector<16x32xf32>
    %13 = arith.subf %0, %12 : vector<16x32xf32>
    %14 = arith.mulf %13, %13 : vector<16x32xf32>
    %cst_14 = arith.constant dense<0.000000e+00> : vector<16xf32>
    %15 = vector.multi_reduction <add>, %14, %cst_14 [1] : vector<16x32xf32> to vector<16xf32>
    %16 = vector.shape_cast %15 : vector<16xf32> to vector<16x1xf32>
    %cst_15 = arith.constant 0.0322580636 : f32
    %17 = vector.broadcast %cst_15 : f32 to vector<16x1xf32>
    %18 = arith.mulf %16, %17 : vector<16x1xf32>
    %19 = math.sqrt %18 : vector<16x1xf32>
    %cst_16 = arith.constant 9.99999997E-7 : f32
    %20 = vector.broadcast %cst_16 : f32 to vector<16x1xf32>
    %21 = arith.addf %19, %20 : vector<16x1xf32>
    %22 = vector.broadcast %21 : vector<16x1xf32> to vector<16x32xf32>
    %23 = arith.divf %13, %22 : vector<16x32xf32>
    %24 = vector.broadcast %5 : vector<1x32xf32> to vector<16x32xf32>
    %25 = arith.mulf %24, %23 : vector<16x32xf32>
    %26 = vector.broadcast %7 : vector<1x32xf32> to vector<16x32xf32>
    %27 = arith.addf %25, %26 : vector<16x32xf32>
    %c0_17 = arith.constant 0 : index
    %c0_18 = arith.constant 0 : index
    %c0_19 = arith.constant 0 : index
    %28 = vector.load %arg6[%c0_17, %c0_18, %c0_19] : memref<2x32x96xf32, #tpu.memory_space<vmem>>, vector<1x32x96xf32>
    %29 = vector.shape_cast %28 : vector<1x32x96xf32> to vector<32x96xf32>
    %cst_20 = arith.constant dense<0.000000e+00> : vector<16x96xf32>
    %30 = tpu.matmul %27, %29, %cst_20 {dimension_numbers = #tpu.dot_dimension_numbers<[1], [0], [0], [1], [0, 0, 1, 1], [], []>} : vector<16x32xf32>, vector<32x96xf32>, vector<16x96xf32> -> vector<16x96xf32>
    %c0_21 = arith.constant 0 : index
    %c0_22 = arith.constant 0 : index
    %c0_23 = arith.constant 0 : index
    %31 = vector.load %arg7[%c0_21, %c0_22, %c0_23] : memref<2x1x96xf32, #tpu.memory_space<vmem>>, vector<1x1x96xf32>
    %32 = vector.shape_cast %31 : vector<1x1x96xf32> to vector<1x96xf32>
    %33 = vector.broadcast %32 : vector<1x96xf32> to vector<16x96xf32>
    %34 = arith.addf %30, %33 : vector<16x96xf32>
    %35 = vector.extract_strided_slice %34 {offsets = [0, 0], sizes = [16, 32], strides = [1, 1]} : vector<16x96xf32> to vector<16x32xf32>
    %36 = vector.extract_strided_slice %34 {offsets = [0, 32], sizes = [16, 32], strides = [1, 1]} : vector<16x96xf32> to vector<16x32xf32>
    %37 = vector.extract_strided_slice %34 {offsets = [0, 64], sizes = [16, 32], strides = [1, 1]} : vector<16x96xf32> to vector<16x32xf32>
    %c0_24 = arith.constant 0 : index
    %c0_25 = arith.constant 0 : index
    %c0_26 = arith.constant 0 : index
    %38 = vector.load %arg8[%c0_24, %c0_25, %c0_26] : memref<2x32x32xf32, #tpu.memory_space<vmem>>, vector<1x32x32xf32>
    %39 = vector.shape_cast %38 : vector<1x32x32xf32> to vector<32x32xf32>
    %40 = vector.extract_strided_slice %35 {offsets = [0, 0], sizes = [16, 8], strides = [1, 1]} : vector<16x32xf32> to vector<16x8xf32>
    %41 = vector.extract_strided_slice %36 {offsets = [0, 0], sizes = [16, 8], strides = [1, 1]} : vector<16x32xf32> to vector<16x8xf32>
    %cst_27 = arith.constant dense<0.000000e+00> : vector<16x16xf32>
    %42 = tpu.matmul %40, %41, %cst_27 {dimension_numbers = #tpu.dot_dimension_numbers<[1], [1], [0], [0], [0, 0, 1, 0], [], []>} : vector<16x8xf32>, vector<16x8xf32>, vector<16x16xf32> -> vector<16x16xf32>
    %43 = arith.addf %42, %2 : vector<16x16xf32>
    %cst_28 = arith.constant dense<0xFF800000> : vector<16xf32>
    %44 = vector.multi_reduction <maximumf>, %43, %cst_28 [1] : vector<16x16xf32> to vector<16xf32>
    %45 = vector.shape_cast %44 : vector<16xf32> to vector<16x1xf32>
    %46 = vector.broadcast %45 : vector<16x1xf32> to vector<16x16xf32>
    %47 = arith.subf %43, %46 : vector<16x16xf32>
    %48 = math.exp %47 : vector<16x16xf32>
    %cst_29 = arith.constant dense<0.000000e+00> : vector<16xf32>
    %49 = vector.multi_reduction <add>, %48, %cst_29 [1] : vector<16x16xf32> to vector<16xf32>
    %50 = vector.shape_cast %49 : vector<16xf32> to vector<16x1xf32>
    %51 = vector.broadcast %50 : vector<16x1xf32> to vector<16x16xf32>
    %52 = arith.divf %48, %51 : vector<16x16xf32>
    %53 = vector.extract_strided_slice %37 {offsets = [0, 0], sizes = [16, 8], strides = [1, 1]} : vector<16x32xf32> to vector<16x8xf32>
    %cst_30 = arith.constant dense<0.000000e+00> : vector<16x8xf32>
    %54 = tpu.matmul %52, %53, %cst_30 {dimension_numbers = #tpu.dot_dimension_numbers<[1], [0], [0], [1], [0, 0, 1, 1], [], []>} : vector<16x16xf32>, vector<16x8xf32>, vector<16x8xf32> -> vector<16x8xf32>
    %55 = vector.extract_strided_slice %39 {offsets = [0, 0], sizes = [8, 32], strides = [1, 1]} : vector<32x32xf32> to vector<8x32xf32>
    %cst_31 = arith.constant dense<0.000000e+00> : vector<16x32xf32>
    %56 = tpu.matmul %54, %55, %cst_31 {dimension_numbers = #tpu.dot_dimension_numbers<[1], [0], [0], [1], [0, 0, 1, 1], [], []>} : vector<16x8xf32>, vector<8x32xf32>, vector<16x32xf32> -> vector<16x32xf32>
    %57 = vector.extract_strided_slice %35 {offsets = [0, 8], sizes = [16, 8], strides = [1, 1]} : vector<16x32xf32> to vector<16x8xf32>
    %58 = vector.extract_strided_slice %36 {offsets = [0, 8], sizes = [16, 8], strides = [1, 1]} : vector<16x32xf32> to vector<16x8xf32>
    %cst_32 = arith.constant dense<0.000000e+00> : vector<16x16xf32>
    %59 = tpu.matmul %57, %58, %cst_32 {dimension_numbers = #tpu.dot_dimension_numbers<[1], [1], [0], [0], [0, 0, 1, 0], [], []>} : vector<16x8xf32>, vector<16x8xf32>, vector<16x16xf32> -> vector<16x16xf32>
    %60 = arith.addf %59, %2 : vector<16x16xf32>
    %cst_33 = arith.constant dense<0xFF800000> : vector<16xf32>
    %61 = vector.multi_reduction <maximumf>, %60, %cst_33 [1] : vector<16x16xf32> to vector<16xf32>
    %62 = vector.shape_cast %61 : vector<16xf32> to vector<16x1xf32>
    %63 = vector.broadcast %62 : vector<16x1xf32> to vector<16x16xf32>
    %64 = arith.subf %60, %63 : vector<16x16xf32>
    %65 = math.exp %64 : vector<16x16xf32>
    %cst_34 = arith.constant dense<0.000000e+00> : vector<16xf32>
    %66 = vector.multi_reduction <add>, %65, %cst_34 [1] : vector<16x16xf32> to vector<16xf32>
    %67 = vector.shape_cast %66 : vector<16xf32> to vector<16x1xf32>
    %68 = vector.broadcast %67 : vector<16x1xf32> to vector<16x16xf32>
    %69 = arith.divf %65, %68 : vector<16x16xf32>
    %70 = vector.extract_strided_slice %37 {offsets = [0, 8], sizes = [16, 8], strides = [1, 1]} : vector<16x32xf32> to vector<16x8xf32>
    %cst_35 = arith.constant dense<0.000000e+00> : vector<16x8xf32>
    %71 = tpu.matmul %69, %70, %cst_35 {dimension_numbers = #tpu.dot_dimension_numbers<[1], [0], [0], [1], [0, 0, 1, 1], [], []>} : vector<16x16xf32>, vector<16x8xf32>, vector<16x8xf32> -> vector<16x8xf32>
    %72 = vector.extract_strided_slice %39 {offsets = [8, 0], sizes = [8, 32], strides = [1, 1]} : vector<32x32xf32> to vector<8x32xf32>
    %cst_36 = arith.constant dense<0.000000e+00> : vector<16x32xf32>
    %73 = tpu.matmul %71, %72, %cst_36 {dimension_numbers = #tpu.dot_dimension_numbers<[1], [0], [0], [1], [0, 0, 1, 1], [], []>} : vector<16x8xf32>, vector<8x32xf32>, vector<16x32xf32> -> vector<16x32xf32>
    %74 = arith.addf %56, %73 : vector<16x32xf32>
    %75 = vector.extract_strided_slice %35 {offsets = [0, 16], sizes = [16, 8], strides = [1, 1]} : vector<16x32xf32> to vector<16x8xf32>
    %76 = vector.extract_strided_slice %36 {offsets = [0, 16], sizes = [16, 8], strides = [1, 1]} : vector<16x32xf32> to vector<16x8xf32>
    %cst_37 = arith.constant dense<0.000000e+00> : vector<16x16xf32>
    %77 = tpu.matmul %75, %76, %cst_37 {dimension_numbers = #tpu.dot_dimension_numbers<[1], [1], [0], [0], [0, 0, 1, 0], [], []>} : vector<16x8xf32>, vector<16x8xf32>, vector<16x16xf32> -> vector<16x16xf32>
    %78 = arith.addf %77, %2 : vector<16x16xf32>
    %cst_38 = arith.constant dense<0xFF800000> : vector<16xf32>
    %79 = vector.multi_reduction <maximumf>, %78, %cst_38 [1] : vector<16x16xf32> to vector<16xf32>
    %80 = vector.shape_cast %79 : vector<16xf32> to vector<16x1xf32>
    %81 = vector.broadcast %80 : vector<16x1xf32> to vector<16x16xf32>
    %82 = arith.subf %78, %81 : vector<16x16xf32>
    %83 = math.exp %82 : vector<16x16xf32>
    %cst_39 = arith.constant dense<0.000000e+00> : vector<16xf32>
    %84 = vector.multi_reduction <add>, %83, %cst_39 [1] : vector<16x16xf32> to vector<16xf32>
    %85 = vector.shape_cast %84 : vector<16xf32> to vector<16x1xf32>
    %86 = vector.broadcast %85 : vector<16x1xf32> to vector<16x16xf32>
    %87 = arith.divf %83, %86 : vector<16x16xf32>
    %88 = vector.extract_strided_slice %37 {offsets = [0, 16], sizes = [16, 8], strides = [1, 1]} : vector<16x32xf32> to vector<16x8xf32>
    %cst_40 = arith.constant dense<0.000000e+00> : vector<16x8xf32>
    %89 = tpu.matmul %87, %88, %cst_40 {dimension_numbers = #tpu.dot_dimension_numbers<[1], [0], [0], [1], [0, 0, 1, 1], [], []>} : vector<16x16xf32>, vector<16x8xf32>, vector<16x8xf32> -> vector<16x8xf32>
    %90 = vector.extract_strided_slice %39 {offsets = [16, 0], sizes = [8, 32], strides = [1, 1]} : vector<32x32xf32> to vector<8x32xf32>
    %cst_41 = arith.constant dense<0.000000e+00> : vector<16x32xf32>
    %91 = tpu.matmul %89, %90, %cst_41 {dimension_numbers = #tpu.dot_dimension_numbers<[1], [0], [0], [1], [0, 0, 1, 1], [], []>} : vector<16x8xf32>, vector<8x32xf32>, vector<16x32xf32> -> vector<16x32xf32>
    %92 = arith.addf %74, %91 : vector<16x32xf32>
    %93 = vector.extract_strided_slice %35 {offsets = [0, 24], sizes = [16, 8], strides = [1, 1]} : vector<16x32xf32> to vector<16x8xf32>
    %94 = vector.extract_strided_slice %36 {offsets = [0, 24], sizes = [16, 8], strides = [1, 1]} : vector<16x32xf32> to vector<16x8xf32>
    %cst_42 = arith.constant dense<0.000000e+00> : vector<16x16xf32>
    %95 = tpu.matmul %93, %94, %cst_42 {dimension_numbers = #tpu.dot_dimension_numbers<[1], [1], [0], [0], [0, 0, 1, 0], [], []>} : vector<16x8xf32>, vector<16x8xf32>, vector<16x16xf32> -> vector<16x16xf32>
    %96 = arith.addf %95, %2 : vector<16x16xf32>
    %cst_43 = arith.constant dense<0xFF800000> : vector<16xf32>
    %97 = vector.multi_reduction <maximumf>, %96, %cst_43 [1] : vector<16x16xf32> to vector<16xf32>
    %98 = vector.shape_cast %97 : vector<16xf32> to vector<16x1xf32>
    %99 = vector.broadcast %98 : vector<16x1xf32> to vector<16x16xf32>
    %100 = arith.subf %96, %99 : vector<16x16xf32>
    %101 = math.exp %100 : vector<16x16xf32>
    %cst_44 = arith.constant dense<0.000000e+00> : vector<16xf32>
    %102 = vector.multi_reduction <add>, %101, %cst_44 [1] : vector<16x16xf32> to vector<16xf32>
    %103 = vector.shape_cast %102 : vector<16xf32> to vector<16x1xf32>
    %104 = vector.broadcast %103 : vector<16x1xf32> to vector<16x16xf32>
    %105 = arith.divf %101, %104 : vector<16x16xf32>
    %106 = vector.extract_strided_slice %37 {offsets = [0, 24], sizes = [16, 8], strides = [1, 1]} : vector<16x32xf32> to vector<16x8xf32>
    %cst_45 = arith.constant dense<0.000000e+00> : vector<16x8xf32>
    %107 = tpu.matmul %105, %106, %cst_45 {dimension_numbers = #tpu.dot_dimension_numbers<[1], [0], [0], [1], [0, 0, 1, 1], [], []>} : vector<16x16xf32>, vector<16x8xf32>, vector<16x8xf32> -> vector<16x8xf32>
    %108 = vector.extract_strided_slice %39 {offsets = [24, 0], sizes = [8, 32], strides = [1, 1]} : vector<32x32xf32> to vector<8x32xf32>
    %cst_46 = arith.constant dense<0.000000e+00> : vector<16x32xf32>
    %109 = tpu.matmul %107, %108, %cst_46 {dimension_numbers = #tpu.dot_dimension_numbers<[1], [0], [0], [1], [0, 0, 1, 1], [], []>} : vector<16x8xf32>, vector<8x32xf32>, vector<16x32xf32> -> vector<16x32xf32>
    %110 = arith.addf %92, %109 : vector<16x32xf32>
    %111 = arith.addf %0, %110 : vector<16x32xf32>
    %c0_47 = arith.constant 0 : index
    %c0_48 = arith.constant 0 : index
    %c0_49 = arith.constant 0 : index
    %112 = vector.load %arg9[%c0_47, %c0_48, %c0_49] : memref<2x1x32xf32, #tpu.memory_space<vmem>>, vector<1x1x32xf32>
    %113 = vector.shape_cast %112 : vector<1x1x32xf32> to vector<1x32xf32>
    %114 = vector.broadcast %113 : vector<1x32xf32> to vector<16x32xf32>
    %115 = arith.addf %111, %114 : vector<16x32xf32>
    %c1 = arith.constant 1 : index
    %c0_50 = arith.constant 0 : index
    %c0_51 = arith.constant 0 : index
    %116 = vector.load %arg4[%c1, %c0_50, %c0_51] : memref<7x1x32xf32, #tpu.memory_space<vmem>>, vector<1x1x32xf32>
    %117 = vector.shape_cast %116 : vector<1x1x32xf32> to vector<1x32xf32>
    %c1_52 = arith.constant 1 : index
    %c0_53 = arith.constant 0 : index
    %c0_54 = arith.constant 0 : index
    %118 = vector.load %arg5[%c1_52, %c0_53, %c0_54] : memref<7x1x32xf32, #tpu.memory_space<vmem>>, vector<1x1x32xf32>
    %119 = vector.shape_cast %118 : vector<1x1x32xf32> to vector<1x32xf32>
    %cst_55 = arith.constant dense<0.000000e+00> : vector<16xf32>
    %120 = vector.multi_reduction <add>, %115, %cst_55 [1] : vector<16x32xf32> to vector<16xf32>
    %121 = vector.shape_cast %120 : vector<16xf32> to vector<16x1xf32>
    %cst_56 = arith.constant 3.200000e+01 : f32
    %122 = vector.broadcast %cst_56 : f32 to vector<16x1xf32>
    %123 = arith.divf %121, %122 : vector<16x1xf32>
    %124 = vector.broadcast %123 : vector<16x1xf32> to vector<16x32xf32>
    %125 = arith.subf %115, %124 : vector<16x32xf32>
    %126 = arith.mulf %125, %125 : vector<16x32xf32>
    %cst_57 = arith.constant dense<0.000000e+00> : vector<16xf32>
    %127 = vector.multi_reduction <add>, %126, %cst_57 [1] : vector<16x32xf32> to vector<16xf32>
    %128 = vector.shape_cast %127 : vector<16xf32> to vector<16x1xf32>
    %cst_58 = arith.constant 0.0322580636 : f32
    %129 = vector.broadcast %cst_58 : f32 to vector<16x1xf32>
    %130 = arith.mulf %128, %129 : vector<16x1xf32>
    %131 = math.sqrt %130 : vector<16x1xf32>
    %cst_59 = arith.constant 9.99999997E-7 : f32
    %132 = vector.broadcast %cst_59 : f32 to vector<16x1xf32>
    %133 = arith.addf %131, %132 : vector<16x1xf32>
    %134 = vector.broadcast %133 : vector<16x1xf32> to vector<16x32xf32>
    %135 = arith.divf %125, %134 : vector<16x32xf32>
    %136 = vector.broadcast %117 : vector<1x32xf32> to vector<16x32xf32>
    %137 = arith.mulf %136, %135 : vector<16x32xf32>
    %138 = vector.broadcast %119 : vector<1x32xf32> to vector<16x32xf32>
    %139 = arith.addf %137, %138 : vector<16x32xf32>
    %c0_60 = arith.constant 0 : index
    %c0_61 = arith.constant 0 : index
    %c0_62 = arith.constant 0 : index
    %140 = vector.load %arg10[%c0_60, %c0_61, %c0_62] : memref<2x32x32xf32, #tpu.memory_space<vmem>>, vector<1x32x32xf32>
    %141 = vector.shape_cast %140 : vector<1x32x32xf32> to vector<32x32xf32>
    %cst_63 = arith.constant dense<0.000000e+00> : vector<16x32xf32>
    %142 = tpu.matmul %139, %141, %cst_63 {dimension_numbers = #tpu.dot_dimension_numbers<[1], [0], [0], [1], [0, 0, 1, 1], [], []>} : vector<16x32xf32>, vector<32x32xf32>, vector<16x32xf32> -> vector<16x32xf32>
    %c0_64 = arith.constant 0 : index
    %c0_65 = arith.constant 0 : index
    %c0_66 = arith.constant 0 : index
    %143 = vector.load %arg11[%c0_64, %c0_65, %c0_66] : memref<2x1x32xf32, #tpu.memory_space<vmem>>, vector<1x1x32xf32>
    %144 = vector.shape_cast %143 : vector<1x1x32xf32> to vector<1x32xf32>
    %145 = vector.broadcast %144 : vector<1x32xf32> to vector<16x32xf32>
    %146 = arith.addf %142, %145 : vector<16x32xf32>
    %c0_67 = arith.constant 0 : index
    %c0_68 = arith.constant 0 : index
    %c0_69 = arith.constant 0 : index
    %147 = vector.load %arg12[%c0_67, %c0_68, %c0_69] : memref<2x32x64xf32, #tpu.memory_space<vmem>>, vector<1x32x64xf32>
    %148 = vector.shape_cast %147 : vector<1x32x64xf32> to vector<32x64xf32>
    %cst_70 = arith.constant dense<0.000000e+00> : vector<16x64xf32>
    %149 = tpu.matmul %1, %148, %cst_70 {dimension_numbers = #tpu.dot_dimension_numbers<[1], [0], [0], [1], [0, 0, 1, 1], [], []>} : vector<16x32xf32>, vector<32x64xf32>, vector<16x64xf32> -> vector<16x64xf32>
    %c0_71 = arith.constant 0 : index
    %c0_72 = arith.constant 0 : index
    %c0_73 = arith.constant 0 : index
    %150 = vector.load %arg13[%c0_71, %c0_72, %c0_73] : memref<2x1x64xf32, #tpu.memory_space<vmem>>, vector<1x1x64xf32>
    %151 = vector.shape_cast %150 : vector<1x1x64xf32> to vector<1x64xf32>
    %152 = vector.broadcast %151 : vector<1x64xf32> to vector<16x64xf32>
    %153 = arith.addf %149, %152 : vector<16x64xf32>
    %154 = vector.extract_strided_slice %153 {offsets = [0, 0], sizes = [16, 32], strides = [1, 1]} : vector<16x64xf32> to vector<16x32xf32>
    %155 = vector.extract_strided_slice %153 {offsets = [0, 32], sizes = [16, 32], strides = [1, 1]} : vector<16x64xf32> to vector<16x32xf32>
    %c0_74 = arith.constant 0 : index
    %c0_75 = arith.constant 0 : index
    %c0_76 = arith.constant 0 : index
    %156 = vector.load %arg14[%c0_74, %c0_75, %c0_76] : memref<2x32x32xf32, #tpu.memory_space<vmem>>, vector<1x32x32xf32>
    %157 = vector.shape_cast %156 : vector<1x32x32xf32> to vector<32x32xf32>
    %158 = vector.extract_strided_slice %146 {offsets = [0, 0], sizes = [16, 8], strides = [1, 1]} : vector<16x32xf32> to vector<16x8xf32>
    %159 = vector.extract_strided_slice %154 {offsets = [0, 0], sizes = [16, 8], strides = [1, 1]} : vector<16x32xf32> to vector<16x8xf32>
    %cst_77 = arith.constant dense<0.000000e+00> : vector<16x16xf32>
    %160 = tpu.matmul %158, %159, %cst_77 {dimension_numbers = #tpu.dot_dimension_numbers<[1], [1], [0], [0], [0, 0, 1, 0], [], []>} : vector<16x8xf32>, vector<16x8xf32>, vector<16x16xf32> -> vector<16x16xf32>
    %161 = arith.addf %160, %3 : vector<16x16xf32>
    %cst_78 = arith.constant dense<0xFF800000> : vector<16xf32>
    %162 = vector.multi_reduction <maximumf>, %161, %cst_78 [1] : vector<16x16xf32> to vector<16xf32>
    %163 = vector.shape_cast %162 : vector<16xf32> to vector<16x1xf32>
    %164 = vector.broadcast %163 : vector<16x1xf32> to vector<16x16xf32>
    %165 = arith.subf %161, %164 : vector<16x16xf32>
    %166 = math.exp %165 : vector<16x16xf32>
    %cst_79 = arith.constant dense<0.000000e+00> : vector<16xf32>
    %167 = vector.multi_reduction <add>, %166, %cst_79 [1] : vector<16x16xf32> to vector<16xf32>
    %168 = vector.shape_cast %167 : vector<16xf32> to vector<16x1xf32>
    %169 = vector.broadcast %168 : vector<16x1xf32> to vector<16x16xf32>
    %170 = arith.divf %166, %169 : vector<16x16xf32>
    %171 = vector.extract_strided_slice %155 {offsets = [0, 0], sizes = [16, 8], strides = [1, 1]} : vector<16x32xf32> to vector<16x8xf32>
    %cst_80 = arith.constant dense<0.000000e+00> : vector<16x8xf32>
    %172 = tpu.matmul %170, %171, %cst_80 {dimension_numbers = #tpu.dot_dimension_numbers<[1], [0], [0], [1], [0, 0, 1, 1], [], []>} : vector<16x16xf32>, vector<16x8xf32>, vector<16x8xf32> -> vector<16x8xf32>
    %173 = vector.extract_strided_slice %157 {offsets = [0, 0], sizes = [8, 32], strides = [1, 1]} : vector<32x32xf32> to vector<8x32xf32>
    %cst_81 = arith.constant dense<0.000000e+00> : vector<16x32xf32>
    %174 = tpu.matmul %172, %173, %cst_81 {dimension_numbers = #tpu.dot_dimension_numbers<[1], [0], [0], [1], [0, 0, 1, 1], [], []>} : vector<16x8xf32>, vector<8x32xf32>, vector<16x32xf32> -> vector<16x32xf32>
    %175 = vector.extract_strided_slice %146 {offsets = [0, 8], sizes = [16, 8], strides = [1, 1]} : vector<16x32xf32> to vector<16x8xf32>
    %176 = vector.extract_strided_slice %154 {offsets = [0, 8], sizes = [16, 8], strides = [1, 1]} : vector<16x32xf32> to vector<16x8xf32>
    %cst_82 = arith.constant dense<0.000000e+00> : vector<16x16xf32>
    %177 = tpu.matmul %175, %176, %cst_82 {dimension_numbers = #tpu.dot_dimension_numbers<[1], [1], [0], [0], [0, 0, 1, 0], [], []>} : vector<16x8xf32>, vector<16x8xf32>, vector<16x16xf32> -> vector<16x16xf32>
    %178 = arith.addf %177, %3 : vector<16x16xf32>
    %cst_83 = arith.constant dense<0xFF800000> : vector<16xf32>
    %179 = vector.multi_reduction <maximumf>, %178, %cst_83 [1] : vector<16x16xf32> to vector<16xf32>
    %180 = vector.shape_cast %179 : vector<16xf32> to vector<16x1xf32>
    %181 = vector.broadcast %180 : vector<16x1xf32> to vector<16x16xf32>
    %182 = arith.subf %178, %181 : vector<16x16xf32>
    %183 = math.exp %182 : vector<16x16xf32>
    %cst_84 = arith.constant dense<0.000000e+00> : vector<16xf32>
    %184 = vector.multi_reduction <add>, %183, %cst_84 [1] : vector<16x16xf32> to vector<16xf32>
    %185 = vector.shape_cast %184 : vector<16xf32> to vector<16x1xf32>
    %186 = vector.broadcast %185 : vector<16x1xf32> to vector<16x16xf32>
    %187 = arith.divf %183, %186 : vector<16x16xf32>
    %188 = vector.extract_strided_slice %155 {offsets = [0, 8], sizes = [16, 8], strides = [1, 1]} : vector<16x32xf32> to vector<16x8xf32>
    %cst_85 = arith.constant dense<0.000000e+00> : vector<16x8xf32>
    %189 = tpu.matmul %187, %188, %cst_85 {dimension_numbers = #tpu.dot_dimension_numbers<[1], [0], [0], [1], [0, 0, 1, 1], [], []>} : vector<16x16xf32>, vector<16x8xf32>, vector<16x8xf32> -> vector<16x8xf32>
    %190 = vector.extract_strided_slice %157 {offsets = [8, 0], sizes = [8, 32], strides = [1, 1]} : vector<32x32xf32> to vector<8x32xf32>
    %cst_86 = arith.constant dense<0.000000e+00> : vector<16x32xf32>
    %191 = tpu.matmul %189, %190, %cst_86 {dimension_numbers = #tpu.dot_dimension_numbers<[1], [0], [0], [1], [0, 0, 1, 1], [], []>} : vector<16x8xf32>, vector<8x32xf32>, vector<16x32xf32> -> vector<16x32xf32>
    %192 = arith.addf %174, %191 : vector<16x32xf32>
    %193 = vector.extract_strided_slice %146 {offsets = [0, 16], sizes = [16, 8], strides = [1, 1]} : vector<16x32xf32> to vector<16x8xf32>
    %194 = vector.extract_strided_slice %154 {offsets = [0, 16], sizes = [16, 8], strides = [1, 1]} : vector<16x32xf32> to vector<16x8xf32>
    %cst_87 = arith.constant dense<0.000000e+00> : vector<16x16xf32>
    %195 = tpu.matmul %193, %194, %cst_87 {dimension_numbers = #tpu.dot_dimension_numbers<[1], [1], [0], [0], [0, 0, 1, 0], [], []>} : vector<16x8xf32>, vector<16x8xf32>, vector<16x16xf32> -> vector<16x16xf32>
    %196 = arith.addf %195, %3 : vector<16x16xf32>
    %cst_88 = arith.constant dense<0xFF800000> : vector<16xf32>
    %197 = vector.multi_reduction <maximumf>, %196, %cst_88 [1] : vector<16x16xf32> to vector<16xf32>
    %198 = vector.shape_cast %197 : vector<16xf32> to vector<16x1xf32>
    %199 = vector.broadcast %198 : vector<16x1xf32> to vector<16x16xf32>
    %200 = arith.subf %196, %199 : vector<16x16xf32>
    %201 = math.exp %200 : vector<16x16xf32>
    %cst_89 = arith.constant dense<0.000000e+00> : vector<16xf32>
    %202 = vector.multi_reduction <add>, %201, %cst_89 [1] : vector<16x16xf32> to vector<16xf32>
    %203 = vector.shape_cast %202 : vector<16xf32> to vector<16x1xf32>
    %204 = vector.broadcast %203 : vector<16x1xf32> to vector<16x16xf32>
    %205 = arith.divf %201, %204 : vector<16x16xf32>
    %206 = vector.extract_strided_slice %155 {offsets = [0, 16], sizes = [16, 8], strides = [1, 1]} : vector<16x32xf32> to vector<16x8xf32>
    %cst_90 = arith.constant dense<0.000000e+00> : vector<16x8xf32>
    %207 = tpu.matmul %205, %206, %cst_90 {dimension_numbers = #tpu.dot_dimension_numbers<[1], [0], [0], [1], [0, 0, 1, 1], [], []>} : vector<16x16xf32>, vector<16x8xf32>, vector<16x8xf32> -> vector<16x8xf32>
    %208 = vector.extract_strided_slice %157 {offsets = [16, 0], sizes = [8, 32], strides = [1, 1]} : vector<32x32xf32> to vector<8x32xf32>
    %cst_91 = arith.constant dense<0.000000e+00> : vector<16x32xf32>
    %209 = tpu.matmul %207, %208, %cst_91 {dimension_numbers = #tpu.dot_dimension_numbers<[1], [0], [0], [1], [0, 0, 1, 1], [], []>} : vector<16x8xf32>, vector<8x32xf32>, vector<16x32xf32> -> vector<16x32xf32>
    %210 = arith.addf %192, %209 : vector<16x32xf32>
    %211 = vector.extract_strided_slice %146 {offsets = [0, 24], sizes = [16, 8], strides = [1, 1]} : vector<16x32xf32> to vector<16x8xf32>
    %212 = vector.extract_strided_slice %154 {offsets = [0, 24], sizes = [16, 8], strides = [1, 1]} : vector<16x32xf32> to vector<16x8xf32>
    %cst_92 = arith.constant dense<0.000000e+00> : vector<16x16xf32>
    %213 = tpu.matmul %211, %212, %cst_92 {dimension_numbers = #tpu.dot_dimension_numbers<[1], [1], [0], [0], [0, 0, 1, 0], [], []>} : vector<16x8xf32>, vector<16x8xf32>, vector<16x16xf32> -> vector<16x16xf32>
    %214 = arith.addf %213, %3 : vector<16x16xf32>
    %cst_93 = arith.constant dense<0xFF800000> : vector<16xf32>
    %215 = vector.multi_reduction <maximumf>, %214, %cst_93 [1] : vector<16x16xf32> to vector<16xf32>
    %216 = vector.shape_cast %215 : vector<16xf32> to vector<16x1xf32>
    %217 = vector.broadcast %216 : vector<16x1xf32> to vector<16x16xf32>
    %218 = arith.subf %214, %217 : vector<16x16xf32>
    %219 = math.exp %218 : vector<16x16xf32>
    %cst_94 = arith.constant dense<0.000000e+00> : vector<16xf32>
    %220 = vector.multi_reduction <add>, %219, %cst_94 [1] : vector<16x16xf32> to vector<16xf32>
    %221 = vector.shape_cast %220 : vector<16xf32> to vector<16x1xf32>
    %222 = vector.broadcast %221 : vector<16x1xf32> to vector<16x16xf32>
    %223 = arith.divf %219, %222 : vector<16x16xf32>
    %224 = vector.extract_strided_slice %155 {offsets = [0, 24], sizes = [16, 8], strides = [1, 1]} : vector<16x32xf32> to vector<16x8xf32>
    %cst_95 = arith.constant dense<0.000000e+00> : vector<16x8xf32>
    %225 = tpu.matmul %223, %224, %cst_95 {dimension_numbers = #tpu.dot_dimension_numbers<[1], [0], [0], [1], [0, 0, 1, 1], [], []>} : vector<16x16xf32>, vector<16x8xf32>, vector<16x8xf32> -> vector<16x8xf32>
    %226 = vector.extract_strided_slice %157 {offsets = [24, 0], sizes = [8, 32], strides = [1, 1]} : vector<32x32xf32> to vector<8x32xf32>
    %cst_96 = arith.constant dense<0.000000e+00> : vector<16x32xf32>
    %227 = tpu.matmul %225, %226, %cst_96 {dimension_numbers = #tpu.dot_dimension_numbers<[1], [0], [0], [1], [0, 0, 1, 1], [], []>} : vector<16x8xf32>, vector<8x32xf32>, vector<16x32xf32> -> vector<16x32xf32>
    %228 = arith.addf %210, %227 : vector<16x32xf32>
    %229 = arith.addf %115, %228 : vector<16x32xf32>
    %c0_97 = arith.constant 0 : index
    %c0_98 = arith.constant 0 : index
    %c0_99 = arith.constant 0 : index
    %230 = vector.load %arg15[%c0_97, %c0_98, %c0_99] : memref<2x1x32xf32, #tpu.memory_space<vmem>>, vector<1x1x32xf32>
    %231 = vector.shape_cast %230 : vector<1x1x32xf32> to vector<1x32xf32>
    %232 = vector.broadcast %231 : vector<1x32xf32> to vector<16x32xf32>
    %233 = arith.addf %229, %232 : vector<16x32xf32>
    %c2 = arith.constant 2 : index
    %c0_100 = arith.constant 0 : index
    %c0_101 = arith.constant 0 : index
    %234 = vector.load %arg4[%c2, %c0_100, %c0_101] : memref<7x1x32xf32, #tpu.memory_space<vmem>>, vector<1x1x32xf32>
    %235 = vector.shape_cast %234 : vector<1x1x32xf32> to vector<1x32xf32>
    %c2_102 = arith.constant 2 : index
    %c0_103 = arith.constant 0 : index
    %c0_104 = arith.constant 0 : index
    %236 = vector.load %arg5[%c2_102, %c0_103, %c0_104] : memref<7x1x32xf32, #tpu.memory_space<vmem>>, vector<1x1x32xf32>
    %237 = vector.shape_cast %236 : vector<1x1x32xf32> to vector<1x32xf32>
    %cst_105 = arith.constant dense<0.000000e+00> : vector<16xf32>
    %238 = vector.multi_reduction <add>, %233, %cst_105 [1] : vector<16x32xf32> to vector<16xf32>
    %239 = vector.shape_cast %238 : vector<16xf32> to vector<16x1xf32>
    %cst_106 = arith.constant 3.200000e+01 : f32
    %240 = vector.broadcast %cst_106 : f32 to vector<16x1xf32>
    %241 = arith.divf %239, %240 : vector<16x1xf32>
    %242 = vector.broadcast %241 : vector<16x1xf32> to vector<16x32xf32>
    %243 = arith.subf %233, %242 : vector<16x32xf32>
    %244 = arith.mulf %243, %243 : vector<16x32xf32>
    %cst_107 = arith.constant dense<0.000000e+00> : vector<16xf32>
    %245 = vector.multi_reduction <add>, %244, %cst_107 [1] : vector<16x32xf32> to vector<16xf32>
    %246 = vector.shape_cast %245 : vector<16xf32> to vector<16x1xf32>
    %cst_108 = arith.constant 0.0322580636 : f32
    %247 = vector.broadcast %cst_108 : f32 to vector<16x1xf32>
    %248 = arith.mulf %246, %247 : vector<16x1xf32>
    %249 = math.sqrt %248 : vector<16x1xf32>
    %cst_109 = arith.constant 9.99999997E-7 : f32
    %250 = vector.broadcast %cst_109 : f32 to vector<16x1xf32>
    %251 = arith.addf %249, %250 : vector<16x1xf32>
    %252 = vector.broadcast %251 : vector<16x1xf32> to vector<16x32xf32>
    %253 = arith.divf %243, %252 : vector<16x32xf32>
    %254 = vector.broadcast %235 : vector<1x32xf32> to vector<16x32xf32>
    %255 = arith.mulf %254, %253 : vector<16x32xf32>
    %256 = vector.broadcast %237 : vector<1x32xf32> to vector<16x32xf32>
    %257 = arith.addf %255, %256 : vector<16x32xf32>
    %c0_110 = arith.constant 0 : index
    %c0_111 = arith.constant 0 : index
    %c0_112 = arith.constant 0 : index
    %258 = vector.load %arg16[%c0_110, %c0_111, %c0_112] : memref<2x32x64xf32, #tpu.memory_space<vmem>>, vector<1x32x64xf32>
    %259 = vector.shape_cast %258 : vector<1x32x64xf32> to vector<32x64xf32>
    %cst_113 = arith.constant dense<0.000000e+00> : vector<16x64xf32>
    %260 = tpu.matmul %257, %259, %cst_113 {dimension_numbers = #tpu.dot_dimension_numbers<[1], [0], [0], [1], [0, 0, 1, 1], [], []>} : vector<16x32xf32>, vector<32x64xf32>, vector<16x64xf32> -> vector<16x64xf32>
    %c0_114 = arith.constant 0 : index
    %c0_115 = arith.constant 0 : index
    %c0_116 = arith.constant 0 : index
    %261 = vector.load %arg17[%c0_114, %c0_115, %c0_116] : memref<2x1x64xf32, #tpu.memory_space<vmem>>, vector<1x1x64xf32>
    %262 = vector.shape_cast %261 : vector<1x1x64xf32> to vector<1x64xf32>
    %263 = vector.broadcast %262 : vector<1x64xf32> to vector<16x64xf32>
    %264 = arith.addf %260, %263 : vector<16x64xf32>
    %cst_117 = arith.constant 0.000000e+00 : f32
    %265 = vector.broadcast %cst_117 : f32 to vector<16x64xf32>
    %266 = arith.maximumf %264, %265 : vector<16x64xf32>
    %c0_118 = arith.constant 0 : index
    %c0_119 = arith.constant 0 : index
    %c0_120 = arith.constant 0 : index
    %267 = vector.load %arg18[%c0_118, %c0_119, %c0_120] : memref<2x64x32xf32, #tpu.memory_space<vmem>>, vector<1x64x32xf32>
    %268 = vector.shape_cast %267 : vector<1x64x32xf32> to vector<64x32xf32>
    %cst_121 = arith.constant dense<0.000000e+00> : vector<16x32xf32>
    %269 = tpu.matmul %266, %268, %cst_121 {dimension_numbers = #tpu.dot_dimension_numbers<[1], [0], [0], [1], [0, 0, 1, 1], [], []>} : vector<16x64xf32>, vector<64x32xf32>, vector<16x32xf32> -> vector<16x32xf32>
    %270 = arith.addf %233, %269 : vector<16x32xf32>
    %c0_122 = arith.constant 0 : index
    %c0_123 = arith.constant 0 : index
    %c0_124 = arith.constant 0 : index
    %271 = vector.load %arg19[%c0_122, %c0_123, %c0_124] : memref<2x1x32xf32, #tpu.memory_space<vmem>>, vector<1x1x32xf32>
    %272 = vector.shape_cast %271 : vector<1x1x32xf32> to vector<1x32xf32>
    %273 = vector.broadcast %272 : vector<1x32xf32> to vector<16x32xf32>
    %274 = arith.addf %270, %273 : vector<16x32xf32>
    %c3 = arith.constant 3 : index
    %c0_125 = arith.constant 0 : index
    %c0_126 = arith.constant 0 : index
    %275 = vector.load %arg4[%c3, %c0_125, %c0_126] : memref<7x1x32xf32, #tpu.memory_space<vmem>>, vector<1x1x32xf32>
    %276 = vector.shape_cast %275 : vector<1x1x32xf32> to vector<1x32xf32>
    %c3_127 = arith.constant 3 : index
    %c0_128 = arith.constant 0 : index
    %c0_129 = arith.constant 0 : index
    %277 = vector.load %arg5[%c3_127, %c0_128, %c0_129] : memref<7x1x32xf32, #tpu.memory_space<vmem>>, vector<1x1x32xf32>
    %278 = vector.shape_cast %277 : vector<1x1x32xf32> to vector<1x32xf32>
    %cst_130 = arith.constant dense<0.000000e+00> : vector<16xf32>
    %279 = vector.multi_reduction <add>, %274, %cst_130 [1] : vector<16x32xf32> to vector<16xf32>
    %280 = vector.shape_cast %279 : vector<16xf32> to vector<16x1xf32>
    %cst_131 = arith.constant 3.200000e+01 : f32
    %281 = vector.broadcast %cst_131 : f32 to vector<16x1xf32>
    %282 = arith.divf %280, %281 : vector<16x1xf32>
    %283 = vector.broadcast %282 : vector<16x1xf32> to vector<16x32xf32>
    %284 = arith.subf %274, %283 : vector<16x32xf32>
    %285 = arith.mulf %284, %284 : vector<16x32xf32>
    %cst_132 = arith.constant dense<0.000000e+00> : vector<16xf32>
    %286 = vector.multi_reduction <add>, %285, %cst_132 [1] : vector<16x32xf32> to vector<16xf32>
    %287 = vector.shape_cast %286 : vector<16xf32> to vector<16x1xf32>
    %cst_133 = arith.constant 0.0322580636 : f32
    %288 = vector.broadcast %cst_133 : f32 to vector<16x1xf32>
    %289 = arith.mulf %287, %288 : vector<16x1xf32>
    %290 = math.sqrt %289 : vector<16x1xf32>
    %cst_134 = arith.constant 9.99999997E-7 : f32
    %291 = vector.broadcast %cst_134 : f32 to vector<16x1xf32>
    %292 = arith.addf %290, %291 : vector<16x1xf32>
    %293 = vector.broadcast %292 : vector<16x1xf32> to vector<16x32xf32>
    %294 = arith.divf %284, %293 : vector<16x32xf32>
    %295 = vector.broadcast %276 : vector<1x32xf32> to vector<16x32xf32>
    %296 = arith.mulf %295, %294 : vector<16x32xf32>
    %297 = vector.broadcast %278 : vector<1x32xf32> to vector<16x32xf32>
    %298 = arith.addf %296, %297 : vector<16x32xf32>
    %c1_135 = arith.constant 1 : index
    %c0_136 = arith.constant 0 : index
    %c0_137 = arith.constant 0 : index
    %299 = vector.load %arg6[%c1_135, %c0_136, %c0_137] : memref<2x32x96xf32, #tpu.memory_space<vmem>>, vector<1x32x96xf32>
    %300 = vector.shape_cast %299 : vector<1x32x96xf32> to vector<32x96xf32>
    %cst_138 = arith.constant dense<0.000000e+00> : vector<16x96xf32>
    %301 = tpu.matmul %298, %300, %cst_138 {dimension_numbers = #tpu.dot_dimension_numbers<[1], [0], [0], [1], [0, 0, 1, 1], [], []>} : vector<16x32xf32>, vector<32x96xf32>, vector<16x96xf32> -> vector<16x96xf32>
    %c1_139 = arith.constant 1 : index
    %c0_140 = arith.constant 0 : index
    %c0_141 = arith.constant 0 : index
    %302 = vector.load %arg7[%c1_139, %c0_140, %c0_141] : memref<2x1x96xf32, #tpu.memory_space<vmem>>, vector<1x1x96xf32>
    %303 = vector.shape_cast %302 : vector<1x1x96xf32> to vector<1x96xf32>
    %304 = vector.broadcast %303 : vector<1x96xf32> to vector<16x96xf32>
    %305 = arith.addf %301, %304 : vector<16x96xf32>
    %306 = vector.extract_strided_slice %305 {offsets = [0, 0], sizes = [16, 32], strides = [1, 1]} : vector<16x96xf32> to vector<16x32xf32>
    %307 = vector.extract_strided_slice %305 {offsets = [0, 32], sizes = [16, 32], strides = [1, 1]} : vector<16x96xf32> to vector<16x32xf32>
    %308 = vector.extract_strided_slice %305 {offsets = [0, 64], sizes = [16, 32], strides = [1, 1]} : vector<16x96xf32> to vector<16x32xf32>
    %c1_142 = arith.constant 1 : index
    %c0_143 = arith.constant 0 : index
    %c0_144 = arith.constant 0 : index
    %309 = vector.load %arg8[%c1_142, %c0_143, %c0_144] : memref<2x32x32xf32, #tpu.memory_space<vmem>>, vector<1x32x32xf32>
    %310 = vector.shape_cast %309 : vector<1x32x32xf32> to vector<32x32xf32>
    %311 = vector.extract_strided_slice %306 {offsets = [0, 0], sizes = [16, 8], strides = [1, 1]} : vector<16x32xf32> to vector<16x8xf32>
    %312 = vector.extract_strided_slice %307 {offsets = [0, 0], sizes = [16, 8], strides = [1, 1]} : vector<16x32xf32> to vector<16x8xf32>
    %cst_145 = arith.constant dense<0.000000e+00> : vector<16x16xf32>
    %313 = tpu.matmul %311, %312, %cst_145 {dimension_numbers = #tpu.dot_dimension_numbers<[1], [1], [0], [0], [0, 0, 1, 0], [], []>} : vector<16x8xf32>, vector<16x8xf32>, vector<16x16xf32> -> vector<16x16xf32>
    %314 = arith.addf %313, %2 : vector<16x16xf32>
    %cst_146 = arith.constant dense<0xFF800000> : vector<16xf32>
    %315 = vector.multi_reduction <maximumf>, %314, %cst_146 [1] : vector<16x16xf32> to vector<16xf32>
    %316 = vector.shape_cast %315 : vector<16xf32> to vector<16x1xf32>
    %317 = vector.broadcast %316 : vector<16x1xf32> to vector<16x16xf32>
    %318 = arith.subf %314, %317 : vector<16x16xf32>
    %319 = math.exp %318 : vector<16x16xf32>
    %cst_147 = arith.constant dense<0.000000e+00> : vector<16xf32>
    %320 = vector.multi_reduction <add>, %319, %cst_147 [1] : vector<16x16xf32> to vector<16xf32>
    %321 = vector.shape_cast %320 : vector<16xf32> to vector<16x1xf32>
    %322 = vector.broadcast %321 : vector<16x1xf32> to vector<16x16xf32>
    %323 = arith.divf %319, %322 : vector<16x16xf32>
    %324 = vector.extract_strided_slice %308 {offsets = [0, 0], sizes = [16, 8], strides = [1, 1]} : vector<16x32xf32> to vector<16x8xf32>
    %cst_148 = arith.constant dense<0.000000e+00> : vector<16x8xf32>
    %325 = tpu.matmul %323, %324, %cst_148 {dimension_numbers = #tpu.dot_dimension_numbers<[1], [0], [0], [1], [0, 0, 1, 1], [], []>} : vector<16x16xf32>, vector<16x8xf32>, vector<16x8xf32> -> vector<16x8xf32>
    %326 = vector.extract_strided_slice %310 {offsets = [0, 0], sizes = [8, 32], strides = [1, 1]} : vector<32x32xf32> to vector<8x32xf32>
    %cst_149 = arith.constant dense<0.000000e+00> : vector<16x32xf32>
    %327 = tpu.matmul %325, %326, %cst_149 {dimension_numbers = #tpu.dot_dimension_numbers<[1], [0], [0], [1], [0, 0, 1, 1], [], []>} : vector<16x8xf32>, vector<8x32xf32>, vector<16x32xf32> -> vector<16x32xf32>
    %328 = vector.extract_strided_slice %306 {offsets = [0, 8], sizes = [16, 8], strides = [1, 1]} : vector<16x32xf32> to vector<16x8xf32>
    %329 = vector.extract_strided_slice %307 {offsets = [0, 8], sizes = [16, 8], strides = [1, 1]} : vector<16x32xf32> to vector<16x8xf32>
    %cst_150 = arith.constant dense<0.000000e+00> : vector<16x16xf32>
    %330 = tpu.matmul %328, %329, %cst_150 {dimension_numbers = #tpu.dot_dimension_numbers<[1], [1], [0], [0], [0, 0, 1, 0], [], []>} : vector<16x8xf32>, vector<16x8xf32>, vector<16x16xf32> -> vector<16x16xf32>
    %331 = arith.addf %330, %2 : vector<16x16xf32>
    %cst_151 = arith.constant dense<0xFF800000> : vector<16xf32>
    %332 = vector.multi_reduction <maximumf>, %331, %cst_151 [1] : vector<16x16xf32> to vector<16xf32>
    %333 = vector.shape_cast %332 : vector<16xf32> to vector<16x1xf32>
    %334 = vector.broadcast %333 : vector<16x1xf32> to vector<16x16xf32>
    %335 = arith.subf %331, %334 : vector<16x16xf32>
    %336 = math.exp %335 : vector<16x16xf32>
    %cst_152 = arith.constant dense<0.000000e+00> : vector<16xf32>
    %337 = vector.multi_reduction <add>, %336, %cst_152 [1] : vector<16x16xf32> to vector<16xf32>
    %338 = vector.shape_cast %337 : vector<16xf32> to vector<16x1xf32>
    %339 = vector.broadcast %338 : vector<16x1xf32> to vector<16x16xf32>
    %340 = arith.divf %336, %339 : vector<16x16xf32>
    %341 = vector.extract_strided_slice %308 {offsets = [0, 8], sizes = [16, 8], strides = [1, 1]} : vector<16x32xf32> to vector<16x8xf32>
    %cst_153 = arith.constant dense<0.000000e+00> : vector<16x8xf32>
    %342 = tpu.matmul %340, %341, %cst_153 {dimension_numbers = #tpu.dot_dimension_numbers<[1], [0], [0], [1], [0, 0, 1, 1], [], []>} : vector<16x16xf32>, vector<16x8xf32>, vector<16x8xf32> -> vector<16x8xf32>
    %343 = vector.extract_strided_slice %310 {offsets = [8, 0], sizes = [8, 32], strides = [1, 1]} : vector<32x32xf32> to vector<8x32xf32>
    %cst_154 = arith.constant dense<0.000000e+00> : vector<16x32xf32>
    %344 = tpu.matmul %342, %343, %cst_154 {dimension_numbers = #tpu.dot_dimension_numbers<[1], [0], [0], [1], [0, 0, 1, 1], [], []>} : vector<16x8xf32>, vector<8x32xf32>, vector<16x32xf32> -> vector<16x32xf32>
    %345 = arith.addf %327, %344 : vector<16x32xf32>
    %346 = vector.extract_strided_slice %306 {offsets = [0, 16], sizes = [16, 8], strides = [1, 1]} : vector<16x32xf32> to vector<16x8xf32>
    %347 = vector.extract_strided_slice %307 {offsets = [0, 16], sizes = [16, 8], strides = [1, 1]} : vector<16x32xf32> to vector<16x8xf32>
    %cst_155 = arith.constant dense<0.000000e+00> : vector<16x16xf32>
    %348 = tpu.matmul %346, %347, %cst_155 {dimension_numbers = #tpu.dot_dimension_numbers<[1], [1], [0], [0], [0, 0, 1, 0], [], []>} : vector<16x8xf32>, vector<16x8xf32>, vector<16x16xf32> -> vector<16x16xf32>
    %349 = arith.addf %348, %2 : vector<16x16xf32>
    %cst_156 = arith.constant dense<0xFF800000> : vector<16xf32>
    %350 = vector.multi_reduction <maximumf>, %349, %cst_156 [1] : vector<16x16xf32> to vector<16xf32>
    %351 = vector.shape_cast %350 : vector<16xf32> to vector<16x1xf32>
    %352 = vector.broadcast %351 : vector<16x1xf32> to vector<16x16xf32>
    %353 = arith.subf %349, %352 : vector<16x16xf32>
    %354 = math.exp %353 : vector<16x16xf32>
    %cst_157 = arith.constant dense<0.000000e+00> : vector<16xf32>
    %355 = vector.multi_reduction <add>, %354, %cst_157 [1] : vector<16x16xf32> to vector<16xf32>
    %356 = vector.shape_cast %355 : vector<16xf32> to vector<16x1xf32>
    %357 = vector.broadcast %356 : vector<16x1xf32> to vector<16x16xf32>
    %358 = arith.divf %354, %357 : vector<16x16xf32>
    %359 = vector.extract_strided_slice %308 {offsets = [0, 16], sizes = [16, 8], strides = [1, 1]} : vector<16x32xf32> to vector<16x8xf32>
    %cst_158 = arith.constant dense<0.000000e+00> : vector<16x8xf32>
    %360 = tpu.matmul %358, %359, %cst_158 {dimension_numbers = #tpu.dot_dimension_numbers<[1], [0], [0], [1], [0, 0, 1, 1], [], []>} : vector<16x16xf32>, vector<16x8xf32>, vector<16x8xf32> -> vector<16x8xf32>
    %361 = vector.extract_strided_slice %310 {offsets = [16, 0], sizes = [8, 32], strides = [1, 1]} : vector<32x32xf32> to vector<8x32xf32>
    %cst_159 = arith.constant dense<0.000000e+00> : vector<16x32xf32>
    %362 = tpu.matmul %360, %361, %cst_159 {dimension_numbers = #tpu.dot_dimension_numbers<[1], [0], [0], [1], [0, 0, 1, 1], [], []>} : vector<16x8xf32>, vector<8x32xf32>, vector<16x32xf32> -> vector<16x32xf32>
    %363 = arith.addf %345, %362 : vector<16x32xf32>
    %364 = vector.extract_strided_slice %306 {offsets = [0, 24], sizes = [16, 8], strides = [1, 1]} : vector<16x32xf32> to vector<16x8xf32>
    %365 = vector.extract_strided_slice %307 {offsets = [0, 24], sizes = [16, 8], strides = [1, 1]} : vector<16x32xf32> to vector<16x8xf32>
    %cst_160 = arith.constant dense<0.000000e+00> : vector<16x16xf32>
    %366 = tpu.matmul %364, %365, %cst_160 {dimension_numbers = #tpu.dot_dimension_numbers<[1], [1], [0], [0], [0, 0, 1, 0], [], []>} : vector<16x8xf32>, vector<16x8xf32>, vector<16x16xf32> -> vector<16x16xf32>
    %367 = arith.addf %366, %2 : vector<16x16xf32>
    %cst_161 = arith.constant dense<0xFF800000> : vector<16xf32>
    %368 = vector.multi_reduction <maximumf>, %367, %cst_161 [1] : vector<16x16xf32> to vector<16xf32>
    %369 = vector.shape_cast %368 : vector<16xf32> to vector<16x1xf32>
    %370 = vector.broadcast %369 : vector<16x1xf32> to vector<16x16xf32>
    %371 = arith.subf %367, %370 : vector<16x16xf32>
    %372 = math.exp %371 : vector<16x16xf32>
    %cst_162 = arith.constant dense<0.000000e+00> : vector<16xf32>
    %373 = vector.multi_reduction <add>, %372, %cst_162 [1] : vector<16x16xf32> to vector<16xf32>
    %374 = vector.shape_cast %373 : vector<16xf32> to vector<16x1xf32>
    %375 = vector.broadcast %374 : vector<16x1xf32> to vector<16x16xf32>
    %376 = arith.divf %372, %375 : vector<16x16xf32>
    %377 = vector.extract_strided_slice %308 {offsets = [0, 24], sizes = [16, 8], strides = [1, 1]} : vector<16x32xf32> to vector<16x8xf32>
    %cst_163 = arith.constant dense<0.000000e+00> : vector<16x8xf32>
    %378 = tpu.matmul %376, %377, %cst_163 {dimension_numbers = #tpu.dot_dimension_numbers<[1], [0], [0], [1], [0, 0, 1, 1], [], []>} : vector<16x16xf32>, vector<16x8xf32>, vector<16x8xf32> -> vector<16x8xf32>
    %379 = vector.extract_strided_slice %310 {offsets = [24, 0], sizes = [8, 32], strides = [1, 1]} : vector<32x32xf32> to vector<8x32xf32>
    %cst_164 = arith.constant dense<0.000000e+00> : vector<16x32xf32>
    %380 = tpu.matmul %378, %379, %cst_164 {dimension_numbers = #tpu.dot_dimension_numbers<[1], [0], [0], [1], [0, 0, 1, 1], [], []>} : vector<16x8xf32>, vector<8x32xf32>, vector<16x32xf32> -> vector<16x32xf32>
    %381 = arith.addf %363, %380 : vector<16x32xf32>
    %382 = arith.addf %274, %381 : vector<16x32xf32>
    %c1_165 = arith.constant 1 : index
    %c0_166 = arith.constant 0 : index
    %c0_167 = arith.constant 0 : index
    %383 = vector.load %arg9[%c1_165, %c0_166, %c0_167] : memref<2x1x32xf32, #tpu.memory_space<vmem>>, vector<1x1x32xf32>
    %384 = vector.shape_cast %383 : vector<1x1x32xf32> to vector<1x32xf32>
    %385 = vector.broadcast %384 : vector<1x32xf32> to vector<16x32xf32>
    %386 = arith.addf %382, %385 : vector<16x32xf32>
    %c4 = arith.constant 4 : index
    %c0_168 = arith.constant 0 : index
    %c0_169 = arith.constant 0 : index
    %387 = vector.load %arg4[%c4, %c0_168, %c0_169] : memref<7x1x32xf32, #tpu.memory_space<vmem>>, vector<1x1x32xf32>
    %388 = vector.shape_cast %387 : vector<1x1x32xf32> to vector<1x32xf32>
    %c4_170 = arith.constant 4 : index
    %c0_171 = arith.constant 0 : index
    %c0_172 = arith.constant 0 : index
    %389 = vector.load %arg5[%c4_170, %c0_171, %c0_172] : memref<7x1x32xf32, #tpu.memory_space<vmem>>, vector<1x1x32xf32>
    %390 = vector.shape_cast %389 : vector<1x1x32xf32> to vector<1x32xf32>
    %cst_173 = arith.constant dense<0.000000e+00> : vector<16xf32>
    %391 = vector.multi_reduction <add>, %386, %cst_173 [1] : vector<16x32xf32> to vector<16xf32>
    %392 = vector.shape_cast %391 : vector<16xf32> to vector<16x1xf32>
    %cst_174 = arith.constant 3.200000e+01 : f32
    %393 = vector.broadcast %cst_174 : f32 to vector<16x1xf32>
    %394 = arith.divf %392, %393 : vector<16x1xf32>
    %395 = vector.broadcast %394 : vector<16x1xf32> to vector<16x32xf32>
    %396 = arith.subf %386, %395 : vector<16x32xf32>
    %397 = arith.mulf %396, %396 : vector<16x32xf32>
    %cst_175 = arith.constant dense<0.000000e+00> : vector<16xf32>
    %398 = vector.multi_reduction <add>, %397, %cst_175 [1] : vector<16x32xf32> to vector<16xf32>
    %399 = vector.shape_cast %398 : vector<16xf32> to vector<16x1xf32>
    %cst_176 = arith.constant 0.0322580636 : f32
    %400 = vector.broadcast %cst_176 : f32 to vector<16x1xf32>
    %401 = arith.mulf %399, %400 : vector<16x1xf32>
    %402 = math.sqrt %401 : vector<16x1xf32>
    %cst_177 = arith.constant 9.99999997E-7 : f32
    %403 = vector.broadcast %cst_177 : f32 to vector<16x1xf32>
    %404 = arith.addf %402, %403 : vector<16x1xf32>
    %405 = vector.broadcast %404 : vector<16x1xf32> to vector<16x32xf32>
    %406 = arith.divf %396, %405 : vector<16x32xf32>
    %407 = vector.broadcast %388 : vector<1x32xf32> to vector<16x32xf32>
    %408 = arith.mulf %407, %406 : vector<16x32xf32>
    %409 = vector.broadcast %390 : vector<1x32xf32> to vector<16x32xf32>
    %410 = arith.addf %408, %409 : vector<16x32xf32>
    %c1_178 = arith.constant 1 : index
    %c0_179 = arith.constant 0 : index
    %c0_180 = arith.constant 0 : index
    %411 = vector.load %arg10[%c1_178, %c0_179, %c0_180] : memref<2x32x32xf32, #tpu.memory_space<vmem>>, vector<1x32x32xf32>
    %412 = vector.shape_cast %411 : vector<1x32x32xf32> to vector<32x32xf32>
    %cst_181 = arith.constant dense<0.000000e+00> : vector<16x32xf32>
    %413 = tpu.matmul %410, %412, %cst_181 {dimension_numbers = #tpu.dot_dimension_numbers<[1], [0], [0], [1], [0, 0, 1, 1], [], []>} : vector<16x32xf32>, vector<32x32xf32>, vector<16x32xf32> -> vector<16x32xf32>
    %c1_182 = arith.constant 1 : index
    %c0_183 = arith.constant 0 : index
    %c0_184 = arith.constant 0 : index
    %414 = vector.load %arg11[%c1_182, %c0_183, %c0_184] : memref<2x1x32xf32, #tpu.memory_space<vmem>>, vector<1x1x32xf32>
    %415 = vector.shape_cast %414 : vector<1x1x32xf32> to vector<1x32xf32>
    %416 = vector.broadcast %415 : vector<1x32xf32> to vector<16x32xf32>
    %417 = arith.addf %413, %416 : vector<16x32xf32>
    %c1_185 = arith.constant 1 : index
    %c0_186 = arith.constant 0 : index
    %c0_187 = arith.constant 0 : index
    %418 = vector.load %arg12[%c1_185, %c0_186, %c0_187] : memref<2x32x64xf32, #tpu.memory_space<vmem>>, vector<1x32x64xf32>
    %419 = vector.shape_cast %418 : vector<1x32x64xf32> to vector<32x64xf32>
    %cst_188 = arith.constant dense<0.000000e+00> : vector<16x64xf32>
    %420 = tpu.matmul %1, %419, %cst_188 {dimension_numbers = #tpu.dot_dimension_numbers<[1], [0], [0], [1], [0, 0, 1, 1], [], []>} : vector<16x32xf32>, vector<32x64xf32>, vector<16x64xf32> -> vector<16x64xf32>
    %c1_189 = arith.constant 1 : index
    %c0_190 = arith.constant 0 : index
    %c0_191 = arith.constant 0 : index
    %421 = vector.load %arg13[%c1_189, %c0_190, %c0_191] : memref<2x1x64xf32, #tpu.memory_space<vmem>>, vector<1x1x64xf32>
    %422 = vector.shape_cast %421 : vector<1x1x64xf32> to vector<1x64xf32>
    %423 = vector.broadcast %422 : vector<1x64xf32> to vector<16x64xf32>
    %424 = arith.addf %420, %423 : vector<16x64xf32>
    %425 = vector.extract_strided_slice %424 {offsets = [0, 0], sizes = [16, 32], strides = [1, 1]} : vector<16x64xf32> to vector<16x32xf32>
    %426 = vector.extract_strided_slice %424 {offsets = [0, 32], sizes = [16, 32], strides = [1, 1]} : vector<16x64xf32> to vector<16x32xf32>
    %c1_192 = arith.constant 1 : index
    %c0_193 = arith.constant 0 : index
    %c0_194 = arith.constant 0 : index
    %427 = vector.load %arg14[%c1_192, %c0_193, %c0_194] : memref<2x32x32xf32, #tpu.memory_space<vmem>>, vector<1x32x32xf32>
    %428 = vector.shape_cast %427 : vector<1x32x32xf32> to vector<32x32xf32>
    %429 = vector.extract_strided_slice %417 {offsets = [0, 0], sizes = [16, 8], strides = [1, 1]} : vector<16x32xf32> to vector<16x8xf32>
    %430 = vector.extract_strided_slice %425 {offsets = [0, 0], sizes = [16, 8], strides = [1, 1]} : vector<16x32xf32> to vector<16x8xf32>
    %cst_195 = arith.constant dense<0.000000e+00> : vector<16x16xf32>
    %431 = tpu.matmul %429, %430, %cst_195 {dimension_numbers = #tpu.dot_dimension_numbers<[1], [1], [0], [0], [0, 0, 1, 0], [], []>} : vector<16x8xf32>, vector<16x8xf32>, vector<16x16xf32> -> vector<16x16xf32>
    %432 = arith.addf %431, %3 : vector<16x16xf32>
    %cst_196 = arith.constant dense<0xFF800000> : vector<16xf32>
    %433 = vector.multi_reduction <maximumf>, %432, %cst_196 [1] : vector<16x16xf32> to vector<16xf32>
    %434 = vector.shape_cast %433 : vector<16xf32> to vector<16x1xf32>
    %435 = vector.broadcast %434 : vector<16x1xf32> to vector<16x16xf32>
    %436 = arith.subf %432, %435 : vector<16x16xf32>
    %437 = math.exp %436 : vector<16x16xf32>
    %cst_197 = arith.constant dense<0.000000e+00> : vector<16xf32>
    %438 = vector.multi_reduction <add>, %437, %cst_197 [1] : vector<16x16xf32> to vector<16xf32>
    %439 = vector.shape_cast %438 : vector<16xf32> to vector<16x1xf32>
    %440 = vector.broadcast %439 : vector<16x1xf32> to vector<16x16xf32>
    %441 = arith.divf %437, %440 : vector<16x16xf32>
    %442 = vector.extract_strided_slice %426 {offsets = [0, 0], sizes = [16, 8], strides = [1, 1]} : vector<16x32xf32> to vector<16x8xf32>
    %cst_198 = arith.constant dense<0.000000e+00> : vector<16x8xf32>
    %443 = tpu.matmul %441, %442, %cst_198 {dimension_numbers = #tpu.dot_dimension_numbers<[1], [0], [0], [1], [0, 0, 1, 1], [], []>} : vector<16x16xf32>, vector<16x8xf32>, vector<16x8xf32> -> vector<16x8xf32>
    %444 = vector.extract_strided_slice %428 {offsets = [0, 0], sizes = [8, 32], strides = [1, 1]} : vector<32x32xf32> to vector<8x32xf32>
    %cst_199 = arith.constant dense<0.000000e+00> : vector<16x32xf32>
    %445 = tpu.matmul %443, %444, %cst_199 {dimension_numbers = #tpu.dot_dimension_numbers<[1], [0], [0], [1], [0, 0, 1, 1], [], []>} : vector<16x8xf32>, vector<8x32xf32>, vector<16x32xf32> -> vector<16x32xf32>
    %446 = vector.extract_strided_slice %417 {offsets = [0, 8], sizes = [16, 8], strides = [1, 1]} : vector<16x32xf32> to vector<16x8xf32>
    %447 = vector.extract_strided_slice %425 {offsets = [0, 8], sizes = [16, 8], strides = [1, 1]} : vector<16x32xf32> to vector<16x8xf32>
    %cst_200 = arith.constant dense<0.000000e+00> : vector<16x16xf32>
    %448 = tpu.matmul %446, %447, %cst_200 {dimension_numbers = #tpu.dot_dimension_numbers<[1], [1], [0], [0], [0, 0, 1, 0], [], []>} : vector<16x8xf32>, vector<16x8xf32>, vector<16x16xf32> -> vector<16x16xf32>
    %449 = arith.addf %448, %3 : vector<16x16xf32>
    %cst_201 = arith.constant dense<0xFF800000> : vector<16xf32>
    %450 = vector.multi_reduction <maximumf>, %449, %cst_201 [1] : vector<16x16xf32> to vector<16xf32>
    %451 = vector.shape_cast %450 : vector<16xf32> to vector<16x1xf32>
    %452 = vector.broadcast %451 : vector<16x1xf32> to vector<16x16xf32>
    %453 = arith.subf %449, %452 : vector<16x16xf32>
    %454 = math.exp %453 : vector<16x16xf32>
    %cst_202 = arith.constant dense<0.000000e+00> : vector<16xf32>
    %455 = vector.multi_reduction <add>, %454, %cst_202 [1] : vector<16x16xf32> to vector<16xf32>
    %456 = vector.shape_cast %455 : vector<16xf32> to vector<16x1xf32>
    %457 = vector.broadcast %456 : vector<16x1xf32> to vector<16x16xf32>
    %458 = arith.divf %454, %457 : vector<16x16xf32>
    %459 = vector.extract_strided_slice %426 {offsets = [0, 8], sizes = [16, 8], strides = [1, 1]} : vector<16x32xf32> to vector<16x8xf32>
    %cst_203 = arith.constant dense<0.000000e+00> : vector<16x8xf32>
    %460 = tpu.matmul %458, %459, %cst_203 {dimension_numbers = #tpu.dot_dimension_numbers<[1], [0], [0], [1], [0, 0, 1, 1], [], []>} : vector<16x16xf32>, vector<16x8xf32>, vector<16x8xf32> -> vector<16x8xf32>
    %461 = vector.extract_strided_slice %428 {offsets = [8, 0], sizes = [8, 32], strides = [1, 1]} : vector<32x32xf32> to vector<8x32xf32>
    %cst_204 = arith.constant dense<0.000000e+00> : vector<16x32xf32>
    %462 = tpu.matmul %460, %461, %cst_204 {dimension_numbers = #tpu.dot_dimension_numbers<[1], [0], [0], [1], [0, 0, 1, 1], [], []>} : vector<16x8xf32>, vector<8x32xf32>, vector<16x32xf32> -> vector<16x32xf32>
    %463 = arith.addf %445, %462 : vector<16x32xf32>
    %464 = vector.extract_strided_slice %417 {offsets = [0, 16], sizes = [16, 8], strides = [1, 1]} : vector<16x32xf32> to vector<16x8xf32>
    %465 = vector.extract_strided_slice %425 {offsets = [0, 16], sizes = [16, 8], strides = [1, 1]} : vector<16x32xf32> to vector<16x8xf32>
    %cst_205 = arith.constant dense<0.000000e+00> : vector<16x16xf32>
    %466 = tpu.matmul %464, %465, %cst_205 {dimension_numbers = #tpu.dot_dimension_numbers<[1], [1], [0], [0], [0, 0, 1, 0], [], []>} : vector<16x8xf32>, vector<16x8xf32>, vector<16x16xf32> -> vector<16x16xf32>
    %467 = arith.addf %466, %3 : vector<16x16xf32>
    %cst_206 = arith.constant dense<0xFF800000> : vector<16xf32>
    %468 = vector.multi_reduction <maximumf>, %467, %cst_206 [1] : vector<16x16xf32> to vector<16xf32>
    %469 = vector.shape_cast %468 : vector<16xf32> to vector<16x1xf32>
    %470 = vector.broadcast %469 : vector<16x1xf32> to vector<16x16xf32>
    %471 = arith.subf %467, %470 : vector<16x16xf32>
    %472 = math.exp %471 : vector<16x16xf32>
    %cst_207 = arith.constant dense<0.000000e+00> : vector<16xf32>
    %473 = vector.multi_reduction <add>, %472, %cst_207 [1] : vector<16x16xf32> to vector<16xf32>
    %474 = vector.shape_cast %473 : vector<16xf32> to vector<16x1xf32>
    %475 = vector.broadcast %474 : vector<16x1xf32> to vector<16x16xf32>
    %476 = arith.divf %472, %475 : vector<16x16xf32>
    %477 = vector.extract_strided_slice %426 {offsets = [0, 16], sizes = [16, 8], strides = [1, 1]} : vector<16x32xf32> to vector<16x8xf32>
    %cst_208 = arith.constant dense<0.000000e+00> : vector<16x8xf32>
    %478 = tpu.matmul %476, %477, %cst_208 {dimension_numbers = #tpu.dot_dimension_numbers<[1], [0], [0], [1], [0, 0, 1, 1], [], []>} : vector<16x16xf32>, vector<16x8xf32>, vector<16x8xf32> -> vector<16x8xf32>
    %479 = vector.extract_strided_slice %428 {offsets = [16, 0], sizes = [8, 32], strides = [1, 1]} : vector<32x32xf32> to vector<8x32xf32>
    %cst_209 = arith.constant dense<0.000000e+00> : vector<16x32xf32>
    %480 = tpu.matmul %478, %479, %cst_209 {dimension_numbers = #tpu.dot_dimension_numbers<[1], [0], [0], [1], [0, 0, 1, 1], [], []>} : vector<16x8xf32>, vector<8x32xf32>, vector<16x32xf32> -> vector<16x32xf32>
    %481 = arith.addf %463, %480 : vector<16x32xf32>
    %482 = vector.extract_strided_slice %417 {offsets = [0, 24], sizes = [16, 8], strides = [1, 1]} : vector<16x32xf32> to vector<16x8xf32>
    %483 = vector.extract_strided_slice %425 {offsets = [0, 24], sizes = [16, 8], strides = [1, 1]} : vector<16x32xf32> to vector<16x8xf32>
    %cst_210 = arith.constant dense<0.000000e+00> : vector<16x16xf32>
    %484 = tpu.matmul %482, %483, %cst_210 {dimension_numbers = #tpu.dot_dimension_numbers<[1], [1], [0], [0], [0, 0, 1, 0], [], []>} : vector<16x8xf32>, vector<16x8xf32>, vector<16x16xf32> -> vector<16x16xf32>
    %485 = arith.addf %484, %3 : vector<16x16xf32>
    %cst_211 = arith.constant dense<0xFF800000> : vector<16xf32>
    %486 = vector.multi_reduction <maximumf>, %485, %cst_211 [1] : vector<16x16xf32> to vector<16xf32>
    %487 = vector.shape_cast %486 : vector<16xf32> to vector<16x1xf32>
    %488 = vector.broadcast %487 : vector<16x1xf32> to vector<16x16xf32>
    %489 = arith.subf %485, %488 : vector<16x16xf32>
    %490 = math.exp %489 : vector<16x16xf32>
    %cst_212 = arith.constant dense<0.000000e+00> : vector<16xf32>
    %491 = vector.multi_reduction <add>, %490, %cst_212 [1] : vector<16x16xf32> to vector<16xf32>
    %492 = vector.shape_cast %491 : vector<16xf32> to vector<16x1xf32>
    %493 = vector.broadcast %492 : vector<16x1xf32> to vector<16x16xf32>
    %494 = arith.divf %490, %493 : vector<16x16xf32>
    %495 = vector.extract_strided_slice %426 {offsets = [0, 24], sizes = [16, 8], strides = [1, 1]} : vector<16x32xf32> to vector<16x8xf32>
    %cst_213 = arith.constant dense<0.000000e+00> : vector<16x8xf32>
    %496 = tpu.matmul %494, %495, %cst_213 {dimension_numbers = #tpu.dot_dimension_numbers<[1], [0], [0], [1], [0, 0, 1, 1], [], []>} : vector<16x16xf32>, vector<16x8xf32>, vector<16x8xf32> -> vector<16x8xf32>
    %497 = vector.extract_strided_slice %428 {offsets = [24, 0], sizes = [8, 32], strides = [1, 1]} : vector<32x32xf32> to vector<8x32xf32>
    %cst_214 = arith.constant dense<0.000000e+00> : vector<16x32xf32>
    %498 = tpu.matmul %496, %497, %cst_214 {dimension_numbers = #tpu.dot_dimension_numbers<[1], [0], [0], [1], [0, 0, 1, 1], [], []>} : vector<16x8xf32>, vector<8x32xf32>, vector<16x32xf32> -> vector<16x32xf32>
    %499 = arith.addf %481, %498 : vector<16x32xf32>
    %500 = arith.addf %386, %499 : vector<16x32xf32>
    %c1_215 = arith.constant 1 : index
    %c0_216 = arith.constant 0 : index
    %c0_217 = arith.constant 0 : index
    %501 = vector.load %arg15[%c1_215, %c0_216, %c0_217] : memref<2x1x32xf32, #tpu.memory_space<vmem>>, vector<1x1x32xf32>
    %502 = vector.shape_cast %501 : vector<1x1x32xf32> to vector<1x32xf32>
    %503 = vector.broadcast %502 : vector<1x32xf32> to vector<16x32xf32>
    %504 = arith.addf %500, %503 : vector<16x32xf32>
    %c5 = arith.constant 5 : index
    %c0_218 = arith.constant 0 : index
    %c0_219 = arith.constant 0 : index
    %505 = vector.load %arg4[%c5, %c0_218, %c0_219] : memref<7x1x32xf32, #tpu.memory_space<vmem>>, vector<1x1x32xf32>
    %506 = vector.shape_cast %505 : vector<1x1x32xf32> to vector<1x32xf32>
    %c5_220 = arith.constant 5 : index
    %c0_221 = arith.constant 0 : index
    %c0_222 = arith.constant 0 : index
    %507 = vector.load %arg5[%c5_220, %c0_221, %c0_222] : memref<7x1x32xf32, #tpu.memory_space<vmem>>, vector<1x1x32xf32>
    %508 = vector.shape_cast %507 : vector<1x1x32xf32> to vector<1x32xf32>
    %cst_223 = arith.constant dense<0.000000e+00> : vector<16xf32>
    %509 = vector.multi_reduction <add>, %504, %cst_223 [1] : vector<16x32xf32> to vector<16xf32>
    %510 = vector.shape_cast %509 : vector<16xf32> to vector<16x1xf32>
    %cst_224 = arith.constant 3.200000e+01 : f32
    %511 = vector.broadcast %cst_224 : f32 to vector<16x1xf32>
    %512 = arith.divf %510, %511 : vector<16x1xf32>
    %513 = vector.broadcast %512 : vector<16x1xf32> to vector<16x32xf32>
    %514 = arith.subf %504, %513 : vector<16x32xf32>
    %515 = arith.mulf %514, %514 : vector<16x32xf32>
    %cst_225 = arith.constant dense<0.000000e+00> : vector<16xf32>
    %516 = vector.multi_reduction <add>, %515, %cst_225 [1] : vector<16x32xf32> to vector<16xf32>
    %517 = vector.shape_cast %516 : vector<16xf32> to vector<16x1xf32>
    %cst_226 = arith.constant 0.0322580636 : f32
    %518 = vector.broadcast %cst_226 : f32 to vector<16x1xf32>
    %519 = arith.mulf %517, %518 : vector<16x1xf32>
    %520 = math.sqrt %519 : vector<16x1xf32>
    %cst_227 = arith.constant 9.99999997E-7 : f32
    %521 = vector.broadcast %cst_227 : f32 to vector<16x1xf32>
    %522 = arith.addf %520, %521 : vector<16x1xf32>
    %523 = vector.broadcast %522 : vector<16x1xf32> to vector<16x32xf32>
    %524 = arith.divf %514, %523 : vector<16x32xf32>
    %525 = vector.broadcast %506 : vector<1x32xf32> to vector<16x32xf32>
    %526 = arith.mulf %525, %524 : vector<16x32xf32>
    %527 = vector.broadcast %508 : vector<1x32xf32> to vector<16x32xf32>
    %528 = arith.addf %526, %527 : vector<16x32xf32>
    %c1_228 = arith.constant 1 : index
    %c0_229 = arith.constant 0 : index
    %c0_230 = arith.constant 0 : index
    %529 = vector.load %arg16[%c1_228, %c0_229, %c0_230] : memref<2x32x64xf32, #tpu.memory_space<vmem>>, vector<1x32x64xf32>
    %530 = vector.shape_cast %529 : vector<1x32x64xf32> to vector<32x64xf32>
    %cst_231 = arith.constant dense<0.000000e+00> : vector<16x64xf32>
    %531 = tpu.matmul %528, %530, %cst_231 {dimension_numbers = #tpu.dot_dimension_numbers<[1], [0], [0], [1], [0, 0, 1, 1], [], []>} : vector<16x32xf32>, vector<32x64xf32>, vector<16x64xf32> -> vector<16x64xf32>
    %c1_232 = arith.constant 1 : index
    %c0_233 = arith.constant 0 : index
    %c0_234 = arith.constant 0 : index
    %532 = vector.load %arg17[%c1_232, %c0_233, %c0_234] : memref<2x1x64xf32, #tpu.memory_space<vmem>>, vector<1x1x64xf32>
    %533 = vector.shape_cast %532 : vector<1x1x64xf32> to vector<1x64xf32>
    %534 = vector.broadcast %533 : vector<1x64xf32> to vector<16x64xf32>
    %535 = arith.addf %531, %534 : vector<16x64xf32>
    %cst_235 = arith.constant 0.000000e+00 : f32
    %536 = vector.broadcast %cst_235 : f32 to vector<16x64xf32>
    %537 = arith.maximumf %535, %536 : vector<16x64xf32>
    %c1_236 = arith.constant 1 : index
    %c0_237 = arith.constant 0 : index
    %c0_238 = arith.constant 0 : index
    %538 = vector.load %arg18[%c1_236, %c0_237, %c0_238] : memref<2x64x32xf32, #tpu.memory_space<vmem>>, vector<1x64x32xf32>
    %539 = vector.shape_cast %538 : vector<1x64x32xf32> to vector<64x32xf32>
    %cst_239 = arith.constant dense<0.000000e+00> : vector<16x32xf32>
    %540 = tpu.matmul %537, %539, %cst_239 {dimension_numbers = #tpu.dot_dimension_numbers<[1], [0], [0], [1], [0, 0, 1, 1], [], []>} : vector<16x64xf32>, vector<64x32xf32>, vector<16x32xf32> -> vector<16x32xf32>
    %541 = arith.addf %504, %540 : vector<16x32xf32>
    %c1_240 = arith.constant 1 : index
    %c0_241 = arith.constant 0 : index
    %c0_242 = arith.constant 0 : index
    %542 = vector.load %arg19[%c1_240, %c0_241, %c0_242] : memref<2x1x32xf32, #tpu.memory_space<vmem>>, vector<1x1x32xf32>
    %543 = vector.shape_cast %542 : vector<1x1x32xf32> to vector<1x32xf32>
    %544 = vector.broadcast %543 : vector<1x32xf32> to vector<16x32xf32>
    %545 = arith.addf %541, %544 : vector<16x32xf32>
    %c6 = arith.constant 6 : index
    %c0_243 = arith.constant 0 : index
    %c0_244 = arith.constant 0 : index
    %546 = vector.load %arg4[%c6, %c0_243, %c0_244] : memref<7x1x32xf32, #tpu.memory_space<vmem>>, vector<1x1x32xf32>
    %547 = vector.shape_cast %546 : vector<1x1x32xf32> to vector<1x32xf32>
    %c6_245 = arith.constant 6 : index
    %c0_246 = arith.constant 0 : index
    %c0_247 = arith.constant 0 : index
    %548 = vector.load %arg5[%c6_245, %c0_246, %c0_247] : memref<7x1x32xf32, #tpu.memory_space<vmem>>, vector<1x1x32xf32>
    %549 = vector.shape_cast %548 : vector<1x1x32xf32> to vector<1x32xf32>
    %cst_248 = arith.constant dense<0.000000e+00> : vector<16xf32>
    %550 = vector.multi_reduction <add>, %545, %cst_248 [1] : vector<16x32xf32> to vector<16xf32>
    %551 = vector.shape_cast %550 : vector<16xf32> to vector<16x1xf32>
    %cst_249 = arith.constant 3.200000e+01 : f32
    %552 = vector.broadcast %cst_249 : f32 to vector<16x1xf32>
    %553 = arith.divf %551, %552 : vector<16x1xf32>
    %554 = vector.broadcast %553 : vector<16x1xf32> to vector<16x32xf32>
    %555 = arith.subf %545, %554 : vector<16x32xf32>
    %556 = arith.mulf %555, %555 : vector<16x32xf32>
    %cst_250 = arith.constant dense<0.000000e+00> : vector<16xf32>
    %557 = vector.multi_reduction <add>, %556, %cst_250 [1] : vector<16x32xf32> to vector<16xf32>
    %558 = vector.shape_cast %557 : vector<16xf32> to vector<16x1xf32>
    %cst_251 = arith.constant 0.0322580636 : f32
    %559 = vector.broadcast %cst_251 : f32 to vector<16x1xf32>
    %560 = arith.mulf %558, %559 : vector<16x1xf32>
    %561 = math.sqrt %560 : vector<16x1xf32>
    %cst_252 = arith.constant 9.99999997E-7 : f32
    %562 = vector.broadcast %cst_252 : f32 to vector<16x1xf32>
    %563 = arith.addf %561, %562 : vector<16x1xf32>
    %564 = vector.broadcast %563 : vector<16x1xf32> to vector<16x32xf32>
    %565 = arith.divf %555, %564 : vector<16x32xf32>
    %566 = vector.broadcast %547 : vector<1x32xf32> to vector<16x32xf32>
    %567 = arith.mulf %566, %565 : vector<16x32xf32>
    %568 = vector.broadcast %549 : vector<1x32xf32> to vector<16x32xf32>
    %569 = arith.addf %567, %568 : vector<16x32xf32>
    %c0_253 = arith.constant 0 : index
    %c0_254 = arith.constant 0 : index
    %570 = vector.load %arg20[%c0_253, %c0_254] : memref<16x32xf32, #tpu.memory_space<vmem>>, vector<16x32xf32>
    tpu.vector_store %arg20[%c0_253, %c0_254], %569 {strides = array<i32>} : memref<16x32xf32, #tpu.memory_space<vmem>>, vector<16x32xf32>,
    return
  }
}

</mosaic_0001>

<bundles_post_ra>
// kernel: decoder_forward.1
= control target key start
LH: loop header
LB: loop body
LE: loop exit
PB: predicated region body
PF: predicated region fallthrough
CT: control target
= control target key end

     0   :  { %s5249_s0 = inlined_call_operand.vmem [shape: f32[16,32], index: 0, kind: input, shape index: {}]   ;;  %s5250_s1 = inlined_call_operand.vmem [shape: f32[16,32], index: 1, kind: input, shape index: {}]   ;;  %s5251_s2 = inlined_call_operand.vmem [shape: f32[16,16], index: 2, kind: input, shape index: {}]   ;;  %s5252_s3 = inlined_call_operand.vmem [shape: f32[16,16], index: 3, kind: input, shape index: {}]   ;;  %s5253_s4 = inlined_call_operand.vmem [shape: f32[7,1,32], index: 4, kind: input, shape index: {}]   ;;  %s5254_s5 = inlined_call_operand.vmem [shape: f32[7,1,32], index: 5, kind: input, shape index: {}]   ;;  %s5255_s6 = inlined_call_operand.vmem [shape: f32[2,32,96], index: 6, kind: input, shape index: {}]   ;;  %s5256_s7 = inlined_call_operand.vmem [shape: f32[2,1,96], index: 7, kind: input, shape index: {}]   ;;  %s5257_s8 = inlined_call_operand.vmem [shape: f32[2,32,32], index: 8, kind: input, shape index: {}]   ;;  %s5258_s9 = inlined_call_operand.vmem [shape: f32[2,1,32], index: 9, kind: input, shape index: {}]   ;;  %s5259_s10 = inlined_call_operand.vmem [shape: f32[2,32,32], index: 10, kind: input, shape index: {}]   ;;  %s5260_s11 = inlined_call_operand.vmem [shape: f32[2,1,32], index: 11, kind: input, shape index: {}]   ;;  %s5261_s12 = inlined_call_operand.vmem [shape: f32[2,32,64], index: 12, kind: input, shape index: {}]   ;;  %s5262_s13 = inlined_call_operand.vmem [shape: f32[2,1,64], index: 13, kind: input, shape index: {}]   ;;  %s5263_s14 = inlined_call_operand.vmem [shape: f32[2,32,32], index: 14, kind: input, shape index: {}]   ;;  %s5264_s15 = inlined_call_operand.vmem [shape: f32[2,1,32], index: 15, kind: input, shape index: {}]   ;;  %s5265_s16 = inlined_call_operand.vmem [shape: f32[2,32,64], index: 16, kind: input, shape index: {}]   ;;  %s5266_s17 = inlined_call_operand.vmem [shape: f32[2,1,64], index: 17, kind: input, shape index: {}]   ;;  %s5267_s18 = inlined_call_operand.vmem [shape: f32[2,64,32], index: 18, kind: input, shape index: {}]   ;;  %s5268_s19 = inlined_call_operand.vmem [shape: f32[2,1,32], index: 19, kind: input, shape index: {}]   ;;  %s5269_s20 = inlined_call_operand.hbm [shape: f32[16,32], index: 20, kind: output, shape index: {}]  }
   0x1   :  { %5294 = sst [smem:[#allocation5_spill]] %s5249_s0 }
   0x2   :  { %5295 = sst [smem:[#allocation6_spill]] %s5250_s1 }
   0x3   :  { %5296 = sst [smem:[#allocation7_spill]] %s5251_s2 }
   0x4   :  { %5297 = sst [smem:[#allocation8_spill]] %s5252_s3 }
   0x5   :  { %5298 = sst [smem:[#allocation9_spill]] %s5253_s4 }
   0x6   :  { %5299 = sst [smem:[#allocation10_spill]] %s5264_s15 }
   0x7   :  { %5300 = sst [smem:[#allocation11_spill]] %s5269_s20 }
   0x8   :  { %s5301_s23 = sld [smem:[#allocation5_spill]]  ;;  %vm76_vm0 = vcmask 261120  }
   0xe   :  { %v4268_v0 = vld [vmem:[%s5301_s23 + $0x8] sm:$0xff]  ;;  %v4273_v1 = vld [vmem:[%s5301_s23] sm:$0xff] }
   0xf   :  { %v80_v2 = vsel %vm76_vm0, %v4268_v0, 0.0  ;;  %v77_v3 = vsel %vm76_vm0, %v4273_v1, 0.0 }
  0x10   :  { %81 = vadd.xlane.f32.xlu0 %v80_v2 }
  0x18   :  { %78 = vadd.xlane.f32.xlu0 %v77_v3 }
  0x19   :  { %25 = vsyncpa [#allocation3], 0  ;;  %v4145_v4 = vmov 32.0   ;;  %v173_v21 = vld [vmem:[%s5255_s6 + $0x18] sm:$0xff]  ;;  %v172_v22 = vld [vmem:[%s5255_s6 + $0x10] sm:$0xff]  ;;  %s5302_s1 = sld [smem:[#allocation9_spill]] }
  0x1a   :  { %3927 = vrcp.f32 %v4145_v4  ;;  %3798 = vmatpush.msra.mxu1 %v173_v21  ;;  %196 = vmatpush.msra.mxu0 %v173_v21  ;;  %v171_v24 = vld [vmem:[%s5255_s6 + $0x8] sm:$0xff]  ;;  %v170_v26 = vld [vmem:[%s5255_s6] sm:$0xff]  ;;  %s5291_s25 = smov 96   ;;  %vm217_vm14 = vcmask 64512   ;;  %s5303_s27 = sld [smem:[#allocation7_spill]]  ;;  %vm249_vm15 = vcmask 130048  }
  0x1b   :  { %v3900_v3 = vld [vmem:[%s5254_s5] ss:$0 sm:$0xff]  ;;  %s5278_s29 = smov 64   ;;  %s5283_s30 = smov 88  }
  0x1c   :  { %3799 = vmatpush.msra.mxu1 %v172_v22  ;;  %197 = vmatpush.msra.mxu0 %v172_v22  ;;  %s5289_s0 = smov 120   ;;  %s5281_s21 = smov 80  }
  0x1d   :  { %s5287_s22 = smov 112   ;;  %s5285_s23 = smov 104  }
  0x1e   :  { %3800 = vmatpush.msra.mxu1 %v171_v24  ;;  %198 = vmatpush.msra.mxu0 %v171_v24  ;;  %s5279_s24 = smov 72   ;;  %s5277_s26 = smov 56  }
  0x1f   :  { %v3899_v61 = vld [vmem:[%s5302_s1] ss:$0 sm:$0xff]  ;;  %s5276_s28 = smov 48   ;;  %s5275_s4 = smov 40  }
  0x20   :  { %v3928_v5 = vpop.eup %3927  ;;  %3801 = vmatpush.msra.mxu1 %v170_v26  ;;  %199 = vmatpush.msra.mxu0 %v170_v26  ;;  %s5306_s3 = smov 112   ;;  %s5311_s2 = smov 96  }
  0x21   :  { %v84_v6 = vmul.f32 32.0, %v3928_v5  ;;  %vm88_vm1 = vweird.f32 %v3928_v5 }
  0x23   :  { %v85_v7 = vsub.f32 1.0, %v84_v6 }
  0x25   :  { %v86_v8 = vmul.f32 %v3928_v5, %v85_v7 }
  0x27   :  { %v87_v9 = vadd.f32 %v3928_v5, %v86_v8 }
  0x29   :  { %v4279_v10 = vsel %vm88_vm1, %v3928_v5, %v87_v9 }
  0x83   :  { %v82_v11 = vpop.xlane.xlu0 %81 }
  0x84   :  { %v91_v12 = vmul.f32 %v4279_v10, %v82_v11 }
  0x86   :  { %v4283_v13 = vsub.f32 %v4268_v0, %v91_v12 }
  0x88   :  { %v95_v14 = vmul.f32 %v4283_v13, %v4283_v13 }
  0x8a   :  { %v99_v15 = vsel %vm76_vm0, %v95_v14, 0.0 }
  0x8b   :  { %100 = vadd.xlane.f32.xlu1 %v99_v15  ;;  %v79_v16 = vpop.xlane.xlu0 %78 }
  0x8c   :  { %v90_v17 = vmul.f32 %v4279_v10, %v79_v16 }
  0x8e   :  { %v4290_v18 = vsub.f32 %v4273_v1, %v90_v17 }
  0x90   :  { %v94_v19 = vmul.f32 %v4290_v18, %v4290_v18 }
  0x92   :  { %v96_v20 = vsel %vm76_vm0, %v94_v19, 0.0  ;;  %v3901_v19 = vld [vmem:[%s5256_s7] ss:$0 sm:$0xff] }
  0x93   :  { %97 = vadd.xlane.f32.xlu1 %v96_v20 }
  0xfe   :  { %v101_v23 = vpop.xlane.xlu1 %100 }
  0xff   :  { %v103_v25 = vmul.f32 0.032258064, %v101_v23 }
 0x101   :  { %3929 = vrsqrt.f32 %v103_v25  ;;  %vm123_vm2 = vcmp.eq.f32.partialorder %v103_v25, inf  ;;  %v126_v39 = vand.u32 2147483648, %v103_v25  ;;  %vm125_vm3 = vcmp.eq.f32.partialorder %v103_v25, 0.0 }
 0x106   :  { %v98_v27 = vpop.xlane.xlu1 %97 }
 0x107   :  { %v3930_v28 = vpop.eup %3929  ;;  %v102_v29 = vmul.f32 0.032258064, %v98_v27 }
 0x108   :  { %v117_v30 = vmul.f32 %v3930_v28, %v103_v25 }
 0x109   :  { %3931 = vrsqrt.f32 %v102_v29  ;;  %vm111_vm4 = vcmp.eq.f32.partialorder %v102_v29, inf  ;;  %v114_v47 = vand.u32 2147483648, %v102_v29  ;;  %vm113_vm5 = vcmp.eq.f32.partialorder %v102_v29, 0.0 }
 0x10a   :  { %v118_v31 = vmul.f32 %v3930_v28, %v117_v30 }
 0x10c   :  { %v119_v32 = vmul.f32 0.5, %v118_v31 }
 0x10e   :  { %v120_v33 = vsub.f32 1.5, %v119_v32 }
 0x10f   :  { %v3932_v34 = vpop.eup %3931 }
 0x110   :  { %v121_v35 = vmul.f32 %v3930_v28, %v120_v33  ;;  %v105_v36 = vmul.f32 %v3932_v34, %v102_v29 }
 0x112   :  { %v122_v37 = vmul.f32 %v121_v35, %v103_v25  ;;  %v106_v38 = vmul.f32 %v3932_v34, %v105_v36 }
 0x114   :  { %v124_v40 = vsel %vm123_vm2, %v103_v25, %v122_v37  ;;  %v107_v41 = vmul.f32 0.5, %v106_v38  ;;  %v4329_v25 = vld [vmem:[%s5303_s27] sm:$0xff] }
 0x115   :  { %v127_v42 = vsel %vm125_vm3, %v126_v39, %v124_v40 }
 0x116   :  { %v108_v43 = vsub.f32 1.5, %v107_v41  ;;  %v129_v44 = vadd.f32 1e-06, %v127_v42 }
 0x118   :  { %v109_v45 = vmul.f32 %v3932_v34, %v108_v43  ;;  %3933 = vrcp.f32 %v129_v44  ;;  %v156_v54 = vand.u32 2147483648, %v129_v44  ;;  %v154_v56 = vand.u32 2147483647, %v129_v44 }
 0x119   :  { %vm150_vm7 = vweird.f32 %v129_v44 }
 0x11a   :  { %v110_v46 = vmul.f32 %v109_v45, %v102_v29  ;;  %v157_v59 = vor.u32 1.1754944e-38, %v156_v54  ;;  %vm155_vm9 = vcmp.eq.f32.partialorder %v154_v56, 8.507059e+37 }
 0x11c   :  { %v112_v48 = vsel %vm111_vm4, %v102_v29, %v110_v46  ;;  %v4336_v29 = vld [vmem:[%s5303_s27 + $0x8] sm:$0xff] }
 0x11d   :  { %v115_v49 = vsel %vm113_vm5, %v114_v47, %v112_v48  ;;  %v207_v48 = vld [vmem:[%s5257_s8] sm:$0xff] }
 0x11e   :  { %v3934_v50 = vpop.eup %3933  ;;  %v128_v51 = vadd.f32 1e-06, %v115_v49 }
 0x11f   :  { %v146_v52 = vmul.f32 %v3934_v50, %v129_v44  ;;  %vm151_vm6 = vweird.f32 %v3934_v50 }
 0x120   :  { %3935 = vrcp.f32 %v128_v51  ;;  %vm152_vm8 = vmor %vm150_vm7, %vm151_vm6  ;;  %v141_v5 = vand.u32 2147483648, %v128_v51  ;;  %v139_v8 = vand.u32 2147483647, %v128_v51  ;;  %vm135_vm11 = vweird.f32 %v128_v51 }
 0x121   :  { %v147_v53 = vsub.f32 1.0, %v146_v52 }
 0x122   :  { %v142_v12 = vor.u32 1.1754944e-38, %v141_v5  ;;  %vm140_vm13 = vcmp.eq.f32.partialorder %v139_v8, 8.507059e+37 }
 0x123   :  { %v148_v55 = vmul.f32 %v3934_v50, %v147_v53 }
 0x125   :  { %v149_v57 = vadd.f32 %v3934_v50, %v148_v55 }
 0x126   :  { %v3936_v58 = vpop.eup %3935 }
 0x127   :  { %v153_v60 = vsel %vm152_vm8, %v3934_v50, %v149_v57  ;;  %v131_v62 = vmul.f32 %v3936_v58, %v128_v51  ;;  %vm136_vm10 = vweird.f32 %v3936_v58 }
 0x128   :  { %v158_v63 = vsel %vm155_vm9, %v157_v59, %v153_v60  ;;  %vm137_vm12 = vmor %vm135_vm11, %vm136_vm10 }
 0x129   :  { %v159_v2 = vmul.f32 %v158_v63, %v4283_v13  ;;  %v132_v4 = vsub.f32 1.0, %v131_v62 }
 0x12b   :  { %v164_v6 = vmul.f32 %v3899_v61, %v159_v2  ;;  %v133_v7 = vmul.f32 %v3936_v58, %v132_v4 }
 0x12d   :  { %v169_v9 = vadd.f32 %v3900_v3, %v164_v6  ;;  %v134_v11 = vadd.f32 %v3936_v58, %v133_v7 }
 0x12f   :  { %3600 = vmatmul.msk.f32.vlgmr.msra.gmra.mxu1 %vm76_vm0, %v169_v9  ;;  %v138_v14 = vsel %vm137_vm12, %v3936_v58, %v134_v11 }
 0x130   :  { %v143_v13 = vsel %vm140_vm13, %v142_v12, %v138_v14 }
 0x131   :  { %v144_v15 = vmul.f32 %v143_v13, %v4290_v18 }
 0x133   :  { %v163_v16 = vmul.f32 %v3899_v61, %v144_v15 }
 0x135   :  { %v168_v17 = vadd.f32 %v3900_v3, %v163_v16 }
 0x137   :  { %3599 = vmatmul.msk.f32.vlgmr.msra.gmra.mxu0 %vm76_vm0, %v168_v17 }
 0x1ac   :  { %v204_v20 = vpop.f32.mrf.mxu1 }
 0x1ad   :  { %v205_v21 = vadd.f32 %v3901_v19, %v204_v20 }
 0x1af   :  { %215 = vrot.lane.b32.xlu2 %v205_v21, %s5291_s25 }
 0x1b4   :  { %v201_v22 = vpop.f32.mrf.mxu0 }
 0x1b5   :  { %v202_v23 = vadd.f32 %v3901_v19, %v201_v22 }
 0x1b7   :  { %213 = vrot.lane.b32.xlu2 %v202_v23, %s5291_s25  ;;  %v4340_v33 = vpack.i.bf16 %v202_v23, %v205_v21 }
 0x209   :  { %v216_v24 = vpop.permute.xlu2 %215 }
 0x20a   :  { %3601 = vmatpush.xpose.msk.msrb.mxu1 %vm217_vm14, %v216_v24 }
 0x211   :  { %v214_v18 = vpop.permute.xlu2 %213 }
 0x212   :  { %3602 = vmatpush.xpose.msk.msrb.mxu1 %vm217_vm14, %v214_v18 }
 0x215   :  { %3603 = vmatmul.msk.f32.vlgmr.msrb.gmra.mxu1 %vm217_vm14, %v202_v23 }
 0x216   :  { %505 = vmatpush.msra.mxu1 %v207_v48 }
 0x21d   :  { %3604 = vmatmul.msk.f32.gmra.mxu1 %vm217_vm14, %v205_v21 }
 0x292   :  { %v243_v26 = vpop.f32.mrf.mxu1 }
 0x293   :  { %v244_v27 = vadd.f32 %v243_v26, %v4329_v25 }
 0x295   :  { %v250_v28 = vsel %vm249_vm15, %v244_v27, -inf }
 0x296   :  { %251 = vmax.xlane.f32.xlu0 %v250_v28 }
 0x29a   :  { %v246_v30 = vpop.f32.mrf.mxu1 }
 0x29b   :  { %v247_v31 = vadd.f32 %v246_v30, %v4336_v29 }
 0x29d   :  { %v253_v32 = vsel %vm249_vm15, %v247_v31, -inf }
 0x29e   :  { %254 = vmax.xlane.f32.xlu1 %v253_v32 }
 0x2b7   :  { %3820 = vrot.lane.b32.xlu1 %v4340_v33, %s5278_s29  ;;  %s5307_s29 = smov 104  }
 0x2bf   :  { %337 = vrot.lane.b32.xlu1 %v202_v23, %s5283_s30 }
 0x2c7   :  { %335 = vrot.lane.b32.xlu1 %v205_v21, %s5289_s0 }
 0x2cf   :  { %517 = vrot.lane.b32.xlu1 %v202_v23, %s5281_s21 }
 0x2d7   :  { %513 = vrot.lane.b32.xlu1 %v202_v23, %s5287_s22 }
 0x2df   :  { %515 = vrot.lane.b32.xlu1 %v205_v21, %s5287_s22  ;;  %s5305_s22 = sld [smem:[#allocation8_spill]] }
 0x309   :  { %v252_v34 = vpop.xlane.xlu0 %251 }
 0x30a   :  { %v256_v35 = vsub.f32 %v244_v27, %v252_v34 }
 0x30c   :  { %v258_v36 = vmul.f32 1.442695, %v256_v35 }
 0x30e   :  { %3937 = vpow2.f32 %v258_v36 }
 0x311   :  { %v255_v37 = vpop.xlane.xlu1 %254 }
 0x312   :  { %v257_v38 = vsub.f32 %v247_v31, %v255_v37 }
 0x314   :  { %v3938_v39 = vpop.eup %3937  ;;  %v260_v40 = vmul.f32 1.442695, %v257_v38 }
 0x315   :  { %v262_v41 = vsel %vm249_vm15, %v3938_v39, 0.0 }
 0x316   :  { %3939 = vpow2.f32 %v260_v40  ;;  %263 = vadd.xlane.f32.xlu2 %v262_v41 }
 0x31c   :  { %v3940_v42 = vpop.eup %3939 }
 0x31d   :  { %v265_v43 = vsel %vm249_vm15, %v3940_v42, 0.0 }
 0x31e   :  { %266 = vadd.xlane.f32.xlu0 %v265_v43 }
 0x329   :  { %v3821_v44 = vpop.permute.xlu1 %3820 }
 0x32a   :  { %v3822_v45 = vunpack.i.l.bf16 %v3821_v44  ;;  %v3823_v46 = vunpack.i.h.bf16 %v3821_v44 }
 0x32c   :  { %324 = vmatpush.msra.mxu2 %v3822_v45  ;;  %3802 = vmatpush.msra.mxu3 %v3822_v45 }
 0x32e   :  { %325 = vmatpush.msra.mxu2 %v3823_v46  ;;  %3803 = vmatpush.msra.mxu3 %v3823_v46 }
 0x32f   :  { %519 = vrot.lane.b32.xlu2 %v205_v21, %s5281_s21  ;;  %s5308_s21 = smov 88  }
 0x331   :  { %v338_v61 = vpop.permute.xlu1 %337 }
 0x332   :  { %339 = vrot.lane.b32.xlu0 %v205_v21, %s5283_s30  ;;  %s5313_s30 = smov 120  }
 0x337   :  { %668 = vrot.lane.b32.xlu2 %v205_v21, %s5285_s23 }
 0x339   :  { %v336_v12 = vpop.permute.xlu1 %335 }
 0x33a   :  { %333 = vrot.lane.b32.xlu0 %v202_v23, %s5289_s0 }
 0x341   :  { %v518_v16 = vpop.permute.xlu1 %517 }
 0x342   :  { %672 = vrot.lane.b32.xlu0 %v205_v21, %s5279_s24 }
 0x349   :  { %v514_v19 = vpop.permute.xlu1 %513 }
 0x34a   :  { %670 = vrot.lane.b32.xlu0 %v202_v23, %s5279_s24  ;;  %s5310_s24 = smov 72  }
 0x351   :  { %v516_v21 = vpop.permute.xlu1 %515 }
 0x352   :  { %666 = vrot.lane.b32.xlu0 %v202_v23, %s5285_s23  ;;  %s5309_s23 = smov 80  }
 0x389   :  { %v264_v47 = vpop.xlane.xlu2 %263 }
 0x38a   :  { %3941 = vrcp.f32 %v264_v47  ;;  %v279_v53 = vand.u32 2147483648, %v264_v47  ;;  %v277_v55 = vand.u32 2147483647, %v264_v47  ;;  %vm273_vm2 = vweird.f32 %v264_v47 }
 0x38c   :  { %v280_v58 = vor.u32 1.1754944e-38, %v279_v53  ;;  %vm278_vm4 = vcmp.eq.f32.partialorder %v277_v55, 8.507059e+37 }
 0x390   :  { %v3942_v49 = vpop.eup %3941 }
 0x391   :  { %v269_v50 = vmul.f32 %v3942_v49, %v264_v47  ;;  %v267_v51 = vpop.xlane.xlu0 %266  ;;  %vm274_vm1 = vweird.f32 %v3942_v49  ;;  %v520_v13 = vpop.permute.xlu2 %519 }
 0x392   :  { %3943 = vrcp.f32 %v267_v51  ;;  %vm275_vm3 = vmor %vm273_vm2, %vm274_vm1  ;;  %v294_v3 = vand.u32 2147483648, %v267_v51  ;;  %v292_v5 = vand.u32 2147483647, %v267_v51  ;;  %vm288_vm6 = vweird.f32 %v267_v51 }
 0x393   :  { %v270_v52 = vsub.f32 1.0, %v269_v50 }
 0x394   :  { %v295_v7 = vor.u32 1.1754944e-38, %v294_v3  ;;  %vm293_vm8 = vcmp.eq.f32.partialorder %v292_v5, 8.507059e+37 }
 0x395   :  { %v271_v54 = vmul.f32 %v3942_v49, %v270_v52 }
 0x397   :  { %v272_v56 = vadd.f32 %v3942_v49, %v271_v54 }
 0x398   :  { %v3944_v57 = vpop.eup %3943 }
 0x399   :  { %v284_v59 = vmul.f32 %v3944_v57, %v267_v51  ;;  %v276_v60 = vsel %vm275_vm3, %v3942_v49, %v272_v56  ;;  %vm289_vm5 = vweird.f32 %v3944_v57  ;;  %v669_v28 = vpop.permute.xlu2 %668 }
 0x39a   :  { %v281_v62 = vsel %vm278_vm4, %v280_v58, %v276_v60  ;;  %vm290_vm7 = vmor %vm288_vm6, %vm289_vm5 }
 0x39b   :  { %v285_v63 = vsub.f32 1.0, %v284_v59  ;;  %v282_v2 = vmul.f32 %v3938_v39, %v281_v62 }
 0x39d   :  { %3605 = vmatmul.msk.f32.vlgmr.msra.gmra.mxu2 %vm249_vm15, %v282_v2  ;;  %v286_v4 = vmul.f32 %v3944_v57, %v285_v63 }
 0x39f   :  { %v287_v6 = vadd.f32 %v3944_v57, %v286_v4 }
 0x3a1   :  { %v291_v8 = vsel %vm290_vm7, %v3944_v57, %v287_v6 }
 0x3a2   :  { %v296_v9 = vsel %vm293_vm8, %v295_v7, %v291_v8 }
 0x3a3   :  { %v297_v11 = vmul.f32 %v3940_v42, %v296_v9 }
 0x3a4   :  { %v340_v14 = vpop.permute.xlu0 %339 }
 0x3a5   :  { %3606 = vmatmul.msk.f32.vlgmr.msra.gmra.mxu3 %vm249_vm15, %v297_v11 }
 0x3a6   :  { %3607 = vmatpush.xpose.msk.msrb.mxu3 %vm217_vm14, %v340_v14 }
 0x3aa   :  { %3608 = vmatpush.xpose.msk.msrb.mxu3 %vm217_vm14, %v338_v61 }
 0x3ac   :  { %v334_v15 = vpop.permute.xlu0 %333 }
 0x3ad   :  { %3609 = vmatmul.msk.f32.vlgmr.msrb.gmra.mxu3 %vm217_vm14, %v334_v15 }
 0x3ae   :  { %3617 = vmatpush.xpose.msk.msra.mxu3 %vm217_vm14, %v520_v13 }
 0x3b2   :  { %3618 = vmatpush.xpose.msk.msra.mxu3 %vm217_vm14, %v518_v16 }
 0x3b4   :  { %v673_v17 = vpop.permute.xlu0 %672 }
 0x3b5   :  { %3610 = vmatmul.msk.f32.gmra.mxu3 %vm217_vm14, %v336_v12  ;;  %3625 = vmatpush.xpose.msk.msrb.mxu1 %vm217_vm14, %v673_v17 }
 0x3bc   :  { %v671_v20 = vpop.permute.xlu0 %670 }
 0x3bd   :  { %3619 = vmatmul.msk.f32.vlgmr.msra.gmra.mxu3 %vm217_vm14, %v514_v19  ;;  %3626 = vmatpush.xpose.msk.msrb.mxu1 %vm217_vm14, %v671_v20 }
 0x3c4   :  { %v667_v24 = vpop.permute.xlu0 %666 }
 0x3c5   :  { %3620 = vmatmul.msk.f32.gmra.mxu3 %vm217_vm14, %v516_v21 }
 0x420   :  { %v327_v22 = vpop.f32.mrf.mxu2 }
 0x421   :  { %3615 = vmatmul.msk.f32.vlgmr.msra.gmra.mxu1 %vm217_vm14, %v327_v22 }
 0x428   :  { %v330_v23 = vpop.f32.mrf.mxu3 }
 0x429   :  { %3616 = vmatmul.msk.f32.gmra.mxu1 %vm217_vm14, %v330_v23 }
 0x430   :  { %v366_v18 = vpop.f32.mrf.mxu3 }
 0x431   :  { %v367_v26 = vadd.f32 %v366_v18, %v4329_v25  ;;  %3627 = vmatmul.msk.f32.vlgmr.msrb.gmra.mxu1 %vm217_vm14, %v667_v24 }
 0x433   :  { %v372_v27 = vsel %vm249_vm15, %v367_v26, -inf }
 0x434   :  { %373 = vmax.xlane.f32.xlu0 %v372_v27 }
 0x438   :  { %v369_v30 = vpop.f32.mrf.mxu3 }
 0x439   :  { %v370_v31 = vadd.f32 %v369_v30, %v4336_v29  ;;  %3628 = vmatmul.msk.f32.gmra.mxu1 %vm217_vm14, %v669_v28 }
 0x43b   :  { %v375_v32 = vsel %vm249_vm15, %v370_v31, -inf }
 0x43c   :  { %376 = vmax.xlane.f32.xlu1 %v375_v32 }
 0x440   :  { %v546_v34 = vpop.f32.mrf.mxu3 }
 0x441   :  { %v547_v35 = vadd.f32 %v546_v34, %v4329_v25 }
 0x443   :  { %v552_v36 = vsel %vm249_vm15, %v547_v35, -inf }
 0x444   :  { %553 = vmax.xlane.f32.xlu0 %v552_v36 }
 0x448   :  { %v549_v37 = vpop.f32.mrf.mxu3 }
 0x449   :  { %v550_v38 = vadd.f32 %v549_v37, %v4336_v29 }
 0x44b   :  { %v555_v39 = vsel %vm249_vm15, %v550_v38, -inf }
 0x44c   :  { %556 = vmax.xlane.f32.xlu1 %v555_v39 }
 0x49e   :  { %v4385_v40 = vpop.f32.mrf.mxu1 }
 0x4a6   :  { %v4387_v41 = vpop.f32.mrf.mxu1 }
 0x4a7   :  { %v374_v42 = vpop.xlane.xlu0 %373 }
 0x4a8   :  { %v378_v43 = vsub.f32 %v367_v26, %v374_v42 }
 0x4aa   :  { %v380_v44 = vmul.f32 1.442695, %v378_v43 }
 0x4ac   :  { %3945 = vpow2.f32 %v380_v44 }
 0x4ae   :  { %v699_v45 = vpop.f32.mrf.mxu1 }
 0x4af   :  { %v700_v46 = vadd.f32 %v699_v45, %v4329_v25  ;;  %v377_v47 = vpop.xlane.xlu1 %376 }
 0x4b0   :  { %v379_v48 = vsub.f32 %v370_v31, %v377_v47 }
 0x4b1   :  { %v705_v49 = vsel %vm249_vm15, %v700_v46, -inf }
 0x4b2   :  { %v4391_v50 = vpop.eup %3945  ;;  %706 = vmax.xlane.f32.xlu2 %v705_v49  ;;  %v382_v52 = vmul.f32 1.442695, %v379_v48 }
 0x4b3   :  { %v384_v51 = vsel %vm249_vm15, %v4391_v50, 0.0 }
 0x4b4   :  { %385 = vadd.xlane.f32.xlu0 %v384_v51  ;;  %3947 = vpow2.f32 %v382_v52 }
 0x4b6   :  { %v702_v53 = vpop.f32.mrf.mxu1 }
 0x4b7   :  { %v703_v54 = vadd.f32 %v702_v53, %v4336_v29  ;;  %v554_v55 = vpop.xlane.xlu0 %553 }
 0x4b8   :  { %v558_v56 = vsub.f32 %v547_v35, %v554_v55 }
 0x4b9   :  { %v708_v25 = vsel %vm249_vm15, %v703_v54, -inf }
 0x4ba   :  { %v560_v57 = vmul.f32 1.442695, %v558_v56  ;;  %709 = vmax.xlane.f32.xlu2 %v708_v25  ;;  %v4397_v58 = vpop.eup %3947 }
 0x4bb   :  { %v387_v61 = vsel %vm249_vm15, %v4397_v58, 0.0 }
 0x4bc   :  { %3949 = vpow2.f32 %v560_v57 }
 0x4bf   :  { %v557_v59 = vpop.xlane.xlu1 %556 }
 0x4c0   :  { %v559_v60 = vsub.f32 %v550_v38, %v557_v59 }
 0x4c2   :  { %v4401_v62 = vpop.eup %3949  ;;  %v562_v63 = vmul.f32 1.442695, %v559_v60  ;;  %388 = vadd.xlane.f32.xlu2 %v387_v61 }
 0x4c3   :  { %v564_v29 = vsel %vm249_vm15, %v4401_v62, 0.0 }
 0x4c4   :  { %3951 = vpow2.f32 %v562_v63  ;;  %565 = vadd.xlane.f32.xlu0 %v564_v29 }
 0x4ca   :  { %v4405_v2 = vpop.eup %3951 }
 0x4cb   :  { %v567_v3 = vsel %vm249_vm15, %v4405_v2, 0.0 }
 0x4cc   :  { %568 = vadd.xlane.f32.xlu0 %v567_v3 }
 0x4da   :  { %3825 = vrot.lane.b32.xlu2 %v4340_v33, %s5277_s26  ;;  %s5312_s26 = smov 64  }
 0x4e0   :  { %3835 = vrot.lane.b32.xlu0 %v4340_v33, %s5276_s28  ;;  %s5304_s28 = sld [smem:[#allocation6_spill]] }
 0x525   :  { %v707_v4 = vpop.xlane.xlu2 %706 }
 0x526   :  { %v711_v5 = vsub.f32 %v700_v46, %v707_v4 }
 0x527   :  { %v386_v6 = vpop.xlane.xlu0 %385 }
 0x528   :  { %v713_v7 = vmul.f32 1.442695, %v711_v5  ;;  %3953 = vrcp.f32 %v386_v6  ;;  %v401_v23 = vand.u32 2147483648, %v386_v6  ;;  %vm395_vm10 = vweird.f32 %v386_v6 }
 0x529   :  { %v399_v24 = vand.u32 2147483647, %v386_v6 }
 0x52a   :  { %3955 = vpow2.f32 %v713_v7  ;;  %v402_v28 = vor.u32 1.1754944e-38, %v401_v23 }
 0x52b   :  { %vm400_vm12 = vcmp.eq.f32.partialorder %v399_v24, 8.507059e+37 }
 0x52d   :  { %v710_v8 = vpop.xlane.xlu2 %709 }
 0x52e   :  { %v3954_v9 = vpop.eup %3953  ;;  %v712_v11 = vsub.f32 %v703_v54, %v710_v8 }
 0x52f   :  { %v391_v12 = vmul.f32 %v3954_v9, %v386_v6  ;;  %vm396_vm9 = vweird.f32 %v3954_v9 }
 0x530   :  { %v4413_v14 = vpop.eup %3955  ;;  %v715_v13 = vmul.f32 1.442695, %v712_v11  ;;  %vm397_vm11 = vmor %vm395_vm10, %vm396_vm9 }
 0x531   :  { %v392_v15 = vsub.f32 1.0, %v391_v12  ;;  %v717_v16 = vsel %vm249_vm15, %v4413_v14, 0.0 }
 0x532   :  { %3957 = vpow2.f32 %v715_v13  ;;  %718 = vadd.xlane.f32.xlu1 %v717_v16  ;;  %v208_v13 = vld [vmem:[%s5257_s8 + $0x8] sm:$0xff] }
 0x533   :  { %v393_v17 = vmul.f32 %v3954_v9, %v392_v15  ;;  %476 = vmatpush.msrb.mxu0 %v208_v13 }
 0x535   :  { %v389_v19 = vpop.xlane.xlu2 %388  ;;  %v394_v20 = vadd.f32 %v3954_v9, %v393_v17 }
 0x536   :  { %3959 = vrcp.f32 %v389_v19  ;;  %v416_v38 = vand.u32 2147483648, %v389_v19  ;;  %v414_v45 = vand.u32 2147483647, %v389_v19  ;;  %vm410_vm1 = vweird.f32 %v389_v19 }
 0x537   :  { %v566_v21 = vpop.xlane.xlu0 %565  ;;  %v398_v26 = vsel %vm397_vm11, %v3954_v9, %v394_v20 }
 0x538   :  { %v4417_v22 = vpop.eup %3957  ;;  %3961 = vrcp.f32 %v566_v21  ;;  %v403_v35 = vsel %vm400_vm12, %v402_v28, %v398_v26  ;;  %v417_v47 = vor.u32 1.1754944e-38, %v416_v38  ;;  %vm415_vm3 = vcmp.eq.f32.partialorder %v414_v45, 8.507059e+37 }
 0x539   :  { %v720_v18 = vsel %vm249_vm15, %v4417_v22, 0.0  ;;  %v404_v44 = vmul.f32 %v4391_v50, %v403_v35  ;;  %v581_v25 = vand.u32 2147483648, %v566_v21  ;;  %vm575_vm5 = vweird.f32 %v566_v21 }
 0x53a   :  { %721 = vadd.xlane.f32.xlu1 %v720_v18  ;;  %v579_v57 = vand.u32 2147483647, %v566_v21 }
 0x53b   :  { %v582_v61 = vor.u32 1.1754944e-38, %v581_v25 }
 0x53c   :  { %v3960_v27 = vpop.eup %3959  ;;  %vm580_vm7 = vcmp.eq.f32.partialorder %v579_v57, 8.507059e+37  ;;  %v3902_v57 = vld [vmem:[%s5258_s9] ss:$0 sm:$0xff] }
 0x53d   :  { %v406_v30 = vmul.f32 %v3960_v27, %v389_v19  ;;  %v3826_v31 = vpop.permute.xlu2 %3825  ;;  %vm411_vm13 = vweird.f32 %v3960_v27 }
 0x53e   :  { %v3962_v32 = vpop.eup %3961  ;;  %v3827_v34 = vunpack.i.l.bf16 %v3826_v31  ;;  %v3828_v42 = vunpack.i.h.bf16 %v3826_v31  ;;  %vm412_vm2 = vmor %vm410_vm1, %vm411_vm13 }
 0x53f   :  { %v407_v36 = vsub.f32 1.0, %v406_v30  ;;  %v569_v37 = vpop.xlane.xlu0 %568  ;;  %v571_v39 = vmul.f32 %v3962_v32, %v566_v21  ;;  %vm576_vm4 = vweird.f32 %v3962_v32 }
 0x540   :  { %3963 = vrcp.f32 %v569_v37  ;;  %446 = vmatpush.msrb.mxu2 %v3827_v34  ;;  %vm577_vm6 = vmor %vm575_vm5, %vm576_vm4  ;;  %v596_v4 = vand.u32 2147483648, %v569_v37  ;;  %vm590_vm9 = vweird.f32 %v569_v37  ;;  %v594_v7 = vand.u32 2147483647, %v569_v37 }
 0x541   :  { %v408_v43 = vmul.f32 %v3960_v27, %v407_v36  ;;  %v572_v48 = vsub.f32 1.0, %v571_v39 }
 0x542   :  { %447 = vmatpush.msrb.mxu2 %v3828_v42  ;;  %v597_v9 = vor.u32 1.1754944e-38, %v596_v4  ;;  %vm595_vm11 = vcmp.eq.f32.partialorder %v594_v7, 8.507059e+37 }
 0x543   :  { %3611 = vmatmul.msk.f32.vlgmr.msrb.gmra.mxu2 %vm249_vm15, %v404_v44  ;;  %v409_v46 = vadd.f32 %v3960_v27, %v408_v43  ;;  %v573_v53 = vmul.f32 %v3962_v32, %v572_v48 }
 0x545   :  { %v413_v49 = vsel %vm412_vm2, %v3960_v27, %v409_v46  ;;  %v574_v50 = vadd.f32 %v3962_v32, %v573_v53 }
 0x546   :  { %v3964_v51 = vpop.eup %3963  ;;  %v418_v52 = vsel %vm415_vm3, %v417_v47, %v413_v49  ;;  %v210_v49 = vld [vmem:[%s5257_s8 + $0x18] sm:$0xff] }
 0x547   :  { %v586_v54 = vmul.f32 %v3964_v51, %v569_v37  ;;  %v419_v55 = vmul.f32 %v4397_v58, %v418_v52  ;;  %v578_v59 = vsel %vm577_vm6, %v3962_v32, %v574_v50  ;;  %vm591_vm8 = vweird.f32 %v3964_v51 }
 0x548   :  { %v583_v29 = vsel %vm580_vm7, %v582_v61, %v578_v59  ;;  %vm592_vm10 = vmor %vm590_vm9, %vm591_vm8 }
 0x549   :  { %v587_v56 = vsub.f32 1.0, %v586_v54  ;;  %v584_v6 = vmul.f32 %v4401_v62, %v583_v29 }
 0x54b   :  { %3612 = vmatmul.msk.f32.gmra.mxu2 %vm249_vm15, %v419_v55  ;;  %v588_v60 = vmul.f32 %v3964_v51, %v587_v56 }
 0x54d   :  { %v589_v58 = vadd.f32 %v3964_v51, %v588_v60 }
 0x54f   :  { %v593_v8 = vsel %vm592_vm10, %v3964_v51, %v589_v58 }
 0x550   :  { %v598_v11 = vsel %vm595_vm11, %v597_v9, %v593_v8 }
 0x551   :  { %v599_v12 = vmul.f32 %v4405_v2, %v598_v11  ;;  %v209_v2 = vld [vmem:[%s5257_s8 + $0x10] sm:$0xff] }
 0x552   :  { %v3836_v63 = vpop.permute.xlu0 %3835  ;;  %656 = vmatpush.msra.mxu0 %v209_v2  ;;  %v919_v2 = vld [vmem:[%s5259_s10 + $0x10] sm:$0xff] }
 0x553   :  { %v3837_v3 = vunpack.i.l.bf16 %v3836_v63  ;;  %3830 = vrot.lane.b32.xlu1 %v4340_v33, %s5275_s4  ;;  %v3838_v5 = vunpack.i.h.bf16 %v3836_v63  ;;  %s5315_s4 = smov 48  }
 0x555   :  { %626 = vmatpush.msra.mxu2 %v3837_v3 }
 0x557   :  { %627 = vmatpush.msra.mxu2 %v3838_v5 }
 0x558   :  { %3621 = vmatmul.msk.f32.vlgmr.msra.gmra.mxu2 %vm249_vm15, %v584_v6 }
 0x559   :  { %809 = vmatpush.msrb.mxu2 %v210_v49 }
 0x560   :  { %3622 = vmatmul.msk.f32.gmra.mxu2 %vm249_vm15, %v599_v12 }
 0x5a5   :  { %v719_v33 = vpop.xlane.xlu1 %718 }
 0x5a6   :  { %3965 = vrcp.f32 %v719_v33  ;;  %v734_v18 = vand.u32 2147483648, %v719_v33  ;;  %vm728_vm13 = vweird.f32 %v719_v33  ;;  %v732_v26 = vand.u32 2147483647, %v719_v33 }
 0x5a8   :  { %v735_v30 = vor.u32 1.1754944e-38, %v734_v18  ;;  %vm733_vm2 = vcmp.eq.f32.partialorder %v732_v26, 8.507059e+37  ;;  %v917_v26 = vld [vmem:[%s5259_s10] sm:$0xff] }
 0x5ac   :  { %v3966_v15 = vpop.eup %3965 }
 0x5ad   :  { %v722_v62 = vpop.xlane.xlu1 %721  ;;  %v724_v16 = vmul.f32 %v3966_v15, %v719_v33  ;;  %vm729_vm12 = vweird.f32 %v3966_v15 }
 0x5ae   :  { %3967 = vrcp.f32 %v722_v62  ;;  %vm730_vm1 = vmor %vm728_vm13, %vm729_vm12  ;;  %v749_v37 = vand.u32 2147483648, %v722_v62  ;;  %vm743_vm4 = vweird.f32 %v722_v62  ;;  %v747_v42 = vand.u32 2147483647, %v722_v62 }
 0x5af   :  { %v725_v17 = vsub.f32 1.0, %v724_v16  ;;  %v955_v16 = vld [vmem:[%s5261_s12 + $0x8] sm:$0xff] }
 0x5b0   :  { %v750_v44 = vor.u32 1.1754944e-38, %v749_v37  ;;  %vm748_vm6 = vcmp.eq.f32.partialorder %v747_v42, 8.507059e+37 }
 0x5b1   :  { %v726_v20 = vmul.f32 %v3966_v15, %v725_v17  ;;  %v954_v17 = vld [vmem:[%s5261_s12] sm:$0xff] }
 0x5b3   :  { %v727_v23 = vadd.f32 %v3966_v15, %v726_v20  ;;  %v69_v20 = vld [vmem:[%s5304_s28 + $0x8] sm:$0xff] }
 0x5b4   :  { %v3968_v19 = vpop.eup %3967 }
 0x5b5   :  { %v739_v21 = vmul.f32 %v3968_v19, %v722_v62  ;;  %v731_v27 = vsel %vm730_vm1, %v3966_v15, %v727_v23  ;;  %vm744_vm3 = vweird.f32 %v3968_v19  ;;  %v957_v62 = vld [vmem:[%s5261_s12 + $0x18] sm:$0xff]  ;;  %v956_v15 = vld [vmem:[%s5261_s12 + $0x10] sm:$0xff] }
 0x5b6   :  { %v736_v32 = vsel %vm733_vm2, %v735_v30, %v731_v27  ;;  %vm745_vm5 = vmor %vm743_vm4, %vm744_vm3  ;;  %980 = vmatpush.msra.mxu1 %v957_v62 }
 0x5b7   :  { %v740_v24 = vsub.f32 1.0, %v739_v21  ;;  %v737_v39 = vmul.f32 %v4413_v14, %v736_v32  ;;  %v920_v21 = vld [vmem:[%s5259_s10 + $0x18] sm:$0xff] }
 0x5b8   :  { %981 = vmatpush.msra.mxu1 %v956_v15 }
 0x5b9   :  { %v741_v28 = vmul.f32 %v3968_v19, %v740_v24  ;;  %v918_v24 = vld [vmem:[%s5259_s10 + $0x8] sm:$0xff] }
 0x5ba   :  { %982 = vmatpush.msra.mxu1 %v955_v16 }
 0x5bb   :  { %v742_v36 = vadd.f32 %v3968_v19, %v741_v28 }
 0x5bc   :  { %983 = vmatpush.msra.mxu1 %v954_v17 }
 0x5bd   :  { %v746_v43 = vsel %vm745_vm5, %v3968_v19, %v742_v36  ;;  %v68_v19 = vld [vmem:[%s5304_s28] sm:$0xff] }
 0x5be   :  { %v751_v46 = vsel %vm748_vm6, %v750_v44, %v746_v43  ;;  %3637 = vmatmul.msk.f32.vlgmr.msra.gmra.mxu1 %vm76_vm0, %v68_v19 }
 0x5bf   :  { %v752_v47 = vmul.f32 %v4417_v22, %v751_v46 }
 0x5c5   :  { %v3831_v31 = vpop.permute.xlu1 %3830 }
 0x5c6   :  { %v3832_v34 = vunpack.i.l.bf16 %v3831_v31  ;;  %v449_v35 = vpop.f32.mrf.mxu2  ;;  %v3833_v38 = vunpack.i.h.bf16 %v3831_v31  ;;  %3638 = vmatmul.msk.f32.gmra.mxu1 %vm76_vm0, %v69_v20  ;;  %v3905_v20 = vld [vmem:[%s5262_s13] ss:$0 sm:$0xff] }
 0x5c7   :  { %3613 = vmatmul.msk.f32.vlgmr.msrb.gmra.mxu0 %vm217_vm14, %v449_v35 }
 0x5c8   :  { %779 = vmatpush.msrb.mxu3 %v3832_v34  ;;  %943 = vmatpush.msrb.mxu0 %v920_v21 }
 0x5ca   :  { %780 = vmatpush.msrb.mxu3 %v3833_v38  ;;  %944 = vmatpush.msrb.mxu0 %v919_v2 }
 0x5cb   :  { %3629 = vmatmul.msk.f32.vlgmr.msrb.gmra.mxu3 %vm249_vm15, %v737_v39 }
 0x5cc   :  { %945 = vmatpush.msrb.mxu0 %v918_v24 }
 0x5ce   :  { %v452_v45 = vpop.f32.mrf.mxu2  ;;  %946 = vmatpush.msrb.mxu0 %v917_v26 }
 0x5cf   :  { %3614 = vmatmul.msk.f32.gmra.mxu0 %vm217_vm14, %v452_v45 }
 0x5d3   :  { %3630 = vmatmul.msk.f32.gmra.mxu3 %vm249_vm15, %v752_v47 }
 0x5db   :  { %v629_v48 = vpop.f32.mrf.mxu2 }
 0x5dc   :  { %3623 = vmatmul.msk.f32.vlgmr.msra.gmra.mxu0 %vm217_vm14, %v629_v48 }
 0x5e3   :  { %v632_v14 = vpop.f32.mrf.mxu2 }
 0x5e4   :  { %3624 = vmatmul.msk.f32.gmra.mxu0 %vm217_vm14, %v632_v14 }
 0x63b   :  { %v985_v19 = vpop.f32.mrf.mxu1 }
 0x643   :  { %v988_v21 = vpop.f32.mrf.mxu1 }
 0x644   :  { %v478_v22 = vpop.f32.mrf.mxu0  ;;  %v989_v2 = vadd.f32 %v3905_v20, %v988_v21 }
 0x645   :  { %v508_v55 = vadd.f32 %v4385_v40, %v478_v22 }
 0x646   :  { %3639 = vmatpush.xpose.msk.msra.mxu3 %vm217_vm14, %v989_v2 }
 0x64c   :  { %v481_v53 = vpop.f32.mrf.mxu0 }
 0x64d   :  { %v511_v61 = vadd.f32 %v4387_v41, %v481_v53 }
 0x64e   :  { %v782_v51 = vpop.f32.mrf.mxu3 }
 0x64f   :  { %3631 = vmatmul.msk.f32.vlgmr.msrb.gmra.mxu2 %vm217_vm14, %v782_v51 }
 0x656   :  { %v785_v52 = vpop.f32.mrf.mxu3 }
 0x657   :  { %3632 = vmatmul.msk.f32.gmra.mxu2 %vm217_vm14, %v785_v52 }
 0x659   :  { %v658_v54 = vpop.f32.mrf.mxu0 }
 0x65a   :  { %v664_v50 = vadd.f32 %v658_v54, %v508_v55 }
 0x661   :  { %v661_v60 = vpop.f32.mrf.mxu0 }
 0x662   :  { %v665_v29 = vadd.f32 %v661_v60, %v511_v61 }
 0x6d2   :  { %v811_v56 = vpop.f32.mrf.mxu2 }
 0x6d3   :  { %v817_v25 = vadd.f32 %v811_v56, %v664_v50 }
 0x6d5   :  { %v819_v59 = vadd.f32 %v817_v25, %v4273_v1 }
 0x6d7   :  { %v4456_v63 = vadd.f32 %v3902_v57, %v819_v59 }
 0x6d9   :  { %v831_v3 = vsel %vm76_vm0, %v4456_v63, 0.0 }
 0x6da   :  { %832 = vadd.xlane.f32.xlu2 %v831_v3  ;;  %v814_v40 = vpop.f32.mrf.mxu2  ;;  %v3903_v3 = vld [vmem:[%s5302_s1 + $0x1] ss:$0 sm:$0xff] }
 0x6db   :  { %v818_v58 = vadd.f32 %v814_v40, %v665_v29 }
 0x6dd   :  { %v820_v4 = vadd.f32 %v818_v58, %v4268_v0 }
 0x6df   :  { %v4461_v5 = vadd.f32 %v3902_v57, %v820_v4 }
 0x6e1   :  { %v834_v6 = vsel %vm76_vm0, %v4461_v5, 0.0 }
 0x6e2   :  { %835 = vadd.xlane.f32.xlu0 %v834_v6  ;;  %v3904_v6 = vld [vmem:[%s5254_s5 + $0x1] ss:$0 sm:$0xff] }
 0x74d   :  { %v833_v1 = vpop.xlane.xlu2 %832 }
 0x74e   :  { %v837_v41 = vmul.f32 %v833_v1, %v4279_v10 }
 0x750   :  { %v4467_v7 = vsub.f32 %v4456_v63, %v837_v41 }
 0x752   :  { %v841_v8 = vmul.f32 %v4467_v7, %v4467_v7 }
 0x754   :  { %v843_v9 = vsel %vm76_vm0, %v841_v8, 0.0 }
 0x755   :  { %844 = vadd.xlane.f32.xlu1 %v843_v9  ;;  %v836_v11 = vpop.xlane.xlu0 %835 }
 0x756   :  { %v838_v0 = vmul.f32 %v836_v11, %v4279_v10 }
 0x758   :  { %v4474_v12 = vsub.f32 %v4461_v5, %v838_v0 }
 0x75a   :  { %v842_v33 = vmul.f32 %v4474_v12, %v4474_v12 }
 0x75c   :  { %v846_v13 = vsel %vm76_vm0, %v842_v33, 0.0 }
 0x75d   :  { %847 = vadd.xlane.f32.xlu2 %v846_v13 }
 0x7c8   :  { %v845_v23 = vpop.xlane.xlu1 %844 }
 0x7c9   :  { %v849_v18 = vmul.f32 0.032258064, %v845_v23  ;;  %v986_v23 = vadd.f32 %v3905_v20, %v985_v19 }
 0x7cb   :  { %3969 = vrsqrt.f32 %v849_v18  ;;  %vm858_vm7 = vcmp.eq.f32.partialorder %v849_v18, inf  ;;  %v861_v43 = vand.u32 2147483648, %v849_v18  ;;  %vm860_vm8 = vcmp.eq.f32.partialorder %v849_v18, 0.0  ;;  %3640 = vmatpush.xpose.msk.msra.mxu3 %vm217_vm14, %v986_v23 }
 0x7d0   :  { %v848_v27 = vpop.xlane.xlu2 %847 }
 0x7d1   :  { %v3970_v28 = vpop.eup %3969  ;;  %v850_v30 = vmul.f32 0.032258064, %v848_v27 }
 0x7d2   :  { %v852_v31 = vmul.f32 %v3970_v28, %v849_v18 }
 0x7d3   :  { %3971 = vrsqrt.f32 %v850_v30  ;;  %vm870_vm9 = vcmp.eq.f32.partialorder %v850_v30, inf  ;;  %v873_v51 = vand.u32 2147483648, %v850_v30  ;;  %vm872_vm10 = vcmp.eq.f32.partialorder %v850_v30, 0.0 }
 0x7d4   :  { %v853_v32 = vmul.f32 %v3970_v28, %v852_v31 }
 0x7d6   :  { %v854_v34 = vmul.f32 0.5, %v853_v32 }
 0x7d8   :  { %v855_v35 = vsub.f32 1.5, %v854_v34  ;;  %v4541_v34 = vld [vmem:[%s5305_s22 + $0x8] sm:$0xff] }
 0x7d9   :  { %v3972_v36 = vpop.eup %3971 }
 0x7da   :  { %v856_v37 = vmul.f32 %v3970_v28, %v855_v35  ;;  %v864_v38 = vmul.f32 %v3972_v36, %v850_v30  ;;  %v4534_v28 = vld [vmem:[%s5305_s22] sm:$0xff] }
 0x7dc   :  { %v857_v39 = vmul.f32 %v856_v37, %v849_v18  ;;  %v865_v42 = vmul.f32 %v3972_v36, %v864_v38  ;;  %v4545_v38 = vpack.i.bf16 %v986_v23, %v989_v2 }
 0x7de   :  { %v859_v44 = vsel %vm858_vm7, %v849_v18, %v857_v39  ;;  %v866_v45 = vmul.f32 0.5, %v865_v42 }
 0x7df   :  { %v862_v46 = vsel %vm860_vm8, %v861_v43, %v859_v44 }
 0x7e0   :  { %v875_v47 = vadd.f32 1e-06, %v862_v46  ;;  %v867_v48 = vsub.f32 1.5, %v866_v45 }
 0x7e2   :  { %3973 = vrcp.f32 %v875_v47  ;;  %v868_v14 = vmul.f32 %v3972_v36, %v867_v48  ;;  %v888_v56 = vand.u32 2147483648, %v875_v47  ;;  %v886_v57 = vand.u32 2147483647, %v875_v47 }
 0x7e3   :  { %vm882_vm12 = vweird.f32 %v875_v47 }
 0x7e4   :  { %v869_v49 = vmul.f32 %v868_v14, %v850_v30  ;;  %v889_v61 = vor.u32 1.1754944e-38, %v888_v56  ;;  %vm887_vm1 = vcmp.eq.f32.partialorder %v886_v57, 8.507059e+37 }
 0x7e6   :  { %v871_v52 = vsel %vm870_vm9, %v850_v30, %v869_v49 }
 0x7e7   :  { %v874_v22 = vsel %vm872_vm10, %v873_v51, %v871_v52 }
 0x7e8   :  { %v3974_v53 = vpop.eup %3973  ;;  %v876_v54 = vadd.f32 1e-06, %v874_v22 }
 0x7e9   :  { %v878_v55 = vmul.f32 %v3974_v53, %v875_v47  ;;  %vm883_vm11 = vweird.f32 %v3974_v53 }
 0x7ea   :  { %3975 = vrcp.f32 %v876_v54  ;;  %vm884_vm13 = vmor %vm882_vm12, %vm883_vm11  ;;  %v903_v41 = vand.u32 2147483648, %v876_v54  ;;  %v901_v11 = vand.u32 2147483647, %v876_v54  ;;  %vm897_vm3 = vweird.f32 %v876_v54 }
 0x7eb   :  { %v879_v50 = vsub.f32 1.0, %v878_v55 }
 0x7ec   :  { %v904_v13 = vor.u32 1.1754944e-38, %v903_v41  ;;  %vm902_vm5 = vcmp.eq.f32.partialorder %v901_v11, 8.507059e+37 }
 0x7ed   :  { %v880_v25 = vmul.f32 %v3974_v53, %v879_v50 }
 0x7ef   :  { %v881_v59 = vadd.f32 %v3974_v53, %v880_v25 }
 0x7f0   :  { %v3976_v60 = vpop.eup %3975 }
 0x7f1   :  { %v885_v29 = vsel %vm884_vm13, %v3974_v53, %v881_v59  ;;  %v893_v40 = vmul.f32 %v3976_v60, %v876_v54  ;;  %vm898_vm2 = vweird.f32 %v3976_v60  ;;  %v991_v53 = vld [vmem:[%s5263_s14] sm:$0xff] }
 0x7f2   :  { %v890_v58 = vsel %vm887_vm1, %v889_v61, %v885_v29  ;;  %vm899_vm4 = vmor %vm897_vm3, %vm898_vm2 }
 0x7f3   :  { %v891_v4 = vmul.f32 %v890_v58, %v4467_v7  ;;  %v894_v1 = vsub.f32 1.0, %v893_v40 }
 0x7f5   :  { %v910_v8 = vmul.f32 %v3903_v3, %v891_v4  ;;  %v895_v9 = vmul.f32 %v3976_v60, %v894_v1 }
 0x7f7   :  { %v915_v0 = vadd.f32 %v3904_v6, %v910_v8  ;;  %v896_v33 = vadd.f32 %v3976_v60, %v895_v9 }
 0x7f9   :  { %3635 = vmatmul.msk.f32.vlgmr.msrb.gmra.mxu0 %vm76_vm0, %v915_v0  ;;  %v900_v62 = vsel %vm899_vm4, %v3976_v60, %v896_v33 }
 0x7fa   :  { %v905_v7 = vsel %vm902_vm5, %v904_v13, %v900_v62 }
 0x7fb   :  { %v906_v15 = vmul.f32 %v905_v7, %v4474_v12  ;;  %v3906_v12 = vld [vmem:[%s5260_s11] ss:$0 sm:$0xff] }
 0x7fd   :  { %v911_v16 = vmul.f32 %v3903_v3, %v906_v15 }
 0x7ff   :  { %v916_v17 = vadd.f32 %v3904_v6, %v911_v16 }
 0x801   :  { %3636 = vmatmul.msk.f32.gmra.mxu0 %vm76_vm0, %v916_v17 }
 0x876   :  { %v948_v24 = vpop.f32.mrf.mxu0 }
 0x877   :  { %v949_v18 = vadd.f32 %v3906_v12, %v948_v24 }
 0x879   :  { %3641 = vmatmul.msk.f32.vlgmr.msra.gmra.mxu3 %vm217_vm14, %v949_v18 }
 0x87e   :  { %v951_v26 = vpop.f32.mrf.mxu0 }
 0x87f   :  { %v952_v27 = vadd.f32 %v3906_v12, %v951_v26 }
 0x881   :  { %3642 = vmatmul.msk.f32.gmra.mxu3 %vm217_vm14, %v952_v27 }
 0x8fc   :  { %v1024_v30 = vpop.f32.mrf.mxu3 }
 0x8fd   :  { %v1025_v31 = vadd.f32 %v1024_v30, %v4534_v28 }
 0x8ff   :  { %v1030_v32 = vsel %vm249_vm15, %v1025_v31, -inf }
 0x900   :  { %1031 = vmax.xlane.f32.xlu2 %v1030_v32 }
 0x904   :  { %v1027_v35 = vpop.f32.mrf.mxu3 }
 0x905   :  { %v1028_v36 = vadd.f32 %v1027_v35, %v4541_v34 }
 0x907   :  { %v1033_v37 = vsel %vm249_vm15, %v1028_v36, -inf }
 0x908   :  { %1034 = vmax.xlane.f32.xlu0 %v1033_v37 }
 0x91c   :  { %3840 = vrot.lane.b32.xlu0 %v4545_v38, %s5291_s25 }
 0x924   :  { %1113 = vrot.lane.b32.xlu0 %v949_v18, %s5289_s0 }
 0x92c   :  { %1299 = vrot.lane.b32.xlu0 %v989_v2, %s5306_s3 }
 0x934   :  { %1450 = vrot.lane.b32.xlu0 %v986_v23, %s5307_s29 }
 0x93c   :  { %1295 = vrot.lane.b32.xlu0 %v952_v27, %s5306_s3 }
 0x973   :  { %v1032_v39 = vpop.xlane.xlu2 %1031 }
 0x974   :  { %v1036_v42 = vsub.f32 %v1025_v31, %v1032_v39 }
 0x976   :  { %v1038_v43 = vmul.f32 1.442695, %v1036_v42 }
 0x978   :  { %3977 = vpow2.f32 %v1038_v43 }
 0x97b   :  { %v1035_v44 = vpop.xlane.xlu0 %1034 }
 0x97c   :  { %v1037_v45 = vsub.f32 %v1028_v36, %v1035_v44 }
 0x97e   :  { %v3978_v46 = vpop.eup %3977  ;;  %v1040_v47 = vmul.f32 1.442695, %v1037_v45 }
 0x97f   :  { %v1042_v48 = vsel %vm249_vm15, %v3978_v46, 0.0 }
 0x980   :  { %3979 = vpow2.f32 %v1040_v47  ;;  %1043 = vadd.xlane.f32.xlu1 %v1042_v48 }
 0x986   :  { %v3980_v14 = vpop.eup %3979 }
 0x987   :  { %v1045_v49 = vsel %vm249_vm15, %v3980_v14, 0.0 }
 0x988   :  { %1046 = vadd.xlane.f32.xlu2 %v1045_v49 }
 0x98e   :  { %v3841_v51 = vpop.permute.xlu0 %3840 }
 0x98f   :  { %v3842_v52 = vunpack.i.l.bf16 %v3841_v51  ;;  %v3843_v22 = vunpack.i.h.bf16 %v3841_v51 }
 0x991   :  { %1104 = vmatpush.msra.mxu2 %v3842_v52 }
 0x993   :  { %1105 = vmatpush.msra.mxu2 %v3843_v22 }
 0x995   :  { %1285 = vmatpush.msrb.mxu2 %v991_v53 }
 0x996   :  { %v1114_v50 = vpop.permute.xlu0 %1113 }
 0x999   :  { %1119 = vrot.lane.b32.xlu1 %v989_v2, %s5289_s0 }
 0x99e   :  { %v1300_v41 = vpop.permute.xlu0 %1299 }
 0x9a0   :  { %1117 = vrot.lane.b32.xlu2 %v986_v23, %s5289_s0 }
 0x9a1   :  { %1115 = vrot.lane.b32.xlu1 %v952_v27, %s5289_s0  ;;  %s5314_s0 = smov 56  }
 0x9a6   :  { %v1451_v20 = vpop.permute.xlu0 %1450 }
 0x9a8   :  { %1452 = vrot.lane.b32.xlu2 %v989_v2, %s5307_s29 }
 0x9a9   :  { %1297 = vrot.lane.b32.xlu1 %v986_v23, %s5306_s3 }
 0x9ae   :  { %v1296_v12 = vpop.permute.xlu0 %1295 }
 0x9b0   :  { %1293 = vrot.lane.b32.xlu2 %v949_v18, %s5306_s3 }
 0x9b1   :  { %1446 = vrot.lane.b32.xlu1 %v949_v18, %s5307_s29 }
 0x9b8   :  { %1448 = vrot.lane.b32.xlu2 %v952_v27, %s5307_s29 }
 0x9f3   :  { %v1044_v54 = vpop.xlane.xlu1 %1043 }
 0x9f4   :  { %3981 = vrcp.f32 %v1044_v54  ;;  %v1059_v59 = vand.u32 2147483648, %v1044_v54  ;;  %v1057_v61 = vand.u32 2147483647, %v1044_v54  ;;  %vm1053_vm7 = vweird.f32 %v1044_v54 }
 0x9f6   :  { %v1060_v40 = vor.u32 1.1754944e-38, %v1059_v59  ;;  %vm1058_vm9 = vcmp.eq.f32.partialorder %v1057_v61, 8.507059e+37 }
 0x9fa   :  { %v3982_v55 = vpop.eup %3981 }
 0x9fb   :  { %v1049_v56 = vmul.f32 %v3982_v55, %v1044_v54  ;;  %v1047_v25 = vpop.xlane.xlu2 %1046  ;;  %vm1054_vm6 = vweird.f32 %v3982_v55 }
 0x9fc   :  { %3983 = vrcp.f32 %v1047_v25  ;;  %vm1055_vm8 = vmor %vm1053_vm7, %vm1054_vm6  ;;  %v1074_v11 = vand.u32 2147483648, %v1047_v25  ;;  %v1072_v33 = vand.u32 2147483647, %v1047_v25  ;;  %vm1068_vm11 = vweird.f32 %v1047_v25 }
 0x9fd   :  { %v1050_v57 = vsub.f32 1.0, %v1049_v56 }
 0x9fe   :  { %v1075_v62 = vor.u32 1.1754944e-38, %v1074_v11  ;;  %vm1073_vm13 = vcmp.eq.f32.partialorder %v1072_v33, 8.507059e+37 }
 0x9ff   :  { %v1051_v60 = vmul.f32 %v3982_v55, %v1050_v57 }
 0xa01   :  { %v1052_v29 = vadd.f32 %v3982_v55, %v1051_v60 }
 0xa02   :  { %v3984_v3 = vpop.eup %3983 }
 0xa03   :  { %v1056_v58 = vsel %vm1055_vm8, %v3982_v55, %v1052_v29  ;;  %v1064_v4 = vmul.f32 %v3984_v3, %v1047_v25  ;;  %v1118_v6 = vpop.permute.xlu2 %1117  ;;  %vm1069_vm10 = vweird.f32 %v3984_v3 }
 0xa04   :  { %v1061_v1 = vsel %vm1058_vm9, %v1060_v40, %v1056_v58  ;;  %vm1070_vm12 = vmor %vm1068_vm11, %vm1069_vm10 }
 0xa05   :  { %v1065_v8 = vsub.f32 1.0, %v1064_v4  ;;  %v1062_v9 = vmul.f32 %v3978_v46, %v1061_v1 }
 0xa07   :  { %v1066_v0 = vmul.f32 %v3984_v3, %v1065_v8  ;;  %3643 = vmatmul.msk.f32.vlgmr.msra.gmra.mxu2 %vm249_vm15, %v1062_v9 }
 0xa09   :  { %v1067_v13 = vadd.f32 %v3984_v3, %v1066_v0 }
 0xa0b   :  { %v1120_v7 = vpop.permute.xlu1 %1119  ;;  %v1453_v15 = vpop.permute.xlu2 %1452  ;;  %v1071_v16 = vsel %vm1070_vm12, %v3984_v3, %v1067_v13 }
 0xa0c   :  { %3645 = vmatpush.xpose.msk.msra.mxu0 %vm217_vm14, %v1120_v7  ;;  %3663 = vmatpush.xpose.msk.msra.mxu2 %vm217_vm14, %v1453_v15  ;;  %v1076_v17 = vsel %vm1073_vm13, %v1075_v62, %v1071_v16 }
 0xa0d   :  { %v1077_v19 = vmul.f32 %v3980_v14, %v1076_v17 }
 0xa0f   :  { %3644 = vmatmul.msk.f32.gmra.mxu2 %vm249_vm15, %v1077_v19 }
 0xa10   :  { %3646 = vmatpush.xpose.msk.msra.mxu0 %vm217_vm14, %v1118_v6  ;;  %3664 = vmatpush.xpose.msk.msra.mxu2 %vm217_vm14, %v1451_v20 }
 0xa13   :  { %v1116_v21 = vpop.permute.xlu1 %1115  ;;  %3647 = vmatmul.msk.f32.vlgmr.msra.gmra.mxu0 %vm217_vm14, %v1114_v50  ;;  %v1294_v23 = vpop.permute.xlu2 %1293 }
 0xa14   :  { %3655 = vmatpush.xpose.msk.msrb.mxu0 %vm217_vm14, %v1300_v41 }
 0xa1b   :  { %v1298_v2 = vpop.permute.xlu1 %1297  ;;  %3648 = vmatmul.msk.f32.gmra.mxu0 %vm217_vm14, %v1116_v21  ;;  %v1449_v42 = vpop.permute.xlu2 %1448 }
 0xa1c   :  { %3656 = vmatpush.xpose.msk.msrb.mxu0 %vm217_vm14, %v1298_v2 }
 0xa23   :  { %3657 = vmatmul.msk.f32.vlgmr.msrb.gmra.mxu0 %vm217_vm14, %v1294_v23  ;;  %v1447_v35 = vpop.permute.xlu1 %1446 }
 0xa2b   :  { %3658 = vmatmul.msk.f32.gmra.mxu0 %vm217_vm14, %v1296_v12 }
 0xa8a   :  { %v1107_v24 = vpop.f32.mrf.mxu2 }
 0xa8b   :  { %3653 = vmatmul.msk.f32.vlgmr.msrb.gmra.mxu2 %vm217_vm14, %v1107_v24 }
 0xa90   :  { %v1146_v18 = vpop.f32.mrf.mxu0 }
 0xa91   :  { %v1147_v26 = vadd.f32 %v1146_v18, %v4534_v28 }
 0xa92   :  { %v1110_v27 = vpop.f32.mrf.mxu2 }
 0xa93   :  { %3654 = vmatmul.msk.f32.gmra.mxu2 %vm217_vm14, %v1110_v27  ;;  %v1152_v30 = vsel %vm249_vm15, %v1147_v26, -inf }
 0xa94   :  { %1153 = vmax.xlane.f32.xlu1 %v1152_v30 }
 0xa98   :  { %v1149_v31 = vpop.f32.mrf.mxu0 }
 0xa99   :  { %v1150_v32 = vadd.f32 %v1149_v31, %v4541_v34 }
 0xa9b   :  { %3665 = vmatmul.msk.f32.vlgmr.msra.gmra.mxu2 %vm217_vm14, %v1447_v35  ;;  %v1155_v36 = vsel %vm249_vm15, %v1150_v32, -inf }
 0xa9c   :  { %1156 = vmax.xlane.f32.xlu0 %v1155_v36 }
 0xaa0   :  { %v1326_v37 = vpop.f32.mrf.mxu0 }
 0xaa1   :  { %v1327_v39 = vadd.f32 %v1326_v37, %v4534_v28 }
 0xaa3   :  { %3666 = vmatmul.msk.f32.gmra.mxu2 %vm217_vm14, %v1449_v42  ;;  %v1332_v43 = vsel %vm249_vm15, %v1327_v39, -inf }
 0xaa4   :  { %1333 = vmax.xlane.f32.xlu2 %v1332_v43 }
 0xaa8   :  { %v1329_v44 = vpop.f32.mrf.mxu0 }
 0xaa9   :  { %v1330_v45 = vadd.f32 %v1329_v44, %v4541_v34 }
 0xaab   :  { %v1335_v46 = vsel %vm249_vm15, %v1330_v45, -inf }
 0xaac   :  { %1336 = vmax.xlane.f32.xlu1 %v1335_v46 }
 0xb07   :  { %v1154_v47 = vpop.xlane.xlu1 %1153 }
 0xb08   :  { %v1158_v48 = vsub.f32 %v1147_v26, %v1154_v47 }
 0xb0a   :  { %v1160_v14 = vmul.f32 1.442695, %v1158_v48 }
 0xb0c   :  { %3985 = vpow2.f32 %v1160_v14 }
 0xb0e   :  { %v4590_v49 = vpop.f32.mrf.mxu2 }
 0xb0f   :  { %v1157_v22 = vpop.xlane.xlu0 %1156 }
 0xb10   :  { %v1159_v54 = vsub.f32 %v1150_v32, %v1157_v22 }
 0xb12   :  { %v4592_v51 = vpop.eup %3985  ;;  %v1162_v55 = vmul.f32 1.442695, %v1159_v54  ;;  %v992_v54 = vld [vmem:[%s5263_s14 + $0x8] sm:$0xff] }
 0xb13   :  { %v1164_v52 = vsel %vm249_vm15, %v4592_v51, 0.0  ;;  %1256 = vmatpush.msrb.mxu3 %v992_v54 }
 0xb14   :  { %1165 = vadd.xlane.f32.xlu1 %v1164_v52  ;;  %3987 = vpow2.f32 %v1162_v55 }
 0xb16   :  { %v4596_v53 = vpop.f32.mrf.mxu2 }
 0xb17   :  { %v1334_v50 = vpop.xlane.xlu2 %1333 }
 0xb18   :  { %v1338_v25 = vsub.f32 %v1327_v39, %v1334_v50 }
 0xb1a   :  { %v1340_v29 = vmul.f32 1.442695, %v1338_v25  ;;  %v4600_v40 = vpop.eup %3987 }
 0xb1b   :  { %v1167_v6 = vsel %vm249_vm15, %v4600_v40, 0.0 }
 0xb1c   :  { %3989 = vpow2.f32 %v1340_v29 }
 0xb1e   :  { %v1479_v56 = vpop.f32.mrf.mxu2 }
 0xb1f   :  { %v1480_v57 = vadd.f32 %v1479_v56, %v4534_v28  ;;  %v1337_v59 = vpop.xlane.xlu1 %1336 }
 0xb20   :  { %v1339_v60 = vsub.f32 %v1330_v45, %v1337_v59 }
 0xb21   :  { %v1485_v61 = vsel %vm249_vm15, %v1480_v57, -inf }
 0xb22   :  { %1486 = vmax.xlane.f32.xlu0 %v1485_v61  ;;  %v1342_v3 = vmul.f32 1.442695, %v1339_v60  ;;  %v4606_v1 = vpop.eup %3989 }
 0xb24   :  { %3991 = vpow2.f32 %v1342_v3 }
 0xb26   :  { %v1482_v58 = vpop.f32.mrf.mxu2 }
 0xb27   :  { %v1483_v4 = vadd.f32 %v1482_v58, %v4541_v34  ;;  %v1344_v34 = vsel %vm249_vm15, %v4606_v1, 0.0 }
 0xb29   :  { %v1488_v28 = vsel %vm249_vm15, %v1483_v4, -inf }
 0xb2a   :  { %1168 = vadd.xlane.f32.xlu0 %v1167_v6  ;;  %1489 = vmax.xlane.f32.xlu2 %v1488_v28  ;;  %v4610_v41 = vpop.eup %3991 }
 0xb2b   :  { %v1347_v8 = vsel %vm249_vm15, %v4610_v41, 0.0 }
 0xb2d   :  { %3845 = vrot.lane.b32.xlu1 %v4545_v38, %s5308_s21 }
 0xb32   :  { %1348 = vadd.xlane.f32.xlu0 %v1347_v8  ;;  %1345 = vadd.xlane.f32.xlu2 %v1344_v34 }
 0xb87   :  { %v1166_v9 = vpop.xlane.xlu1 %1165 }
 0xb88   :  { %3993 = vrcp.f32 %v1166_v9  ;;  %v1181_v17 = vand.u32 2147483648, %v1166_v9  ;;  %vm1175_vm2 = vweird.f32 %v1166_v9  ;;  %v1179_v19 = vand.u32 2147483647, %v1166_v9 }
 0xb8a   :  { %v1182_v23 = vor.u32 1.1754944e-38, %v1181_v17  ;;  %vm1180_vm4 = vcmp.eq.f32.partialorder %v1179_v19, 8.507059e+37 }
 0xb8e   :  { %v3994_v11 = vpop.eup %3993 }
 0xb8f   :  { %v1171_v0 = vmul.f32 %v3994_v11, %v1166_v9  ;;  %vm1176_vm1 = vweird.f32 %v3994_v11 }
 0xb90   :  { %vm1177_vm3 = vmor %vm1175_vm2, %vm1176_vm1 }
 0xb91   :  { %v1172_v33 = vsub.f32 1.0, %v1171_v0 }
 0xb93   :  { %v1173_v13 = vmul.f32 %v3994_v11, %v1172_v33 }
 0xb95   :  { %v1487_v62 = vpop.xlane.xlu0 %1486  ;;  %v1174_v16 = vadd.f32 %v3994_v11, %v1173_v13 }
 0xb96   :  { %v1491_v7 = vsub.f32 %v1480_v57, %v1487_v62 }
 0xb97   :  { %v1178_v20 = vsel %vm1177_vm3, %v3994_v11, %v1174_v16 }
 0xb98   :  { %v1493_v15 = vmul.f32 1.442695, %v1491_v7  ;;  %v1183_v26 = vsel %vm1180_vm4, %v1182_v23, %v1178_v20 }
 0xb99   :  { %v1184_v35 = vmul.f32 %v4592_v51, %v1183_v26 }
 0xb9a   :  { %3995 = vpow2.f32 %v1493_v15 }
 0xb9d   :  { %v1169_v21 = vpop.xlane.xlu0 %1168  ;;  %v1490_v2 = vpop.xlane.xlu2 %1489 }
 0xb9e   :  { %3997 = vrcp.f32 %v1169_v21  ;;  %v1492_v12 = vsub.f32 %v1483_v4, %v1490_v2  ;;  %v1196_v43 = vand.u32 2147483648, %v1169_v21  ;;  %v1194_v46 = vand.u32 2147483647, %v1169_v21 }
 0xb9f   :  { %v3846_v24 = vpop.permute.xlu1 %3845  ;;  %vm1190_vm6 = vweird.f32 %v1169_v21 }
 0xba0   :  { %v4616_v18 = vpop.eup %3995  ;;  %v1495_v27 = vmul.f32 1.442695, %v1492_v12  ;;  %v3847_v30 = vunpack.i.l.bf16 %v3846_v24  ;;  %v3848_v32 = vunpack.i.h.bf16 %v3846_v24  ;;  %v1197_v48 = vor.u32 1.1754944e-38, %v1196_v43 }
 0xba1   :  { %v1497_v31 = vsel %vm249_vm15, %v4616_v18, 0.0  ;;  %vm1195_vm8 = vcmp.eq.f32.partialorder %v1194_v46, 8.507059e+37 }
 0xba2   :  { %3999 = vpow2.f32 %v1495_v27  ;;  %1226 = vmatpush.msrb.mxu1 %v3847_v30  ;;  %1498 = vadd.xlane.f32.xlu2 %v1497_v31 }
 0xba4   :  { %v3998_v36 = vpop.eup %3997  ;;  %1227 = vmatpush.msrb.mxu1 %v3848_v32 }
 0xba5   :  { %v1186_v37 = vmul.f32 %v3998_v36, %v1169_v21  ;;  %3649 = vmatmul.msk.f32.vlgmr.msrb.gmra.mxu1 %vm249_vm15, %v1184_v35  ;;  %vm1191_vm5 = vweird.f32 %v3998_v36  ;;  %v1346_v22 = vpop.xlane.xlu2 %1345  ;;  %v1349_v55 = vpop.xlane.xlu0 %1348 }
 0xba6   :  { %vm1192_vm7 = vmor %vm1190_vm6, %vm1191_vm5  ;;  %4001 = vrcp.f32 %v1346_v22  ;;  %vm1355_vm10 = vweird.f32 %v1346_v22  ;;  %v1376_v13 = vand.u32 2147483648, %v1349_v55  ;;  %vm1370_vm1 = vweird.f32 %v1349_v55 }
 0xba7   :  { %v1187_v39 = vsub.f32 1.0, %v1186_v37  ;;  %4003 = vrcp.f32 %v1349_v55  ;;  %v1374_v17 = vand.u32 2147483647, %v1349_v55 }
 0xba8   :  { %v4622_v42 = vpop.eup %3999  ;;  %v1377_v21 = vor.u32 1.1754944e-38, %v1376_v13 }
 0xba9   :  { %v1188_v44 = vmul.f32 %v3998_v36, %v1187_v39  ;;  %v1500_v45 = vsel %vm249_vm15, %v4622_v42, 0.0  ;;  %vm1375_vm3 = vcmp.eq.f32.partialorder %v1374_v17, 8.507059e+37  ;;  %v1700_v17 = vld [vmem:[%s5265_s16 + $0x18] sm:$0xff] }
 0xbaa   :  { %1501 = vadd.xlane.f32.xlu0 %v1500_v45 }
 0xbab   :  { %v1189_v47 = vadd.f32 %v3998_v36, %v1188_v44 }
 0xbac   :  { %v4002_v50 = vpop.eup %4001 }
 0xbad   :  { %v1193_v14 = vsel %vm1192_vm7, %v3998_v36, %v1189_v47  ;;  %v1351_v56 = vmul.f32 %v4002_v50, %v1346_v22  ;;  %v4004_v57 = vpop.eup %4003  ;;  %vm1356_vm9 = vweird.f32 %v4002_v50 }
 0xbae   :  { %v1198_v51 = vsel %vm1195_vm8, %v1197_v48, %v1193_v14  ;;  %v1366_v59 = vmul.f32 %v4004_v57, %v1349_v55  ;;  %vm1357_vm11 = vmor %vm1355_vm10, %vm1356_vm9  ;;  %vm1371_vm13 = vweird.f32 %v4004_v57 }
 0xbaf   :  { %v1199_v52 = vmul.f32 %v4600_v40, %v1198_v51  ;;  %v1352_v25 = vsub.f32 1.0, %v1351_v56  ;;  %v1359_v40 = vand.u32 2147483647, %v1346_v22  ;;  %vm1372_vm2 = vmor %vm1370_vm1, %vm1371_vm13 }
 0xbb0   :  { %v1367_v29 = vsub.f32 1.0, %v1366_v59 }
 0xbb1   :  { %3650 = vmatmul.msk.f32.gmra.mxu1 %vm249_vm15, %v1199_v52  ;;  %v1353_v60 = vmul.f32 %v4002_v50, %v1352_v25  ;;  %vm1360_vm12 = vcmp.eq.f32.partialorder %v1359_v40, 8.507059e+37 }
 0xbb2   :  { %v1368_v4 = vmul.f32 %v4004_v57, %v1367_v29 }
 0xbb3   :  { %v1354_v3 = vadd.f32 %v4002_v50, %v1353_v60 }
 0xbb4   :  { %v1369_v33 = vadd.f32 %v4004_v57, %v1368_v4 }
 0xbb5   :  { %v1358_v6 = vsel %vm1357_vm11, %v4002_v50, %v1354_v3  ;;  %v3907_v3 = vld [vmem:[%s5264_s15] ss:$0 sm:$0xff]  ;;  %s5319_s15 = sld [smem:[#allocation10_spill]] }
 0xbb6   :  { %v1373_v20 = vsel %vm1372_vm2, %v4004_v57, %v1369_v33 }
 0xbb7   :  { %v1378_v12 = vsel %vm1375_vm3, %v1377_v21, %v1373_v20  ;;  %v1698_v21 = vld [vmem:[%s5265_s16 + $0x8] sm:$0xff] }
 0xbb8   :  { %v1379_v27 = vmul.f32 %v4610_v41, %v1378_v12 }
 0xbba   :  { %3850 = vrot.lane.b32.xlu2 %v4545_v38, %s5309_s23 }
 0xbbe   :  { %3855 = vrot.lane.b32.xlu0 %v4545_v38, %s5310_s24  ;;  %v1361_v38 = vand.u32 2147483648, %v1346_v22  ;;  %v993_v22 = vld [vmem:[%s5263_s14 + $0x10] sm:$0xff] }
 0xbbf   :  { %1436 = vmatpush.msra.mxu3 %v993_v22 }
 0xbc0   :  { %v1362_v28 = vor.u32 1.1754944e-38, %v1361_v38 }
 0xbc2   :  { %v1363_v11 = vsel %vm1360_vm12, %v1362_v28, %v1358_v6 }
 0xbc3   :  { %v1364_v16 = vmul.f32 %v4606_v1, %v1363_v11 }
 0xc15   :  { %v1499_v61 = vpop.xlane.xlu2 %1498 }
 0xc16   :  { %4005 = vrcp.f32 %v1499_v61  ;;  %v1514_v1 = vand.u32 2147483648, %v1499_v61  ;;  %vm1508_vm5 = vweird.f32 %v1499_v61  ;;  %v1512_v30 = vand.u32 2147483647, %v1499_v61 }
 0xc18   :  { %v1515_v36 = vor.u32 1.1754944e-38, %v1514_v1  ;;  %vm1513_vm7 = vcmp.eq.f32.partialorder %v1512_v30, 8.507059e+37 }
 0xc1c   :  { %v4006_v58 = vpop.eup %4005 }
 0xc1d   :  { %v1502_v8 = vpop.xlane.xlu0 %1501  ;;  %v3851_v34 = vpop.permute.xlu2 %3850  ;;  %v1504_v9 = vmul.f32 %v4006_v58, %v1499_v61  ;;  %vm1509_vm4 = vweird.f32 %v4006_v58 }
 0xc1e   :  { %4007 = vrcp.f32 %v1502_v8  ;;  %v3852_v0 = vunpack.i.l.bf16 %v3851_v34  ;;  %v3853_v62 = vunpack.i.h.bf16 %v3851_v34  ;;  %vm1510_vm6 = vmor %vm1508_vm5, %vm1509_vm4  ;;  %v1529_v45 = vand.u32 2147483648, %v1502_v8 }
 0xc1f   :  { %v1505_v7 = vsub.f32 1.0, %v1504_v9  ;;  %vm1523_vm9 = vweird.f32 %v1502_v8  ;;  %v1527_v47 = vand.u32 2147483647, %v1502_v8 }
 0xc20   :  { %1406 = vmatpush.msra.mxu1 %v3852_v0  ;;  %v1530_v14 = vor.u32 1.1754944e-38, %v1529_v45 }
 0xc21   :  { %v1506_v2 = vmul.f32 %v4006_v58, %v1505_v7  ;;  %vm1528_vm11 = vcmp.eq.f32.partialorder %v1527_v47, 8.507059e+37 }
 0xc22   :  { %v1229_v15 = vpop.f32.mrf.mxu1  ;;  %1407 = vmatpush.msra.mxu1 %v3853_v62 }
 0xc23   :  { %3651 = vmatmul.msk.f32.vlgmr.msrb.gmra.mxu3 %vm217_vm14, %v1229_v15  ;;  %3659 = vmatmul.msk.f32.vlgmr.msra.gmra.mxu1 %vm249_vm15, %v1364_v16  ;;  %v1507_v24 = vadd.f32 %v4006_v58, %v1506_v2 }
 0xc24   :  { %v4008_v19 = vpop.eup %4007  ;;  %1723 = vmatpush.msrb.mxu3 %v1700_v17 }
 0xc25   :  { %v1519_v23 = vmul.f32 %v4008_v19, %v1502_v8  ;;  %v1511_v31 = vsel %vm1510_vm6, %v4006_v58, %v1507_v24  ;;  %vm1524_vm8 = vweird.f32 %v4008_v19 }
 0xc26   :  { %v1516_v39 = vsel %vm1513_vm7, %v1515_v36, %v1511_v31  ;;  %vm1525_vm10 = vmor %vm1523_vm9, %vm1524_vm8 }
 0xc27   :  { %v1520_v26 = vsub.f32 1.0, %v1519_v23  ;;  %v1517_v46 = vmul.f32 %v4616_v18, %v1516_v39  ;;  %v994_v18 = vld [vmem:[%s5263_s14 + $0x18] sm:$0xff]  ;;  %v1697_v23 = vld [vmem:[%s5265_s16] sm:$0xff] }
 0xc28   :  { %1589 = vmatpush.msrb.mxu1 %v994_v18 }
 0xc29   :  { %v1521_v32 = vmul.f32 %v4008_v19, %v1520_v26 }
 0xc2b   :  { %3660 = vmatmul.msk.f32.gmra.mxu1 %vm249_vm15, %v1379_v27  ;;  %v1522_v44 = vadd.f32 %v4008_v19, %v1521_v32 }
 0xc2d   :  { %v1526_v48 = vsel %vm1525_vm10, %v4008_v19, %v1522_v44  ;;  %v1699_v19 = vld [vmem:[%s5265_s16 + $0x10] sm:$0xff] }
 0xc2e   :  { %v1232_v35 = vpop.f32.mrf.mxu1  ;;  %v1531_v51 = vsel %vm1528_vm11, %v1530_v14, %v1526_v48  ;;  %1724 = vmatpush.msrb.mxu3 %v1699_v19  ;;  %v1743_v48 = vld [vmem:[%s5267_s18 + $0x38] sm:$0xff]  ;;  %v1742_v14 = vld [vmem:[%s5267_s18 + $0x30] sm:$0xff]  ;;  %vm1744_vm11 = vcmask 523264  }
 0xc2f   :  { %3652 = vmatmul.msk.f32.gmra.mxu3 %vm217_vm14, %v1232_v35  ;;  %v1532_v52 = vmul.f32 %v4622_v42, %v1531_v51  ;;  %1759 = vmatpush.msrb.mxu2 %v1743_v48 }
 0xc30   :  { %v3856_v37 = vpop.permute.xlu0 %3855  ;;  %1725 = vmatpush.msrb.mxu3 %v1698_v21  ;;  %v1738_v21 = vld [vmem:[%s5267_s18 + $0x10] sm:$0xff] }
 0xc31   :  { %v3857_v43 = vunpack.i.l.bf16 %v3856_v37  ;;  %v3858_v41 = vunpack.i.h.bf16 %v3856_v37  ;;  %1760 = vmatpush.msrb.mxu2 %v1742_v14 }
 0xc32   :  { %1726 = vmatpush.msrb.mxu3 %v1697_v23  ;;  %v1736_v23 = vld [vmem:[%s5267_s18] sm:$0xff] }
 0xc33   :  { %1559 = vmatpush.msra.mxu0 %v3857_v43 }
 0xc35   :  { %1560 = vmatpush.msra.mxu0 %v3858_v41 }
 0xc36   :  { %3667 = vmatmul.msk.f32.vlgmr.msra.gmra.mxu0 %vm249_vm15, %v1517_v46 }
 0xc3e   :  { %3668 = vmatmul.msk.f32.gmra.mxu0 %vm249_vm15, %v1532_v52  ;;  %v1741_v52 = vld [vmem:[%s5267_s18 + $0x28] sm:$0xff] }
 0xc3f   :  { %1761 = vmatpush.msrb.mxu2 %v1741_v52 }
 0xca0   :  { %v1409_v54 = vpop.f32.mrf.mxu1 }
 0xca1   :  { %3661 = vmatmul.msk.f32.vlgmr.msra.gmra.mxu3 %vm217_vm14, %v1409_v54  ;;  %v1740_v54 = vld [vmem:[%s5267_s18 + $0x20] sm:$0xff] }
 0xca2   :  { %1762 = vmatpush.msrb.mxu2 %v1740_v54  ;;  %v3681_v54 = vld [vmem:[%s5255_s6 + $0x30] sm:$0xff] }
 0xca6   :  { %v1258_v56 = vpop.f32.mrf.mxu3 }
 0xca7   :  { %v1288_v59 = vadd.f32 %v4590_v49, %v1258_v56 }
 0xca8   :  { %v1412_v55 = vpop.f32.mrf.mxu1 }
 0xca9   :  { %3662 = vmatmul.msk.f32.gmra.mxu3 %vm217_vm14, %v1412_v55 }
 0xcb2   :  { %v1261_v25 = vpop.f32.mrf.mxu3 }
 0xcb3   :  { %v1562_v50 = vpop.f32.mrf.mxu0  ;;  %v1291_v58 = vadd.f32 %v4596_v53, %v1261_v25 }
 0xcb4   :  { %3669 = vmatmul.msk.f32.vlgmr.msrb.gmra.mxu1 %vm217_vm14, %v1562_v50 }
 0xcbb   :  { %v1565_v42 = vpop.f32.mrf.mxu0 }
 0xcbc   :  { %3670 = vmatmul.msk.f32.gmra.mxu1 %vm217_vm14, %v1565_v42  ;;  %v1739_v42 = vld [vmem:[%s5267_s18 + $0x18] sm:$0xff] }
 0xcbd   :  { %1763 = vmatpush.msrb.mxu2 %v1739_v42 }
 0xcbf   :  { %1764 = vmatpush.msrb.mxu2 %v1738_v21 }
 0xd24   :  { %v1438_v57 = vpop.f32.mrf.mxu3 }
 0xd25   :  { %v1444_v60 = vadd.f32 %v1438_v57, %v1288_v59 }
 0xd2c   :  { %v1441_v40 = vpop.f32.mrf.mxu3 }
 0xd2d   :  { %v1445_v6 = vadd.f32 %v1441_v40, %v1291_v58 }
 0xd31   :  { %v1591_v61 = vpop.f32.mrf.mxu1 }
 0xd32   :  { %v1597_v29 = vadd.f32 %v1591_v61, %v1444_v60 }
 0xd34   :  { %v1599_v38 = vadd.f32 %v1597_v29, %v4456_v63 }
 0xd36   :  { %v4661_v4 = vadd.f32 %v3907_v3, %v1599_v38 }
 0xd38   :  { %v1611_v28 = vsel %vm76_vm0, %v4661_v4, 0.0 }
 0xd39   :  { %1612 = vadd.xlane.f32.xlu1 %v1611_v28  ;;  %v1594_v49 = vpop.f32.mrf.mxu1 }
 0xd3a   :  { %v1598_v8 = vadd.f32 %v1594_v49, %v1445_v6  ;;  %v3908_v6 = vld [vmem:[%s5302_s1 + $0x2] ss:$0 sm:$0xff] }
 0xd3c   :  { %v1600_v34 = vadd.f32 %v1598_v8, %v4461_v5 }
 0xd3e   :  { %v4666_v9 = vadd.f32 %v3907_v3, %v1600_v34  ;;  %v3909_v34 = vld [vmem:[%s5254_s5 + $0x2] ss:$0 sm:$0xff] }
 0xd40   :  { %v1614_v11 = vsel %vm76_vm0, %v4666_v9, 0.0 }
 0xd41   :  { %1615 = vadd.xlane.f32.xlu2 %v1614_v11 }
 0xdac   :  { %v1613_v63 = vpop.xlane.xlu1 %1612 }
 0xdad   :  { %v1617_v53 = vmul.f32 %v1613_v63, %v4279_v10 }
 0xdaf   :  { %v4672_v0 = vsub.f32 %v4661_v4, %v1617_v53 }
 0xdb1   :  { %v1621_v33 = vmul.f32 %v4672_v0, %v4672_v0 }
 0xdb3   :  { %v1623_v13 = vsel %vm76_vm0, %v1621_v33, 0.0 }
 0xdb4   :  { %1624 = vadd.xlane.f32.xlu0 %v1623_v13  ;;  %v1616_v62 = vpop.xlane.xlu2 %1615 }
 0xdb5   :  { %v1618_v5 = vmul.f32 %v1616_v62, %v4279_v10 }
 0xdb7   :  { %v4679_v7 = vsub.f32 %v4666_v9, %v1618_v5 }
 0xdb9   :  { %v1622_v15 = vmul.f32 %v4679_v7, %v4679_v7 }
 0xdbb   :  { %v1626_v16 = vsel %vm76_vm0, %v1622_v15, 0.0 }
 0xdbc   :  { %1627 = vadd.xlane.f32.xlu1 %v1626_v16 }
 0xe27   :  { %v1625_v20 = vpop.xlane.xlu0 %1624 }
 0xe28   :  { %v1629_v2 = vmul.f32 0.032258064, %v1625_v20 }
 0xe2a   :  { %4009 = vrsqrt.f32 %v1629_v2  ;;  %vm1638_vm12 = vcmp.eq.f32.partialorder %v1629_v2, inf  ;;  %v1641_v43 = vand.u32 2147483648, %v1629_v2  ;;  %vm1640_vm13 = vcmp.eq.f32.partialorder %v1629_v2, 0.0 }
 0xe2f   :  { %v1628_v12 = vpop.xlane.xlu1 %1627 }
 0xe30   :  { %v4010_v24 = vpop.eup %4009  ;;  %v1630_v26 = vmul.f32 0.032258064, %v1628_v12 }
 0xe31   :  { %v1632_v27 = vmul.f32 %v4010_v24, %v1629_v2 }
 0xe32   :  { %4011 = vrsqrt.f32 %v1630_v26  ;;  %vm1650_vm1 = vcmp.eq.f32.partialorder %v1630_v26, inf  ;;  %v1653_v18 = vand.u32 2147483648, %v1630_v26  ;;  %vm1652_vm2 = vcmp.eq.f32.partialorder %v1630_v26, 0.0 }
 0xe33   :  { %v1633_v1 = vmul.f32 %v4010_v24, %v1632_v27 }
 0xe35   :  { %v1634_v30 = vmul.f32 0.5, %v1633_v1 }
 0xe37   :  { %v1635_v31 = vsub.f32 1.5, %v1634_v30 }
 0xe38   :  { %v4012_v32 = vpop.eup %4011 }
 0xe39   :  { %v1636_v35 = vmul.f32 %v4010_v24, %v1635_v31  ;;  %v1644_v36 = vmul.f32 %v4012_v32, %v1630_v26  ;;  %v3911_v31 = vld [vmem:[%s5268_s19] ss:$0 sm:$0xff] }
 0xe3b   :  { %v1637_v37 = vmul.f32 %v1636_v35, %v1629_v2  ;;  %v1645_v39 = vmul.f32 %v4012_v32, %v1644_v36 }
 0xe3d   :  { %v1639_v44 = vsel %vm1638_vm12, %v1629_v2, %v1637_v37  ;;  %v1646_v45 = vmul.f32 0.5, %v1645_v39  ;;  %v1737_v2 = vld [vmem:[%s5267_s18 + $0x8] sm:$0xff] }
 0xe3e   :  { %v1642_v41 = vsel %vm1640_vm13, %v1641_v43, %v1639_v44  ;;  %1765 = vmatpush.msrb.mxu2 %v1737_v2 }
 0xe3f   :  { %v1655_v46 = vadd.f32 1e-06, %v1642_v41  ;;  %v1647_v47 = vsub.f32 1.5, %v1646_v45 }
 0xe40   :  { %1766 = vmatpush.msrb.mxu2 %v1736_v23 }
 0xe41   :  { %4013 = vrcp.f32 %v1655_v46  ;;  %v1648_v51 = vmul.f32 %v4012_v32, %v1647_v47  ;;  %v1668_v60 = vand.u32 2147483648, %v1655_v46  ;;  %v1666_v29 = vand.u32 2147483647, %v1655_v46 }
 0xe42   :  { %vm1662_vm4 = vweird.f32 %v1655_v46 }
 0xe43   :  { %v1649_v22 = vmul.f32 %v1648_v51, %v1630_v26  ;;  %v1669_v40 = vor.u32 1.1754944e-38, %v1668_v60  ;;  %vm1667_vm6 = vcmp.eq.f32.partialorder %v1666_v29, 8.507059e+37 }
 0xe45   :  { %v1651_v55 = vsel %vm1650_vm1, %v1630_v26, %v1649_v22 }
 0xe46   :  { %v1654_v50 = vsel %vm1652_vm2, %v1653_v18, %v1651_v55  ;;  %v3682_v18 = vld [vmem:[%s5255_s6 + $0x38] sm:$0xff] }
 0xe47   :  { %v4014_v56 = vpop.eup %4013  ;;  %v1656_v25 = vadd.f32 1e-06, %v1654_v50  ;;  %1900 = vmatpush.msrb.mxu0 %v3682_v18  ;;  %v3680_v50 = vld [vmem:[%s5255_s6 + $0x28] sm:$0xff] }
 0xe48   :  { %v1658_v57 = vmul.f32 %v4014_v56, %v1655_v46  ;;  %vm1663_vm3 = vweird.f32 %v4014_v56 }
 0xe49   :  { %4015 = vrcp.f32 %v1656_v25  ;;  %vm1664_vm5 = vmor %vm1662_vm4, %vm1663_vm3  ;;  %v1683_v63 = vand.u32 2147483648, %v1656_v25  ;;  %v1681_v13 = vand.u32 2147483647, %v1656_v25  ;;  %vm1677_vm8 = vweird.f32 %v1656_v25  ;;  %1901 = vmatpush.msrb.mxu0 %v3681_v54 }
 0xe4a   :  { %v1659_v59 = vsub.f32 1.0, %v1658_v57 }
 0xe4b   :  { %v1684_v15 = vor.u32 1.1754944e-38, %v1683_v63  ;;  %vm1682_vm10 = vcmp.eq.f32.partialorder %v1681_v13, 8.507059e+37  ;;  %1902 = vmatpush.msrb.mxu0 %v3680_v50 }
 0xe4c   :  { %v1660_v61 = vmul.f32 %v4014_v56, %v1659_v59 }
 0xe4e   :  { %v1661_v3 = vadd.f32 %v4014_v56, %v1660_v61 }
 0xe4f   :  { %v4016_v38 = vpop.eup %4015 }
 0xe50   :  { %v1665_v58 = vsel %vm1664_vm5, %v4014_v56, %v1661_v3  ;;  %v1673_v28 = vmul.f32 %v4016_v38, %v1656_v25  ;;  %vm1678_vm7 = vweird.f32 %v4016_v38  ;;  %v3679_v56 = vld [vmem:[%s5255_s6 + $0x20] sm:$0xff] }
 0xe51   :  { %v1670_v49 = vsel %vm1667_vm6, %v1669_v40, %v1665_v58  ;;  %vm1679_vm9 = vmor %vm1677_vm8, %vm1678_vm7  ;;  %1903 = vmatpush.msrb.mxu0 %v3679_v56 }
 0xe52   :  { %v1671_v8 = vmul.f32 %v1670_v49, %v4672_v0  ;;  %v1674_v11 = vsub.f32 1.0, %v1673_v28 }
 0xe54   :  { %v1690_v53 = vmul.f32 %v3908_v6, %v1671_v8  ;;  %v1675_v33 = vmul.f32 %v4016_v38, %v1674_v11 }
 0xe56   :  { %v1695_v62 = vadd.f32 %v3909_v34, %v1690_v53  ;;  %v1676_v5 = vadd.f32 %v4016_v38, %v1675_v33 }
 0xe58   :  { %3673 = vmatmul.msk.f32.vlgmr.msrb.gmra.mxu3 %vm76_vm0, %v1695_v62  ;;  %v1680_v16 = vsel %vm1679_vm9, %v4016_v38, %v1676_v5 }
 0xe59   :  { %v1685_v0 = vsel %vm1682_vm10, %v1684_v15, %v1680_v16 }
 0xe5a   :  { %v1686_v17 = vmul.f32 %v1685_v0, %v4679_v7  ;;  %v3910_v7 = vld [vmem:[%s5266_s17] ss:$0 sm:$0xff] }
 0xe5c   :  { %v1691_v19 = vmul.f32 %v3908_v6, %v1686_v17 }
 0xe5e   :  { %v1696_v20 = vadd.f32 %v3909_v34, %v1691_v19 }
 0xe60   :  { %3674 = vmatmul.msk.f32.gmra.mxu3 %vm76_vm0, %v1696_v20 }
 0xedb   :  { %v1728_v12 = vpop.f32.mrf.mxu3 }
 0xedc   :  { %v1729_v24 = vadd.f32 %v3910_v7, %v1728_v12 }
 0xede   :  { %v1734_v26 = vmax.f32 %v1729_v24, 0.0 }
 0xee0   :  { %3675 = vmatmul.msk.f32.vlgmr.msrb.gmra.mxu2 %vm1744_vm11, %v1734_v26  ;;  %v3912_v26 = vld [vmem:[%s5302_s1 + $0x3] ss:$0 sm:$0xff] }
 0xee3   :  { %v1731_v27 = vpop.f32.mrf.mxu3 }
 0xee4   :  { %v1732_v1 = vadd.f32 %v3910_v7, %v1731_v27 }
 0xee6   :  { %v1735_v30 = vmax.f32 %v1732_v1, 0.0 }
 0xee8   :  { %3676 = vmatmul.msk.f32.gmra.mxu2 %vm1744_vm11, %v1735_v30 }
 0xf63   :  { %v1768_v32 = vpop.f32.mrf.mxu2 }
 0xf64   :  { %v1774_v35 = vadd.f32 %v1768_v32, %v4661_v4 }
 0xf66   :  { %v4739_v36 = vadd.f32 %v3911_v31, %v1774_v35 }
 0xf68   :  { %v1786_v37 = vsel %vm76_vm0, %v4739_v36, 0.0 }
 0xf69   :  { %1787 = vadd.xlane.f32.xlu1 %v1786_v37 }
 0xf6b   :  { %v1771_v39 = vpop.f32.mrf.mxu2 }
 0xf6c   :  { %v1775_v43 = vadd.f32 %v1771_v39, %v4666_v9 }
 0xf6e   :  { %v4744_v44 = vadd.f32 %v3911_v31, %v1775_v43  ;;  %v3913_v31 = vld [vmem:[%s5254_s5 + $0x3] ss:$0 sm:$0xff] }
 0xf70   :  { %v1789_v45 = vsel %vm76_vm0, %v4744_v44, 0.0 }
 0xf71   :  { %1790 = vadd.xlane.f32.xlu2 %v1789_v45 }
 0xfdc   :  { %v1788_v41 = vpop.xlane.xlu1 %1787 }
 0xfdd   :  { %v1792_v46 = vmul.f32 %v1788_v41, %v4279_v10 }
 0xfdf   :  { %v4750_v4 = vsub.f32 %v4739_v36, %v1792_v46 }
 0xfe1   :  { %v1796_v47 = vmul.f32 %v4750_v4, %v4750_v4 }
 0xfe3   :  { %v1798_v48 = vsel %vm76_vm0, %v1796_v47, 0.0 }
 0xfe4   :  { %v1791_v14 = vpop.xlane.xlu2 %1790  ;;  %1799 = vadd.xlane.f32.xlu0 %v1798_v48 }
 0xfe5   :  { %v1793_v9 = vmul.f32 %v1791_v14, %v4279_v10 }
 0xfe7   :  { %v4757_v51 = vsub.f32 %v4744_v44, %v1793_v9 }
 0xfe9   :  { %v1797_v52 = vmul.f32 %v4757_v51, %v4757_v51 }
 0xfeb   :  { %v1801_v22 = vsel %vm76_vm0, %v1797_v52, 0.0  ;;  %v3914_v52 = vld [vmem:[%s5256_s7 + $0x1] ss:$0 sm:$0xff]  ;;  %s4159_s7 = smov 8  }
 0xfec   :  { %1802 = vadd.xlane.f32.xlu1 %v1801_v22 }
0x1057   :  { %v1800_v55 = vpop.xlane.xlu0 %1799 }
0x1058   :  { %v1804_v42 = vmul.f32 0.032258064, %v1800_v55 }
0x105a   :  { %4017 = vrsqrt.f32 %v1804_v42  ;;  %vm1813_vm12 = vcmp.eq.f32.partialorder %v1804_v42, inf  ;;  %v1816_v49 = vand.u32 2147483648, %v1804_v42  ;;  %vm1815_vm13 = vcmp.eq.f32.partialorder %v1804_v42, 0.0 }
0x105f   :  { %v1803_v25 = vpop.xlane.xlu1 %1802 }
0x1060   :  { %v4018_v57 = vpop.eup %4017  ;;  %v1805_v59 = vmul.f32 0.032258064, %v1803_v25 }
0x1061   :  { %v1807_v60 = vmul.f32 %v4018_v57, %v1804_v42 }
0x1062   :  { %4019 = vrsqrt.f32 %v1805_v59  ;;  %vm1825_vm1 = vcmp.eq.f32.partialorder %v1805_v59, inf  ;;  %v1828_v62 = vand.u32 2147483648, %v1805_v59  ;;  %vm1827_vm2 = vcmp.eq.f32.partialorder %v1805_v59, 0.0 }
0x1063   :  { %v1808_v61 = vmul.f32 %v4018_v57, %v1807_v60  ;;  %v4806_v60 = vld [vmem:[%s5303_s27] sm:$0xff] }
0x1065   :  { %v1809_v29 = vmul.f32 0.5, %v1808_v61 }
0x1067   :  { %v1810_v3 = vsub.f32 1.5, %v1809_v29 }
0x1068   :  { %v4020_v38 = vpop.eup %4019 }
0x1069   :  { %v1811_v40 = vmul.f32 %v4018_v57, %v1810_v3  ;;  %v1819_v58 = vmul.f32 %v4020_v38, %v1805_v59 }
0x106b   :  { %v1812_v6 = vmul.f32 %v1811_v40, %v1804_v42  ;;  %v1820_v28 = vmul.f32 %v4020_v38, %v1819_v58 }
0x106d   :  { %v1814_v8 = vsel %vm1813_vm12, %v1804_v42, %v1812_v6  ;;  %v1821_v34 = vmul.f32 0.5, %v1820_v28 }
0x106e   :  { %v1817_v11 = vsel %vm1815_vm13, %v1816_v49, %v1814_v8 }
0x106f   :  { %v1830_v63 = vadd.f32 1e-06, %v1817_v11  ;;  %v1822_v53 = vsub.f32 1.5, %v1821_v34 }
0x1071   :  { %4021 = vrcp.f32 %v1830_v63  ;;  %v1823_v33 = vmul.f32 %v4020_v38, %v1822_v53  ;;  %v1843_v20 = vand.u32 2147483648, %v1830_v63  ;;  %v1841_v2 = vand.u32 2147483647, %v1830_v63  ;;  %v4813_v38 = vld [vmem:[%s5303_s27 + $0x8] sm:$0xff] }
0x1072   :  { %vm1837_vm4 = vweird.f32 %v1830_v63 }
0x1073   :  { %v1824_v13 = vmul.f32 %v1823_v33, %v1805_v59  ;;  %v1844_v12 = vor.u32 1.1754944e-38, %v1843_v20  ;;  %vm1842_vm6 = vcmp.eq.f32.partialorder %v1841_v2, 8.507059e+37 }
0x1075   :  { %v1826_v5 = vsel %vm1825_vm1, %v1805_v59, %v1824_v13 }
0x1076   :  { %v1829_v15 = vsel %vm1827_vm2, %v1828_v62, %v1826_v5  ;;  %v3686_v62 = vld [vmem:[%s5257_s8 + $0x20] sm:$0xff] }
0x1077   :  { %v4022_v16 = vpop.eup %4021  ;;  %v1831_v0 = vadd.f32 1e-06, %v1829_v15 }
0x1078   :  { %v1833_v17 = vmul.f32 %v4022_v16, %v1830_v63  ;;  %vm1838_vm3 = vweird.f32 %v4022_v16 }
0x1079   :  { %4023 = vrcp.f32 %v1831_v0  ;;  %vm1839_vm5 = vmor %vm1837_vm4, %vm1838_vm3  ;;  %v1858_v35 = vand.u32 2147483648, %v1831_v0  ;;  %v1856_v43 = vand.u32 2147483647, %v1831_v0  ;;  %vm1852_vm8 = vweird.f32 %v1831_v0 }
0x107a   :  { %v1834_v19 = vsub.f32 1.0, %v1833_v17 }
0x107b   :  { %v1859_v46 = vor.u32 1.1754944e-38, %v1858_v35  ;;  %vm1857_vm10 = vcmp.eq.f32.partialorder %v1856_v43, 8.507059e+37 }
0x107c   :  { %v1835_v21 = vmul.f32 %v4022_v16, %v1834_v19 }
0x107e   :  { %v1836_v23 = vadd.f32 %v4022_v16, %v1835_v21 }
0x107f   :  { %v4024_v7 = vpop.eup %4023 }
0x1080   :  { %v1840_v24 = vsel %vm1839_vm5, %v4022_v16, %v1836_v23  ;;  %v1848_v27 = vmul.f32 %v4024_v7, %v1831_v0  ;;  %vm1853_vm7 = vweird.f32 %v4024_v7 }
0x1081   :  { %v1845_v1 = vsel %vm1842_vm6, %v1844_v12, %v1840_v24  ;;  %vm1854_vm9 = vmor %vm1852_vm8, %vm1853_vm7 }
0x1082   :  { %v1846_v30 = vmul.f32 %v1845_v1, %v4750_v4  ;;  %v1849_v32 = vsub.f32 1.0, %v1848_v27 }
0x1084   :  { %v1865_v37 = vmul.f32 %v3912_v26, %v1846_v30  ;;  %v1850_v39 = vmul.f32 %v4024_v7, %v1849_v32 }
0x1086   :  { %v1870_v45 = vadd.f32 %v3913_v31, %v1865_v37  ;;  %v1851_v41 = vadd.f32 %v4024_v7, %v1850_v39 }
0x1088   :  { %3684 = vmatmul.msk.f32.vlgmr.msrb.gmra.mxu0 %vm76_vm0, %v1870_v45  ;;  %v1855_v47 = vsel %vm1854_vm9, %v4024_v7, %v1851_v41 }
0x1089   :  { %v1860_v4 = vsel %vm1857_vm10, %v1859_v46, %v1855_v47 }
0x108a   :  { %v1861_v48 = vmul.f32 %v1860_v4, %v4757_v51 }
0x108c   :  { %v1866_v14 = vmul.f32 %v3912_v26, %v1861_v48 }
0x108e   :  { %v1871_v9 = vadd.f32 %v3913_v31, %v1866_v14 }
0x1090   :  { %3685 = vmatmul.msk.f32.gmra.mxu0 %vm76_vm0, %v1871_v9 }
0x1105   :  { %v1905_v22 = vpop.f32.mrf.mxu0 }
0x1106   :  { %v1906_v18 = vadd.f32 %v3914_v52, %v1905_v22 }
0x1108   :  { %1918 = vrot.lane.b32.xlu0 %v1906_v18, %s5311_s2 }
0x110d   :  { %v1908_v54 = vpop.f32.mrf.mxu0 }
0x110e   :  { %v1909_v55 = vadd.f32 %v3914_v52, %v1908_v54 }
0x1110   :  { %1920 = vrot.lane.b32.xlu2 %v1909_v55, %s5311_s2  ;;  %v4789_v50 = vpack.i.bf16 %v1906_v18, %v1909_v55 }
0x1118   :  { %3860 = vrot.lane.b32.xlu2 %v4789_v50, %s5312_s26  ;;  %s5316_s26 = smov 40  }
0x1120   :  { %2040 = vrot.lane.b32.xlu2 %v1906_v18, %s5308_s21 }
0x1128   :  { %2036 = vrot.lane.b32.xlu2 %v1906_v18, %s5313_s30 }
0x1130   :  { %2375 = vrot.lane.b32.xlu2 %v1909_v55, %s5310_s24 }
0x1138   :  { %2222 = vrot.lane.b32.xlu2 %v1909_v55, %s5309_s23 }
0x1140   :  { %2369 = vrot.lane.b32.xlu2 %v1906_v18, %s5307_s29 }
0x1148   :  { %2371 = vrot.lane.b32.xlu2 %v1909_v55, %s5307_s29 }
0x116a   :  { %v1921_v51 = vpop.permute.xlu2 %1920 }
0x116b   :  { %3690 = vmatpush.xpose.msk.msra.mxu1 %vm217_vm14, %v1921_v51 }
0x1172   :  { %v3861_v42 = vpop.permute.xlu2 %3860 }
0x1173   :  { %v3862_v56 = vunpack.i.l.bf16 %v3861_v42  ;;  %v3863_v25 = vunpack.i.h.bf16 %v3861_v42 }
0x1175   :  { %2027 = vmatpush.msra.mxu3 %v3862_v56 }
0x1177   :  { %2028 = vmatpush.msra.mxu3 %v3863_v25 }
0x1179   :  { %2208 = vmatpush.msrb.mxu3 %v3686_v62 }
0x117a   :  { %v1919_v57 = vpop.permute.xlu0 %1918  ;;  %v2041_v5 = vpop.permute.xlu2 %2040 }
0x117b   :  { %3691 = vmatpush.xpose.msk.msra.mxu1 %vm217_vm14, %v1919_v57 }
0x117e   :  { %3692 = vmatmul.msk.f32.vlgmr.msra.gmra.mxu1 %vm217_vm14, %v1906_v18 }
0x1182   :  { %v2037_v19 = vpop.permute.xlu2 %2036 }
0x1186   :  { %3693 = vmatmul.msk.f32.gmra.mxu1 %vm217_vm14, %v1909_v55 }
0x118a   :  { %v2376_v35 = vpop.permute.xlu2 %2375 }
0x1192   :  { %v2223_v48 = vpop.permute.xlu2 %2222 }
0x119a   :  { %v2370_v51 = vpop.permute.xlu2 %2369 }
0x11a2   :  { %v2372_v57 = vpop.permute.xlu2 %2371 }
0x11fb   :  { %v1947_v59 = vpop.f32.mrf.mxu1 }
0x11fc   :  { %v1948_v61 = vadd.f32 %v4806_v60, %v1947_v59 }
0x11fe   :  { %v1953_v29 = vsel %vm249_vm15, %v1948_v61, -inf }
0x11ff   :  { %1954 = vmax.xlane.f32.xlu1 %v1953_v29 }
0x1203   :  { %v1950_v3 = vpop.f32.mrf.mxu1 }
0x1204   :  { %v1951_v40 = vadd.f32 %v4813_v38, %v1950_v3 }
0x1206   :  { %v1956_v58 = vsel %vm249_vm15, %v1951_v40, -inf }
0x1207   :  { %1957 = vmax.xlane.f32.xlu1 %v1956_v58 }
0x1272   :  { %v1955_v6 = vpop.xlane.xlu1 %1954 }
0x1273   :  { %v1959_v28 = vsub.f32 %v1948_v61, %v1955_v6 }
0x1275   :  { %v1961_v49 = vmul.f32 1.442695, %v1959_v28 }
0x1277   :  { %4025 = vpow2.f32 %v1961_v49 }
0x127a   :  { %v1958_v8 = vpop.xlane.xlu1 %1957 }
0x127b   :  { %v1960_v34 = vsub.f32 %v1951_v40, %v1958_v8 }
0x127d   :  { %v4026_v11 = vpop.eup %4025  ;;  %v1963_v63 = vmul.f32 1.442695, %v1960_v34 }
0x127e   :  { %v1965_v53 = vsel %vm249_vm15, %v4026_v11, 0.0 }
0x127f   :  { %4027 = vpow2.f32 %v1963_v63  ;;  %1966 = vadd.xlane.f32.xlu0 %v1965_v53 }
0x1285   :  { %v4028_v33 = vpop.eup %4027 }
0x1286   :  { %v1968_v13 = vsel %vm249_vm15, %v4028_v33, 0.0 }
0x1287   :  { %1969 = vadd.xlane.f32.xlu1 %v1968_v13 }
0x1293   :  { %2220 = vrot.lane.b32.xlu0 %v1906_v18, %s5309_s23 }
0x12a0   :  { %2042 = vrot.lane.b32.xlu1 %v1909_v55, %s5308_s21 }
0x12a8   :  { %2038 = vrot.lane.b32.xlu1 %v1909_v55, %s5313_s30 }
0x12b0   :  { %2373 = vrot.lane.b32.xlu1 %v1906_v18, %s5310_s24 }
0x12b8   :  { %2216 = vrot.lane.b32.xlu1 %v1906_v18, %s5306_s3 }
0x12c0   :  { %2218 = vrot.lane.b32.xlu1 %v1909_v55, %s5306_s3 }
0x12f2   :  { %v1967_v15 = vpop.xlane.xlu0 %1966 }
0x12f3   :  { %4029 = vrcp.f32 %v1967_v15  ;;  %v1982_v21 = vand.u32 2147483648, %v1967_v15  ;;  %v1980_v23 = vand.u32 2147483647, %v1967_v15  ;;  %vm1976_vm13 = vweird.f32 %v1967_v15 }
0x12f5   :  { %v1983_v24 = vor.u32 1.1754944e-38, %v1982_v21  ;;  %vm1981_vm2 = vcmp.eq.f32.partialorder %v1980_v23, 8.507059e+37 }
0x12f9   :  { %v4030_v16 = vpop.eup %4029 }
0x12fa   :  { %v1972_v0 = vmul.f32 %v4030_v16, %v1967_v15  ;;  %v1970_v17 = vpop.xlane.xlu1 %1969  ;;  %vm1977_vm12 = vweird.f32 %v4030_v16 }
0x12fb   :  { %4031 = vrcp.f32 %v1970_v17  ;;  %vm1978_vm1 = vmor %vm1976_vm13, %vm1977_vm12  ;;  %v1997_v32 = vand.u32 2147483648, %v1970_v17  ;;  %v1995_v39 = vand.u32 2147483647, %v1970_v17  ;;  %vm1991_vm4 = vweird.f32 %v1970_v17 }
0x12fc   :  { %v1973_v20 = vsub.f32 1.0, %v1972_v0 }
0x12fd   :  { %v1998_v45 = vor.u32 1.1754944e-38, %v1997_v32  ;;  %vm1996_vm6 = vcmp.eq.f32.partialorder %v1995_v39, 8.507059e+37 }
0x12fe   :  { %v1974_v2 = vmul.f32 %v4030_v16, %v1973_v20 }
0x1300   :  { %v1975_v7 = vadd.f32 %v4030_v16, %v1974_v2 }
0x1301   :  { %v4032_v12 = vpop.eup %4031 }
0x1302   :  { %v1979_v26 = vsel %vm1978_vm1, %v4030_v16, %v1975_v7  ;;  %v1987_v27 = vmul.f32 %v4032_v12, %v1970_v17  ;;  %vm1992_vm3 = vweird.f32 %v4032_v12 }
0x1303   :  { %v1984_v1 = vsel %vm1981_vm2, %v1983_v24, %v1979_v26  ;;  %vm1993_vm5 = vmor %vm1991_vm4, %vm1992_vm3 }
0x1304   :  { %v1988_v30 = vsub.f32 1.0, %v1987_v27  ;;  %v1985_v31 = vmul.f32 %v4026_v11, %v1984_v1 }
0x1305   :  { %v2221_v9 = vpop.permute.xlu0 %2220 }
0x1306   :  { %v1989_v37 = vmul.f32 %v4032_v12, %v1988_v30  ;;  %3694 = vmatmul.msk.f32.vlgmr.msra.gmra.mxu3 %vm249_vm15, %v1985_v31 }
0x1307   :  { %3714 = vmatpush.xpose.msk.msra.mxu3 %vm217_vm14, %v2376_v35 }
0x1308   :  { %v1990_v43 = vadd.f32 %v4032_v12, %v1989_v37 }
0x130a   :  { %v1994_v41 = vsel %vm1993_vm5, %v4032_v12, %v1990_v43 }
0x130b   :  { %v1999_v46 = vsel %vm1996_vm6, %v1998_v45, %v1994_v41 }
0x130c   :  { %v2000_v47 = vmul.f32 %v4028_v33, %v1999_v46 }
0x130e   :  { %3695 = vmatmul.msk.f32.gmra.mxu3 %vm249_vm15, %v2000_v47 }
0x1312   :  { %v2043_v4 = vpop.permute.xlu1 %2042 }
0x1313   :  { %3696 = vmatpush.xpose.msk.msra.mxu2 %vm217_vm14, %v2043_v4 }
0x1317   :  { %3697 = vmatpush.xpose.msk.msra.mxu2 %vm217_vm14, %v2041_v5 }
0x131a   :  { %v2039_v14 = vpop.permute.xlu1 %2038  ;;  %3698 = vmatmul.msk.f32.vlgmr.msra.gmra.mxu2 %vm217_vm14, %v2037_v19 }
0x131b   :  { %3706 = vmatpush.xpose.msk.msrb.mxu2 %vm217_vm14, %v2223_v48 }
0x131f   :  { %3707 = vmatpush.xpose.msk.msrb.mxu2 %vm217_vm14, %v2221_v9 }
0x1322   :  { %v2374_v52 = vpop.permute.xlu1 %2373  ;;  %3699 = vmatmul.msk.f32.gmra.mxu2 %vm217_vm14, %v2039_v14 }
0x1323   :  { %3715 = vmatpush.xpose.msk.msra.mxu3 %vm217_vm14, %v2374_v52 }
0x132a   :  { %v2217_v22 = vpop.permute.xlu1 %2216 }
0x132b   :  { %3708 = vmatmul.msk.f32.vlgmr.msrb.gmra.mxu2 %vm217_vm14, %v2217_v22 }
0x1332   :  { %v2219_v18 = vpop.permute.xlu1 %2218 }
0x1333   :  { %3709 = vmatmul.msk.f32.gmra.mxu2 %vm217_vm14, %v2219_v18 }
0x1389   :  { %v2030_v54 = vpop.f32.mrf.mxu3 }
0x138a   :  { %3704 = vmatmul.msk.f32.vlgmr.msrb.gmra.mxu3 %vm217_vm14, %v2030_v54 }
0x1391   :  { %v2033_v55 = vpop.f32.mrf.mxu3 }
0x1392   :  { %3705 = vmatmul.msk.f32.gmra.mxu3 %vm217_vm14, %v2033_v55 }
0x139a   :  { %3716 = vmatmul.msk.f32.vlgmr.msra.gmra.mxu3 %vm217_vm14, %v2370_v51 }
0x139d   :  { %v2069_v42 = vpop.f32.mrf.mxu2 }
0x139e   :  { %v2070_v56 = vadd.f32 %v4806_v60, %v2069_v42 }
0x13a0   :  { %v2075_v25 = vsel %vm249_vm15, %v2070_v56, -inf }
0x13a1   :  { %2076 = vmax.xlane.f32.xlu2 %v2075_v25 }
0x13a2   :  { %3717 = vmatmul.msk.f32.gmra.mxu3 %vm217_vm14, %v2372_v57 }
0x13a5   :  { %v2072_v59 = vpop.f32.mrf.mxu2 }
0x13a6   :  { %v2073_v61 = vadd.f32 %v4813_v38, %v2072_v59 }
0x13a8   :  { %v2078_v29 = vsel %vm249_vm15, %v2073_v61, -inf }
0x13a9   :  { %2079 = vmax.xlane.f32.xlu0 %v2078_v29 }
0x13ae   :  { %v2249_v3 = vpop.f32.mrf.mxu2 }
0x13af   :  { %v2250_v40 = vadd.f32 %v4806_v60, %v2249_v3 }
0x13b1   :  { %v2255_v58 = vsel %vm249_vm15, %v2250_v40, -inf }
0x13b2   :  { %2256 = vmax.xlane.f32.xlu2 %v2255_v58 }
0x13b6   :  { %v2252_v6 = vpop.f32.mrf.mxu2 }
0x13b7   :  { %v2253_v28 = vadd.f32 %v4813_v38, %v2252_v6 }
0x13b9   :  { %v2258_v49 = vsel %vm249_vm15, %v2253_v28, -inf }
0x13ba   :  { %2259 = vmax.xlane.f32.xlu2 %v2258_v49 }
0x140d   :  { %v4852_v8 = vpop.f32.mrf.mxu3 }
0x1414   :  { %v2077_v34 = vpop.xlane.xlu2 %2076 }
0x1415   :  { %v4854_v11 = vpop.f32.mrf.mxu3  ;;  %v2081_v63 = vsub.f32 %v2070_v56, %v2077_v34 }
0x1417   :  { %v2083_v53 = vmul.f32 1.442695, %v2081_v63 }
0x1419   :  { %4033 = vpow2.f32 %v2083_v53 }
0x141c   :  { %v2080_v33 = vpop.xlane.xlu0 %2079 }
0x141d   :  { %v2402_v13 = vpop.f32.mrf.mxu3  ;;  %v2082_v5 = vsub.f32 %v2073_v61, %v2080_v33 }
0x141e   :  { %v2403_v62 = vadd.f32 %v4806_v60, %v2402_v13 }
0x141f   :  { %v2085_v16 = vmul.f32 1.442695, %v2082_v5  ;;  %v4858_v0 = vpop.eup %4033 }
0x1420   :  { %v2408_v15 = vsel %vm249_vm15, %v2403_v62, -inf  ;;  %v2087_v60 = vsel %vm249_vm15, %v4858_v0, 0.0 }
0x1421   :  { %2409 = vmax.xlane.f32.xlu1 %v2408_v15  ;;  %4035 = vpow2.f32 %v2085_v16 }
0x1425   :  { %v2257_v17 = vpop.xlane.xlu2 %2256  ;;  %v2405_v19 = vpop.f32.mrf.mxu3 }
0x1426   :  { %v2261_v20 = vsub.f32 %v2250_v40, %v2257_v17  ;;  %v2406_v21 = vadd.f32 %v4813_v38, %v2405_v19 }
0x1427   :  { %v4864_v7 = vpop.eup %4035 }
0x1428   :  { %v2263_v2 = vmul.f32 1.442695, %v2261_v20  ;;  %v2411_v23 = vsel %vm249_vm15, %v2406_v21, -inf  ;;  %v2090_v38 = vsel %vm249_vm15, %v4864_v7, 0.0 }
0x1429   :  { %2412 = vmax.xlane.f32.xlu0 %v2411_v23  ;;  %2088 = vadd.xlane.f32.xlu1 %v2087_v60 }
0x142a   :  { %4037 = vpow2.f32 %v2263_v2 }
0x142d   :  { %v2260_v12 = vpop.xlane.xlu2 %2259 }
0x142e   :  { %v2262_v24 = vsub.f32 %v2253_v28, %v2260_v12 }
0x1430   :  { %v4866_v26 = vpop.eup %4037  ;;  %v2265_v27 = vmul.f32 1.442695, %v2262_v24 }
0x1431   :  { %2091 = vadd.xlane.f32.xlu0 %v2090_v38  ;;  %v2267_v1 = vsel %vm249_vm15, %v4866_v26, 0.0 }
0x1432   :  { %4039 = vpow2.f32 %v2265_v27  ;;  %2268 = vadd.xlane.f32.xlu1 %v2267_v1 }
0x1438   :  { %v4872_v30 = vpop.eup %4039 }
0x1439   :  { %v2270_v31 = vsel %vm249_vm15, %v4872_v30, 0.0 }
0x143a   :  { %2271 = vadd.xlane.f32.xlu1 %v2270_v31 }
0x1445   :  { %3865 = vrot.lane.b32.xlu0 %v4789_v50, %s5314_s0 }
0x1453   :  { %3875 = vrot.lane.b32.xlu1 %v4789_v50, %s5315_s4  ;;  %s5320_s4 = sld [smem:[#allocation11_spill]] }
0x1494   :  { %v2410_v32 = vpop.xlane.xlu1 %2409 }
0x1495   :  { %v2414_v35 = vsub.f32 %v2403_v62, %v2410_v32 }
0x1497   :  { %v2416_v37 = vmul.f32 1.442695, %v2414_v35 }
0x1499   :  { %4041 = vpow2.f32 %v2416_v37 }
0x149c   :  { %v2413_v39 = vpop.xlane.xlu0 %2412  ;;  %v2089_v43 = vpop.xlane.xlu1 %2088 }
0x149d   :  { %v2415_v45 = vsub.f32 %v2406_v21, %v2413_v39  ;;  %4043 = vrcp.f32 %v2089_v43  ;;  %v2104_v59 = vand.u32 2147483648, %v2089_v43  ;;  %vm2098_vm8 = vweird.f32 %v2089_v43 }
0x149e   :  { %v2102_v61 = vand.u32 2147483647, %v2089_v43 }
0x149f   :  { %v4880_v41 = vpop.eup %4041  ;;  %v2418_v46 = vmul.f32 1.442695, %v2415_v45  ;;  %v2105_v58 = vor.u32 1.1754944e-38, %v2104_v59 }
0x14a0   :  { %v2420_v47 = vsel %vm249_vm15, %v4880_v41, 0.0  ;;  %vm2103_vm10 = vcmp.eq.f32.partialorder %v2102_v61, 8.507059e+37 }
0x14a1   :  { %4045 = vpow2.f32 %v2418_v46  ;;  %2421 = vadd.xlane.f32.xlu2 %v2420_v47 }
0x14a3   :  { %v4044_v4 = vpop.eup %4043 }
0x14a4   :  { %v2092_v48 = vpop.xlane.xlu0 %2091  ;;  %v2094_v14 = vmul.f32 %v4044_v4, %v2089_v43  ;;  %vm2099_vm7 = vweird.f32 %v4044_v4 }
0x14a5   :  { %4047 = vrcp.f32 %v2092_v48  ;;  %v2269_v52 = vpop.xlane.xlu1 %2268  ;;  %vm2100_vm9 = vmor %vm2098_vm8, %vm2099_vm7  ;;  %v2119_v33 = vand.u32 2147483648, %v2092_v48  ;;  %vm2113_vm13 = vweird.f32 %v2092_v48  ;;  %v2117_v5 = vand.u32 2147483647, %v2092_v48 }
0x14a6   :  { %v2095_v18 = vsub.f32 1.0, %v2094_v14  ;;  %4049 = vrcp.f32 %v2269_v52  ;;  %v2284_v23 = vand.u32 2147483648, %v2269_v52  ;;  %vm2278_vm4 = vweird.f32 %v2269_v52 }
0x14a7   :  { %v4884_v9 = vpop.eup %4045  ;;  %v2120_v19 = vor.u32 1.1754944e-38, %v2119_v33  ;;  %vm2118_vm2 = vcmp.eq.f32.partialorder %v2117_v5, 8.507059e+37 }
0x14a8   :  { %v2423_v22 = vsel %vm249_vm15, %v4884_v9, 0.0  ;;  %v2096_v55 = vmul.f32 %v4044_v4, %v2095_v18  ;;  %v2285_v38 = vor.u32 1.1754944e-38, %v2284_v23 }
0x14a9   :  { %2424 = vadd.xlane.f32.xlu2 %v2423_v22 }
0x14aa   :  { %v2097_v42 = vadd.f32 %v4044_v4, %v2096_v55 }
0x14ab   :  { %v4048_v54 = vpop.eup %4047 }
0x14ac   :  { %v2109_v51 = vmul.f32 %v4048_v54, %v2092_v48  ;;  %v4050_v57 = vpop.eup %4049  ;;  %v2101_v29 = vsel %vm2100_vm9, %v4044_v4, %v2097_v42  ;;  %vm2114_vm12 = vweird.f32 %v4048_v54  ;;  %v3687_v4 = vld [vmem:[%s5257_s8 + $0x28] sm:$0xff] }
0x14ad   :  { %v4888_v25 = vpop.xlane.xlu1 %2271  ;;  %v2274_v40 = vmul.f32 %v4050_v57, %v2269_v52  ;;  %v2106_v28 = vsel %vm2103_vm10, %v2105_v58, %v2101_v29  ;;  %vm2115_vm1 = vmor %vm2113_vm13, %vm2114_vm12  ;;  %vm2279_vm3 = vweird.f32 %v4050_v57  ;;  %2179 = vmatpush.msrb.mxu1 %v3687_v4 }
0x14ae   :  { %v2110_v56 = vsub.f32 1.0, %v2109_v51  ;;  %4051 = vrcp.f32 %v4888_v25  ;;  %v2107_v62 = vmul.f32 %v4858_v0, %v2106_v28  ;;  %v2282_v0 = vand.u32 2147483647, %v2269_v52  ;;  %vm2280_vm5 = vmor %vm2278_vm4, %vm2279_vm3 }
0x14af   :  { %v2275_v34 = vsub.f32 1.0, %v2274_v40  ;;  %vm2293_vm8 = vweird.f32 %v4888_v25  ;;  %v2297_v37 = vand.u32 2147483647, %v4888_v25 }
0x14b0   :  { %v2111_v3 = vmul.f32 %v4048_v54, %v2110_v56  ;;  %vm2283_vm6 = vcmp.eq.f32.partialorder %v2282_v0, 8.507059e+37 }
0x14b1   :  { %v2276_v15 = vmul.f32 %v4050_v57, %v2275_v34  ;;  %vm2298_vm10 = vcmp.eq.f32.partialorder %v2297_v37, 8.507059e+37 }
0x14b2   :  { %v2112_v63 = vadd.f32 %v4048_v54, %v2111_v3 }
0x14b3   :  { %v2277_v21 = vadd.f32 %v4050_v57, %v2276_v15 }
0x14b4   :  { %v4052_v53 = vpop.eup %4051  ;;  %v2116_v17 = vsel %vm2115_vm1, %v4048_v54, %v2112_v63 }
0x14b5   :  { %v2289_v16 = vmul.f32 %v4052_v53, %v4888_v25  ;;  %v2121_v20 = vsel %vm2118_vm2, %v2120_v19, %v2116_v17  ;;  %v2281_v12 = vsel %vm2280_vm5, %v4050_v57, %v2277_v21  ;;  %vm2294_vm7 = vweird.f32 %v4052_v53 }
0x14b6   :  { %v2122_v60 = vmul.f32 %v4864_v7, %v2121_v20  ;;  %v2286_v31 = vsel %vm2283_vm6, %v2285_v38, %v2281_v12  ;;  %vm2295_vm9 = vmor %vm2293_vm8, %vm2294_vm7 }
0x14b7   :  { %v3866_v6 = vpop.permute.xlu0 %3865  ;;  %v2290_v2 = vsub.f32 1.0, %v2289_v16  ;;  %v2287_v7 = vmul.f32 %v4866_v26, %v2286_v31 }
0x14b8   :  { %v3867_v49 = vunpack.i.l.bf16 %v3866_v6  ;;  %v3868_v13 = vunpack.i.h.bf16 %v3866_v6 }
0x14b9   :  { %v2291_v24 = vmul.f32 %v4052_v53, %v2290_v2 }
0x14ba   :  { %2149 = vmatpush.msra.mxu0 %v3867_v49  ;;  %v3688_v49 = vld [vmem:[%s5257_s8 + $0x30] sm:$0xff] }
0x14bb   :  { %v2292_v35 = vadd.f32 %v4052_v53, %v2291_v24  ;;  %2359 = vmatpush.msra.mxu1 %v3688_v49 }
0x14bc   :  { %2150 = vmatpush.msra.mxu0 %v3868_v13 }
0x14bd   :  { %3700 = vmatmul.msk.f32.vlgmr.msra.gmra.mxu0 %vm249_vm15, %v2107_v62  ;;  %v2296_v39 = vsel %vm2295_vm9, %v4052_v53, %v2292_v35 }
0x14c1   :  { %3870 = vrot.lane.b32.xlu2 %v4789_v50, %s5316_s26  ;;  %v2299_v50 = vand.u32 2147483648, %v4888_v25  ;;  %s3587_s26 = sshll.u32 %s5320_s4, 4  ;;  %s3588_s26 = int_to_ptr.hbm [resolvable:$true] %s3587_s26 }
0x14c3   :  { %v2300_v43 = vor.u32 1.1754944e-38, %v2299_v50 }
0x14c5   :  { %3701 = vmatmul.msk.f32.gmra.mxu0 %vm249_vm15, %v2122_v60  ;;  %v3876_v27 = vpop.permute.xlu1 %3875  ;;  %v2301_v45 = vsel %vm2298_vm10, %v2300_v43, %v2296_v39  ;;  %v3915_v60 = vld [vmem:[%s5258_s9 + $0x1] ss:$0 sm:$0xff] }
0x14c6   :  { %v3877_v1 = vunpack.i.l.bf16 %v3876_v27  ;;  %v3878_v32 = vunpack.i.h.bf16 %v3876_v27  ;;  %v2302_v46 = vmul.f32 %v4872_v30, %v2301_v45 }
0x14c8   :  { %2329 = vmatpush.msrb.mxu0 %v3877_v1 }
0x14ca   :  { %2330 = vmatpush.msrb.mxu0 %v3878_v32 }
0x14cd   :  { %3710 = vmatmul.msk.f32.vlgmr.msrb.gmra.mxu0 %vm249_vm15, %v2287_v7 }
0x14d5   :  { %3711 = vmatmul.msk.f32.gmra.mxu0 %vm249_vm15, %v2302_v46 }
0x1514   :  { %v2422_v47 = vpop.xlane.xlu2 %2421 }
0x1515   :  { %4053 = vrcp.f32 %v2422_v47  ;;  %v2437_v22 = vand.u32 2147483648, %v2422_v47  ;;  %v2435_v54 = vand.u32 2147483647, %v2422_v47  ;;  %vm2431_vm13 = vweird.f32 %v2422_v47 }
0x1517   :  { %v2438_v51 = vor.u32 1.1754944e-38, %v2437_v22  ;;  %vm2436_vm2 = vcmp.eq.f32.partialorder %v2435_v54, 8.507059e+37  ;;  %v4115_v22 = vld [vmem:[%s5304_s28] sm:$0xff]  ;;  %v3728_v54 = vld [vmem:[%s5259_s10 + $0x38] sm:$0xff] }
0x151b   :  { %v4054_v26 = vpop.eup %4053 }
0x151c   :  { %v2427_v48 = vmul.f32 %v4054_v26, %v2422_v47  ;;  %v2425_v14 = vpop.xlane.xlu2 %2424  ;;  %vm2432_vm12 = vweird.f32 %v4054_v26 }
0x151d   :  { %4055 = vrcp.f32 %v2425_v14  ;;  %vm2433_vm1 = vmor %vm2431_vm13, %vm2432_vm12  ;;  %v2452_v29 = vand.u32 2147483648, %v2425_v14  ;;  %v2450_v6 = vand.u32 2147483647, %v2425_v14  ;;  %vm2446_vm4 = vweird.f32 %v2425_v14 }
0x151e   :  { %v2428_v52 = vsub.f32 1.0, %v2427_v48  ;;  %v3734_v48 = vld [vmem:[%s5261_s12 + $0x30] sm:$0xff] }
0x151f   :  { %v2453_v34 = vor.u32 1.1754944e-38, %v2452_v29  ;;  %vm2451_vm6 = vcmp.eq.f32.partialorder %v2450_v6, 8.507059e+37 }
0x1520   :  { %v2429_v18 = vmul.f32 %v4054_v26, %v2428_v52  ;;  %v3732_v52 = vld [vmem:[%s5261_s12 + $0x20] sm:$0xff] }
0x1522   :  { %v2430_v55 = vadd.f32 %v4054_v26, %v2429_v18  ;;  %v4116_v18 = vld [vmem:[%s5304_s28 + $0x8] sm:$0xff] }
0x1523   :  { %v4056_v30 = vpop.eup %4055 }
0x1524   :  { %v2434_v42 = vsel %vm2433_vm1, %v4054_v26, %v2430_v55  ;;  %v2442_v56 = vmul.f32 %v4056_v30, %v2425_v14  ;;  %v3871_v25 = vpop.permute.xlu2 %3870  ;;  %vm2447_vm3 = vweird.f32 %v4056_v30  ;;  %v3735_v26 = vld [vmem:[%s5261_s12 + $0x38] sm:$0xff]  ;;  %v3733_v14 = vld [vmem:[%s5261_s12 + $0x28] sm:$0xff]  ;;  %v3727_v55 = vld [vmem:[%s5259_s10 + $0x30] sm:$0xff] }
0x1525   :  { %v2439_v57 = vsel %vm2436_vm2, %v2438_v51, %v2434_v42  ;;  %v3872_v59 = vunpack.i.l.bf16 %v3871_v25  ;;  %v3873_v3 = vunpack.i.h.bf16 %v3871_v25  ;;  %vm2448_vm5 = vmor %vm2446_vm4, %vm2447_vm3  ;;  %2682 = vmatpush.msrb.mxu3 %v3735_v26  ;;  %v3726_v51 = vld [vmem:[%s5259_s10 + $0x28] sm:$0xff] }
0x1526   :  { %v2443_v61 = vsub.f32 1.0, %v2442_v56  ;;  %v2440_v58 = vmul.f32 %v4880_v41, %v2439_v57  ;;  %v3689_v41 = vld [vmem:[%s5257_s8 + $0x38] sm:$0xff]  ;;  %v3725_v56 = vld [vmem:[%s5259_s10 + $0x20] sm:$0xff] }
0x1527   :  { %2482 = vmatpush.msra.mxu2 %v3872_v59  ;;  %2512 = vmatpush.msra.mxu0 %v3689_v41 }
0x1528   :  { %v2444_v40 = vmul.f32 %v4056_v30, %v2443_v61  ;;  %2683 = vmatpush.msrb.mxu3 %v3734_v48 }
0x1529   :  { %2483 = vmatpush.msra.mxu2 %v3873_v3 }
0x152a   :  { %3718 = vmatmul.msk.f32.vlgmr.msra.gmra.mxu2 %vm249_vm15, %v2440_v58  ;;  %v2445_v28 = vadd.f32 %v4056_v30, %v2444_v40  ;;  %2684 = vmatpush.msrb.mxu3 %v3733_v14 }
0x152c   :  { %v2449_v63 = vsel %vm2448_vm5, %v4056_v30, %v2445_v28  ;;  %2685 = vmatpush.msrb.mxu3 %v3732_v52 }
0x152d   :  { %v2454_v53 = vsel %vm2451_vm6, %v2453_v34, %v2449_v63  ;;  %3737 = vmatmul.msk.f32.vlgmr.msrb.gmra.mxu3 %vm76_vm0, %v4115_v22 }
0x152e   :  { %v2455_v33 = vmul.f32 %v4884_v9, %v2454_v53 }
0x1532   :  { %3719 = vmatmul.msk.f32.gmra.mxu2 %vm249_vm15, %v2455_v33 }
0x1535   :  { %3738 = vmatmul.msk.f32.gmra.mxu3 %vm76_vm0, %v4116_v18  ;;  %v3918_v18 = vld [vmem:[%s5262_s13 + $0x1] ss:$0 sm:$0xff]  ;;  %s4158_s13 = smov 128  }
0x153a   :  { %v2152_v13 = vpop.f32.mrf.mxu0 }
0x153b   :  { %3702 = vmatmul.msk.f32.vlgmr.msrb.gmra.mxu1 %vm217_vm14, %v2152_v13 }
0x153c   :  { %2649 = vmatpush.msrb.mxu1 %v3728_v54 }
0x153e   :  { %2650 = vmatpush.msrb.mxu1 %v3727_v55 }
0x1540   :  { %2651 = vmatpush.msrb.mxu1 %v3726_v51 }
0x1542   :  { %v2155_v62 = vpop.f32.mrf.mxu0  ;;  %2652 = vmatpush.msrb.mxu1 %v3725_v56 }
0x1543   :  { %3703 = vmatmul.msk.f32.gmra.mxu1 %vm217_vm14, %v2155_v62 }
0x154a   :  { %v2332_v5 = vpop.f32.mrf.mxu0 }
0x154b   :  { %3712 = vmatmul.msk.f32.vlgmr.msra.gmra.mxu1 %vm217_vm14, %v2332_v5 }
0x1552   :  { %v2335_v15 = vpop.f32.mrf.mxu0 }
0x1553   :  { %3713 = vmatmul.msk.f32.gmra.mxu1 %vm217_vm14, %v2335_v15 }
0x15ad   :  { %v2485_v9 = vpop.f32.mrf.mxu2 }
0x15ae   :  { %3720 = vmatmul.msk.f32.vlgmr.msra.gmra.mxu0 %vm217_vm14, %v2485_v9 }
0x15b0   :  { %v2687_v22 = vpop.f32.mrf.mxu3 }
0x15b5   :  { %v2488_v16 = vpop.f32.mrf.mxu2 }
0x15b6   :  { %3721 = vmatmul.msk.f32.gmra.mxu0 %vm217_vm14, %v2488_v16 }
0x15b8   :  { %v2181_v17 = vpop.f32.mrf.mxu1  ;;  %v2690_v54 = vpop.f32.mrf.mxu3 }
0x15b9   :  { %v2211_v21 = vadd.f32 %v4852_v8, %v2181_v17  ;;  %v2691_v55 = vadd.f32 %v3918_v18, %v2690_v54 }
0x15bb   :  { %3743 = vmatpush.xpose.msk.msrb.mxu2 %vm217_vm14, %v2691_v55 }
0x15c0   :  { %v2184_v19 = vpop.f32.mrf.mxu1 }
0x15c1   :  { %v2214_v27 = vadd.f32 %v4854_v11, %v2184_v19 }
0x15c8   :  { %v2361_v20 = vpop.f32.mrf.mxu1 }
0x15c9   :  { %v2367_v2 = vadd.f32 %v2361_v20, %v2211_v21 }
0x15d0   :  { %v2364_v24 = vpop.f32.mrf.mxu1 }
0x15d1   :  { %v2368_v1 = vadd.f32 %v2364_v24, %v2214_v27 }
0x162b   :  { %v2514_v23 = vpop.f32.mrf.mxu0 }
0x162c   :  { %v2520_v0 = vadd.f32 %v2514_v23, %v2367_v2 }
0x162e   :  { %v2522_v12 = vadd.f32 %v2520_v0, %v4739_v36 }
0x1630   :  { %v4930_v38 = vadd.f32 %v3915_v60, %v2522_v12 }
0x1632   :  { %v2535_v31 = vsel %vm76_vm0, %v4930_v38, 0.0 }
0x1633   :  { %2536 = vadd.xlane.f32.xlu0 %v2535_v31  ;;  %v2517_v8 = vpop.f32.mrf.mxu0  ;;  %v3916_v31 = vld [vmem:[%s5302_s1 + $0x4] ss:$0 sm:$0xff] }
0x1634   :  { %v2521_v32 = vadd.f32 %v2517_v8, %v2368_v1 }
0x1636   :  { %v2523_v35 = vadd.f32 %v2521_v32, %v4744_v44 }
0x1638   :  { %v4935_v50 = vadd.f32 %v3915_v60, %v2523_v35 }
0x163a   :  { %v2538_v7 = vsel %vm76_vm0, %v4935_v50, 0.0 }
0x163b   :  { %2539 = vadd.xlane.f32.xlu2 %v2538_v7  ;;  %v3917_v7 = vld [vmem:[%s5254_s5 + $0x4] ss:$0 sm:$0xff] }
0x16a6   :  { %v2537_v36 = vpop.xlane.xlu0 %2536 }
0x16a7   :  { %v2541_v11 = vmul.f32 %v2537_v36, %v4279_v10 }
0x16a9   :  { %v4941_v37 = vsub.f32 %v4930_v38, %v2541_v11 }
0x16ab   :  { %v2545_v39 = vmul.f32 %v4941_v37, %v4941_v37 }
0x16ad   :  { %v2547_v43 = vsel %vm76_vm0, %v2545_v39, 0.0 }
0x16ae   :  { %2548 = vadd.xlane.f32.xlu1 %v2547_v43  ;;  %v2540_v45 = vpop.xlane.xlu2 %2539 }
0x16af   :  { %v2542_v44 = vmul.f32 %v2540_v45, %v4279_v10 }
0x16b1   :  { %v4948_v46 = vsub.f32 %v4935_v50, %v2542_v44 }
0x16b3   :  { %v2546_v47 = vmul.f32 %v4948_v46, %v4948_v46 }
0x16b5   :  { %v2550_v4 = vsel %vm76_vm0, %v2546_v47, 0.0 }
0x16b6   :  { %2551 = vadd.xlane.f32.xlu0 %v2550_v4 }
0x1721   :  { %v2549_v30 = vpop.xlane.xlu1 %2548 }
0x1722   :  { %v2553_v42 = vmul.f32 0.032258064, %v2549_v30  ;;  %v2688_v30 = vadd.f32 %v3918_v18, %v2687_v22 }
0x1724   :  { %4057 = vrsqrt.f32 %v2553_v42  ;;  %vm2562_vm7 = vcmp.eq.f32.partialorder %v2553_v42, inf  ;;  %v2565_v63 = vand.u32 2147483648, %v2553_v42  ;;  %vm2564_vm8 = vcmp.eq.f32.partialorder %v2553_v42, 0.0  ;;  %3744 = vmatpush.xpose.msk.msrb.mxu2 %vm217_vm14, %v2688_v30 }
0x1729   :  { %v2552_v25 = vpop.xlane.xlu0 %2551 }
0x172a   :  { %v4058_v57 = vpop.eup %4057  ;;  %v2554_v59 = vmul.f32 0.032258064, %v2552_v25 }
0x172b   :  { %v2556_v61 = vmul.f32 %v4058_v57, %v2553_v42 }
0x172c   :  { %4059 = vrsqrt.f32 %v2554_v59  ;;  %vm2574_vm9 = vcmp.eq.f32.partialorder %v2554_v59, inf  ;;  %v2577_v9 = vand.u32 2147483648, %v2554_v59  ;;  %vm2576_vm10 = vcmp.eq.f32.partialorder %v2554_v59, 0.0 }
0x172d   :  { %v2557_v29 = vmul.f32 %v4058_v57, %v2556_v61 }
0x172f   :  { %v2558_v3 = vmul.f32 0.5, %v2557_v29 }
0x1731   :  { %v2559_v40 = vsub.f32 1.5, %v2558_v3 }
0x1732   :  { %v4060_v58 = vpop.eup %4059 }
0x1733   :  { %v2560_v6 = vmul.f32 %v4058_v57, %v2559_v40  ;;  %v2568_v28 = vmul.f32 %v4060_v58, %v2554_v59  ;;  %v5015_v40 = vld [vmem:[%s5305_s22 + $0x8] sm:$0xff] }
0x1735   :  { %v2561_v49 = vmul.f32 %v2560_v6, %v2553_v42  ;;  %v2569_v34 = vmul.f32 %v4060_v58, %v2568_v28  ;;  %v5019_v28 = vpack.i.bf16 %v2688_v30, %v2691_v55 }
0x1737   :  { %v2563_v53 = vsel %vm2562_vm7, %v2553_v42, %v2561_v49  ;;  %v2570_v33 = vmul.f32 0.5, %v2569_v34 }
0x1738   :  { %v2566_v41 = vsel %vm2564_vm8, %v2565_v63, %v2563_v53 }
0x1739   :  { %v2579_v13 = vadd.f32 1e-06, %v2566_v41  ;;  %v2571_v62 = vsub.f32 1.5, %v2570_v33 }
0x173b   :  { %4061 = vrcp.f32 %v2579_v13  ;;  %v2572_v5 = vmul.f32 %v4060_v58, %v2571_v62  ;;  %v2592_v23 = vand.u32 2147483648, %v2579_v13  ;;  %v2590_v60 = vand.u32 2147483647, %v2579_v13 }
0x173c   :  { %vm2586_vm13 = vweird.f32 %v2579_v13 }
0x173d   :  { %v2573_v15 = vmul.f32 %v2572_v5, %v2554_v59  ;;  %v2593_v27 = vor.u32 1.1754944e-38, %v2592_v23  ;;  %vm2591_vm2 = vcmp.eq.f32.partialorder %v2590_v60, 8.507059e+37 }
0x173f   :  { %v2575_v16 = vsel %vm2574_vm9, %v2554_v59, %v2573_v15  ;;  %v5008_v59 = vld [vmem:[%s5305_s22] sm:$0xff] }
0x1740   :  { %v2578_v17 = vsel %vm2576_vm10, %v2577_v9, %v2575_v16 }
0x1741   :  { %v4062_v19 = vpop.eup %4061  ;;  %v2580_v20 = vadd.f32 1e-06, %v2578_v17 }
0x1742   :  { %v2582_v21 = vmul.f32 %v4062_v19, %v2579_v13  ;;  %vm2587_vm12 = vweird.f32 %v4062_v19 }
0x1743   :  { %4063 = vrcp.f32 %v2580_v20  ;;  %vm2588_vm1 = vmor %vm2586_vm13, %vm2587_vm12  ;;  %v2607_v11 = vand.u32 2147483648, %v2580_v20  ;;  %v2605_v45 = vand.u32 2147483647, %v2580_v20  ;;  %vm2601_vm4 = vweird.f32 %v2580_v20 }
0x1744   :  { %v2583_v2 = vsub.f32 1.0, %v2582_v21 }
0x1745   :  { %v2608_v4 = vor.u32 1.1754944e-38, %v2607_v11  ;;  %vm2606_vm6 = vcmp.eq.f32.partialorder %v2605_v45, 8.507059e+37 }
0x1746   :  { %v2584_v0 = vmul.f32 %v4062_v19, %v2583_v2 }
0x1748   :  { %v2585_v12 = vadd.f32 %v4062_v19, %v2584_v0 }
0x1749   :  { %v4064_v24 = vpop.eup %4063 }
0x174a   :  { %v2589_v1 = vsel %vm2588_vm1, %v4062_v19, %v2585_v12  ;;  %v2597_v8 = vmul.f32 %v4064_v24, %v2580_v20  ;;  %vm2602_vm3 = vweird.f32 %v4064_v24 }
0x174b   :  { %v2594_v32 = vsel %vm2591_vm2, %v2593_v27, %v2589_v1  ;;  %vm2603_vm5 = vmor %vm2601_vm4, %vm2602_vm3 }
0x174c   :  { %v2595_v35 = vmul.f32 %v2594_v32, %v4941_v37  ;;  %v2598_v36 = vsub.f32 1.0, %v2597_v8  ;;  %v3739_v32 = vld [vmem:[%s5263_s14 + $0x20] sm:$0xff] }
0x174e   :  { %v2614_v39 = vmul.f32 %v3916_v31, %v2595_v35  ;;  %v2599_v43 = vmul.f32 %v4064_v24, %v2598_v36 }
0x1750   :  { %v2619_v44 = vadd.f32 %v3917_v7, %v2614_v39  ;;  %v2600_v47 = vadd.f32 %v4064_v24, %v2599_v43 }
0x1752   :  { %3730 = vmatmul.msk.f32.vlgmr.msrb.gmra.mxu1 %vm76_vm0, %v2619_v44  ;;  %v2604_v26 = vsel %vm2603_vm5, %v4064_v24, %v2600_v47 }
0x1753   :  { %v2609_v37 = vsel %vm2606_vm6, %v2608_v4, %v2604_v26 }
0x1754   :  { %v2610_v48 = vmul.f32 %v2609_v37, %v4948_v46  ;;  %v3919_v46 = vld [vmem:[%s5260_s11 + $0x1] ss:$0 sm:$0xff] }
0x1756   :  { %v2615_v14 = vmul.f32 %v3916_v31, %v2610_v48 }
0x1758   :  { %v2620_v52 = vadd.f32 %v3917_v7, %v2615_v14 }
0x175a   :  { %3731 = vmatmul.msk.f32.gmra.mxu1 %vm76_vm0, %v2620_v52 }
0x17cf   :  { %v2654_v51 = vpop.f32.mrf.mxu1 }
0x17d0   :  { %v2655_v42 = vadd.f32 %v3919_v46, %v2654_v51 }
0x17d2   :  { %3745 = vmatmul.msk.f32.vlgmr.msrb.gmra.mxu2 %vm217_vm14, %v2655_v42 }
0x17d7   :  { %v2657_v56 = vpop.f32.mrf.mxu1 }
0x17d8   :  { %v2658_v25 = vadd.f32 %v3919_v46, %v2657_v56 }
0x17da   :  { %3746 = vmatmul.msk.f32.gmra.mxu2 %vm217_vm14, %v2658_v25 }
0x1855   :  { %v2727_v57 = vpop.f32.mrf.mxu2 }
0x1856   :  { %v2728_v61 = vadd.f32 %v5008_v59, %v2727_v57 }
0x1858   :  { %v2733_v29 = vsel %vm249_vm15, %v2728_v61, -inf }
0x1859   :  { %2734 = vmax.xlane.f32.xlu0 %v2733_v29 }
0x185d   :  { %v2730_v3 = vpop.f32.mrf.mxu2 }
0x185e   :  { %v2731_v58 = vadd.f32 %v5015_v40, %v2730_v3 }
0x1860   :  { %v2736_v6 = vsel %vm249_vm15, %v2731_v58, -inf }
0x1861   :  { %2737 = vmax.xlane.f32.xlu2 %v2736_v6 }
0x1879   :  { %3880 = vrot.lane.b32.xlu2 %v5019_v28, %s5311_s2 }
0x1881   :  { %2818 = vrot.lane.b32.xlu2 %v2658_v25, %s5313_s30 }
0x1889   :  { %2996 = vrot.lane.b32.xlu2 %v2655_v42, %s5306_s3 }
0x1891   :  { %2998 = vrot.lane.b32.xlu2 %v2658_v25, %s5306_s3 }
0x18cc   :  { %v2735_v49 = vpop.xlane.xlu0 %2734 }
0x18cd   :  { %v2739_v34 = vsub.f32 %v2728_v61, %v2735_v49 }
0x18cf   :  { %v2741_v63 = vmul.f32 1.442695, %v2739_v34 }
0x18d1   :  { %4065 = vpow2.f32 %v2741_v63 }
0x18d4   :  { %v2738_v53 = vpop.xlane.xlu2 %2737 }
0x18d5   :  { %v2740_v33 = vsub.f32 %v2731_v58, %v2738_v53 }
0x18d7   :  { %v4066_v41 = vpop.eup %4065  ;;  %v2743_v13 = vmul.f32 1.442695, %v2740_v33 }
0x18d8   :  { %v2745_v62 = vsel %vm249_vm15, %v4066_v41, 0.0 }
0x18d9   :  { %4067 = vpow2.f32 %v2743_v13  ;;  %2746 = vadd.xlane.f32.xlu0 %v2745_v62 }
0x18dc   :  { %v3881_v5 = vpop.permute.xlu2 %3880 }
0x18dd   :  { %v3882_v15 = vunpack.i.l.bf16 %v3881_v5  ;;  %v3883_v16 = vunpack.i.h.bf16 %v3881_v5 }
0x18df   :  { %v4068_v9 = vpop.eup %4067  ;;  %2807 = vmatpush.msrb.mxu0 %v3882_v15 }
0x18e0   :  { %v2748_v17 = vsel %vm249_vm15, %v4068_v9, 0.0 }
0x18e1   :  { %2749 = vadd.xlane.f32.xlu1 %v2748_v17  ;;  %2808 = vmatpush.msrb.mxu0 %v3883_v16 }
0x18e3   :  { %2988 = vmatpush.msra.mxu0 %v3739_v32 }
0x18e4   :  { %v2819_v52 = vpop.permute.xlu2 %2818 }
0x18ed   :  { %2822 = vrot.lane.b32.xlu0 %v2691_v55, %s5313_s30 }
0x18f5   :  { %2816 = vrot.lane.b32.xlu0 %v2655_v42, %s5313_s30 }
0x18fa   :  { %2820 = vrot.lane.b32.xlu1 %v2688_v30, %s5313_s30 }
0x18fd   :  { %3000 = vrot.lane.b32.xlu0 %v2688_v30, %s5306_s3 }
0x1902   :  { %3002 = vrot.lane.b32.xlu1 %v2691_v55, %s5306_s3 }
0x1905   :  { %3153 = vrot.lane.b32.xlu0 %v2688_v30, %s5307_s29 }
0x190a   :  { %3155 = vrot.lane.b32.xlu1 %v2691_v55, %s5307_s29  ;;  %v2997_v55 = vpop.permute.xlu2 %2996 }
0x190d   :  { %3151 = vrot.lane.b32.xlu0 %v2658_v25, %s5307_s29 }
0x1912   :  { %3149 = vrot.lane.b32.xlu1 %v2655_v42, %s5307_s29  ;;  %v2999_v46 = vpop.permute.xlu2 %2998 }
0x194c   :  { %v2747_v19 = vpop.xlane.xlu0 %2746 }
0x194d   :  { %4069 = vrcp.f32 %v2747_v19  ;;  %v2762_v0 = vand.u32 2147483648, %v2747_v19  ;;  %v2760_v12 = vand.u32 2147483647, %v2747_v19  ;;  %vm2756_vm8 = vweird.f32 %v2747_v19 }
0x194f   :  { %v2763_v1 = vor.u32 1.1754944e-38, %v2762_v0  ;;  %vm2761_vm10 = vcmp.eq.f32.partialorder %v2760_v12, 8.507059e+37 }
0x1953   :  { %v4070_v20 = vpop.eup %4069 }
0x1954   :  { %v2752_v21 = vmul.f32 %v4070_v20, %v2747_v19  ;;  %v2750_v2 = vpop.xlane.xlu1 %2749  ;;  %vm2757_vm7 = vweird.f32 %v4070_v20 }
0x1955   :  { %4071 = vrcp.f32 %v2750_v2  ;;  %vm2758_vm9 = vmor %vm2756_vm8, %vm2757_vm7  ;;  %v2777_v11 = vand.u32 2147483648, %v2750_v2  ;;  %v2775_v45 = vand.u32 2147483647, %v2750_v2  ;;  %vm2771_vm13 = vweird.f32 %v2750_v2 }
0x1956   :  { %v2753_v23 = vsub.f32 1.0, %v2752_v21 }
0x1957   :  { %v2778_v47 = vor.u32 1.1754944e-38, %v2777_v11  ;;  %vm2776_vm2 = vcmp.eq.f32.partialorder %v2775_v45, 8.507059e+37 }
0x1958   :  { %v2754_v60 = vmul.f32 %v4070_v20, %v2753_v23 }
0x195a   :  { %v2755_v24 = vadd.f32 %v4070_v20, %v2754_v60 }
0x195b   :  { %v4072_v27 = vpop.eup %4071 }
0x195c   :  { %v2759_v31 = vsel %vm2758_vm9, %v4070_v20, %v2755_v24  ;;  %v2767_v8 = vmul.f32 %v4072_v27, %v2750_v2  ;;  %vm2772_vm12 = vweird.f32 %v4072_v27 }
0x195d   :  { %v2764_v35 = vsel %vm2761_vm10, %v2763_v1, %v2759_v31  ;;  %vm2773_vm1 = vmor %vm2771_vm13, %vm2772_vm12 }
0x195e   :  { %v2768_v7 = vsub.f32 1.0, %v2767_v8  ;;  %v2765_v36 = vmul.f32 %v4066_v41, %v2764_v35 }
0x195f   :  { %v2823_v39 = vpop.permute.xlu0 %2822 }
0x1960   :  { %v2769_v43 = vmul.f32 %v4072_v27, %v2768_v7  ;;  %3747 = vmatmul.msk.f32.vlgmr.msrb.gmra.mxu0 %vm249_vm15, %v2765_v36  ;;  %3749 = vmatpush.xpose.msk.msra.mxu1 %vm217_vm14, %v2823_v39 }
0x1962   :  { %v2770_v44 = vadd.f32 %v4072_v27, %v2769_v43 }
0x1964   :  { %v2774_v4 = vsel %vm2773_vm1, %v4072_v27, %v2770_v44 }
0x1965   :  { %v2779_v26 = vsel %vm2776_vm2, %v2778_v47, %v2774_v4 }
0x1966   :  { %v2780_v37 = vmul.f32 %v4068_v9, %v2779_v26 }
0x1967   :  { %v2817_v48 = vpop.permute.xlu0 %2816 }
0x1968   :  { %3748 = vmatmul.msk.f32.gmra.mxu0 %vm249_vm15, %v2780_v37 }
0x196c   :  { %v2821_v14 = vpop.permute.xlu1 %2820 }
0x196d   :  { %3750 = vmatpush.xpose.msk.msra.mxu1 %vm217_vm14, %v2821_v14 }
0x196f   :  { %v3001_v18 = vpop.permute.xlu0 %3000 }
0x1970   :  { %3751 = vmatmul.msk.f32.vlgmr.msra.gmra.mxu1 %vm217_vm14, %v2817_v48 }
0x1974   :  { %v3003_v22 = vpop.permute.xlu1 %3002 }
0x1975   :  { %3759 = vmatpush.xpose.msk.msrb.mxu1 %vm217_vm14, %v3003_v22 }
0x1977   :  { %v3154_v30 = vpop.permute.xlu0 %3153 }
0x1978   :  { %3752 = vmatmul.msk.f32.gmra.mxu1 %vm217_vm14, %v2819_v52 }
0x1979   :  { %3760 = vmatpush.xpose.msk.msrb.mxu1 %vm217_vm14, %v3001_v18 }
0x197c   :  { %v3156_v54 = vpop.permute.xlu1 %3155 }
0x197d   :  { %3767 = vmatpush.xpose.msk.msrb.mxu0 %vm217_vm14, %v3156_v54 }
0x197f   :  { %v3152_v29 = vpop.permute.xlu0 %3151 }
0x1980   :  { %3761 = vmatmul.msk.f32.vlgmr.msrb.gmra.mxu1 %vm217_vm14, %v2997_v55 }
0x1981   :  { %3768 = vmatpush.xpose.msk.msrb.mxu0 %vm217_vm14, %v3154_v30 }
0x1984   :  { %v3150_v56 = vpop.permute.xlu1 %3149 }
0x1988   :  { %3762 = vmatmul.msk.f32.gmra.mxu1 %vm217_vm14, %v2999_v46 }
0x19dd   :  { %v2810_v51 = vpop.f32.mrf.mxu0 }
0x19de   :  { %3757 = vmatmul.msk.f32.vlgmr.msra.gmra.mxu0 %vm217_vm14, %v2810_v51 }
0x19e5   :  { %v2813_v42 = vpop.f32.mrf.mxu0 }
0x19e6   :  { %3758 = vmatmul.msk.f32.gmra.mxu0 %vm217_vm14, %v2813_v42 }
0x19ed   :  { %v2849_v25 = vpop.f32.mrf.mxu1 }
0x19ee   :  { %v2850_v57 = vadd.f32 %v5008_v59, %v2849_v25  ;;  %3769 = vmatmul.msk.f32.vlgmr.msrb.gmra.mxu0 %vm217_vm14, %v3150_v56 }
0x19f0   :  { %v2855_v61 = vsel %vm249_vm15, %v2850_v57, -inf }
0x19f1   :  { %2856 = vmax.xlane.f32.xlu2 %v2855_v61 }
0x19f5   :  { %v2852_v3 = vpop.f32.mrf.mxu1 }
0x19f6   :  { %v2853_v58 = vadd.f32 %v5015_v40, %v2852_v3  ;;  %3770 = vmatmul.msk.f32.gmra.mxu0 %vm217_vm14, %v3152_v29 }
0x19f8   :  { %v2858_v6 = vsel %vm249_vm15, %v2853_v58, -inf }
0x19f9   :  { %2859 = vmax.xlane.f32.xlu1 %v2858_v6 }
0x19fd   :  { %v3029_v49 = vpop.f32.mrf.mxu1 }
0x19fe   :  { %v3030_v34 = vadd.f32 %v5008_v59, %v3029_v49 }
0x1a00   :  { %v3035_v63 = vsel %vm249_vm15, %v3030_v34, -inf }
0x1a01   :  { %3036 = vmax.xlane.f32.xlu0 %v3035_v63 }
0x1a05   :  { %v3032_v53 = vpop.f32.mrf.mxu1 }
0x1a06   :  { %v3033_v33 = vadd.f32 %v5015_v40, %v3032_v53 }
0x1a08   :  { %v3038_v41 = vsel %vm249_vm15, %v3033_v33, -inf }
0x1a09   :  { %3039 = vmax.xlane.f32.xlu2 %v3038_v41 }
0x1a5b   :  { %v5064_v13 = vpop.f32.mrf.mxu0 }
0x1a63   :  { %v5066_v62 = vpop.f32.mrf.mxu0 }
0x1a64   :  { %v2857_v5 = vpop.xlane.xlu2 %2856 }
0x1a65   :  { %v2861_v15 = vsub.f32 %v2850_v57, %v2857_v5 }
0x1a67   :  { %v2863_v9 = vmul.f32 1.442695, %v2861_v15 }
0x1a69   :  { %4073 = vpow2.f32 %v2863_v9 }
0x1a6b   :  { %v3182_v16 = vpop.f32.mrf.mxu0 }
0x1a6c   :  { %v3183_v17 = vadd.f32 %v5008_v59, %v3182_v16  ;;  %v2860_v19 = vpop.xlane.xlu1 %2859 }
0x1a6d   :  { %v2862_v20 = vsub.f32 %v2853_v58, %v2860_v19 }
0x1a6e   :  { %v3188_v21 = vsel %vm249_vm15, %v3183_v17, -inf }
0x1a6f   :  { %v5070_v2 = vpop.eup %4073  ;;  %v2865_v23 = vmul.f32 1.442695, %v2862_v20  ;;  %3189 = vmax.xlane.f32.xlu1 %v3188_v21  ;;  %v3740_v20 = vld [vmem:[%s5263_s14 + $0x28] sm:$0xff] }
0x1a70   :  { %v2867_v0 = vsel %vm249_vm15, %v5070_v2, 0.0  ;;  %2959 = vmatpush.msra.mxu2 %v3740_v20  ;;  %v3742_v20 = vld [vmem:[%s5263_s14 + $0x38] sm:$0xff] }
0x1a71   :  { %4075 = vpow2.f32 %v2865_v23  ;;  %2868 = vadd.xlane.f32.xlu2 %v2867_v0 }
0x1a73   :  { %v3185_v60 = vpop.f32.mrf.mxu0 }
0x1a74   :  { %v3186_v12 = vadd.f32 %v5015_v40, %v3185_v60  ;;  %v3037_v24 = vpop.xlane.xlu0 %3036 }
0x1a75   :  { %v3041_v27 = vsub.f32 %v3030_v34, %v3037_v24 }
0x1a76   :  { %v3191_v59 = vsel %vm249_vm15, %v3186_v12, -inf }
0x1a77   :  { %v5076_v1 = vpop.eup %4075  ;;  %v3043_v31 = vmul.f32 1.442695, %v3041_v27  ;;  %3192 = vmax.xlane.f32.xlu0 %v3191_v59 }
0x1a78   :  { %v2870_v8 = vsel %vm249_vm15, %v5076_v1, 0.0 }
0x1a79   :  { %4077 = vpow2.f32 %v3043_v31  ;;  %2871 = vadd.xlane.f32.xlu1 %v2870_v8 }
0x1a7c   :  { %v3040_v32 = vpop.xlane.xlu2 %3039 }
0x1a7d   :  { %v3042_v35 = vsub.f32 %v3033_v33, %v3040_v32 }
0x1a7f   :  { %v5080_v7 = vpop.eup %4077  ;;  %v3045_v36 = vmul.f32 1.442695, %v3042_v35 }
0x1a80   :  { %v3047_v40 = vsel %vm249_vm15, %v5080_v7, 0.0 }
0x1a81   :  { %4079 = vpow2.f32 %v3045_v36  ;;  %3048 = vadd.xlane.f32.xlu0 %v3047_v40 }
0x1a87   :  { %v5084_v11 = vpop.eup %4079 }
0x1a88   :  { %v3050_v39 = vsel %vm249_vm15, %v5084_v11, 0.0 }
0x1a89   :  { %3885 = vrot.lane.b32.xlu2 %v5019_v28, %s5308_s21  ;;  %3051 = vadd.xlane.f32.xlu1 %v3050_v39 }
0x1ae2   :  { %v3190_v43 = vpop.xlane.xlu1 %3189 }
0x1ae3   :  { %v3194_v45 = vsub.f32 %v3183_v17, %v3190_v43 }
0x1ae4   :  { %v2869_v44 = vpop.xlane.xlu2 %2868 }
0x1ae5   :  { %v3196_v47 = vmul.f32 1.442695, %v3194_v45  ;;  %4081 = vrcp.f32 %v2869_v44  ;;  %v2884_v30 = vand.u32 2147483648, %v2869_v44  ;;  %v2882_v56 = vand.u32 2147483647, %v2869_v44 }
0x1ae6   :  { %vm2878_vm4 = vweird.f32 %v2869_v44 }
0x1ae7   :  { %4083 = vpow2.f32 %v3196_v47  ;;  %v2885_v61 = vor.u32 1.1754944e-38, %v2884_v30  ;;  %vm2883_vm6 = vcmp.eq.f32.partialorder %v2882_v56, 8.507059e+37 }
0x1aea   :  { %v3193_v4 = vpop.xlane.xlu0 %3192 }
0x1aeb   :  { %v4082_v26 = vpop.eup %4081  ;;  %v3195_v37 = vsub.f32 %v3186_v12, %v3193_v4 }
0x1aec   :  { %v2874_v48 = vmul.f32 %v4082_v26, %v2869_v44  ;;  %v3886_v14 = vpop.permute.xlu2 %3885  ;;  %v2872_v52 = vpop.xlane.xlu1 %2871  ;;  %vm2879_vm3 = vweird.f32 %v4082_v26 }
0x1aed   :  { %v5090_v22 = vpop.eup %4083  ;;  %v3198_v18 = vmul.f32 1.442695, %v3195_v37  ;;  %v3887_v54 = vunpack.i.l.bf16 %v3886_v14  ;;  %4085 = vrcp.f32 %v2872_v52  ;;  %v3888_v46 = vunpack.i.h.bf16 %v3886_v14  ;;  %vm2880_vm5 = vmor %vm2878_vm4, %vm2879_vm3 }
0x1aee   :  { %v2875_v55 = vsub.f32 1.0, %v2874_v48  ;;  %v3200_v51 = vsel %vm249_vm15, %v5090_v22, 0.0  ;;  %v2899_v33 = vand.u32 2147483648, %v2872_v52  ;;  %v2897_v41 = vand.u32 2147483647, %v2872_v52 }
0x1aef   :  { %4087 = vpow2.f32 %v3198_v18  ;;  %2929 = vmatpush.msra.mxu3 %v3887_v54  ;;  %3201 = vadd.xlane.f32.xlu0 %v3200_v51  ;;  %vm2893_vm8 = vweird.f32 %v2872_v52 }
0x1af0   :  { %v2876_v42 = vmul.f32 %v4082_v26, %v2875_v55  ;;  %v2900_v15 = vor.u32 1.1754944e-38, %v2899_v33  ;;  %vm2898_vm10 = vcmp.eq.f32.partialorder %v2897_v41, 8.507059e+37  ;;  %v3781_v55 = vld [vmem:[%s5265_s16 + $0x38] sm:$0xff] }
0x1af1   :  { %2930 = vmatpush.msra.mxu3 %v3888_v46 }
0x1af2   :  { %v2877_v25 = vadd.f32 %v4082_v26, %v2876_v42 }
0x1af3   :  { %v4086_v57 = vpop.eup %4085 }
0x1af4   :  { %v2881_v29 = vsel %vm2880_vm5, %v4082_v26, %v2877_v25  ;;  %v2889_v3 = vmul.f32 %v4086_v57, %v2872_v52  ;;  %vm2894_vm7 = vweird.f32 %v4086_v57  ;;  %v3049_v19 = vpop.xlane.xlu0 %3048 }
0x1af5   :  { %v5094_v58 = vpop.eup %4087  ;;  %v2886_v6 = vsel %vm2883_vm6, %v2885_v61, %v2881_v29  ;;  %vm2895_vm9 = vmor %vm2893_vm8, %vm2894_vm7  ;;  %4089 = vrcp.f32 %v3049_v19  ;;  %v3064_v32 = vand.u32 2147483648, %v3049_v19  ;;  %vm3058_vm13 = vweird.f32 %v3049_v19 }
0x1af6   :  { %v2890_v49 = vsub.f32 1.0, %v2889_v3  ;;  %v3203_v34 = vsel %vm249_vm15, %v5094_v58, 0.0  ;;  %v2887_v63 = vmul.f32 %v5070_v2, %v2886_v6  ;;  %v3062_v35 = vand.u32 2147483647, %v3049_v19 }
0x1af7   :  { %3204 = vadd.xlane.f32.xlu1 %v3203_v34  ;;  %v3065_v45 = vor.u32 1.1754944e-38, %v3064_v32 }
0x1af8   :  { %v2891_v53 = vmul.f32 %v4086_v57, %v2890_v49  ;;  %3753 = vmatmul.msk.f32.vlgmr.msra.gmra.mxu3 %vm249_vm15, %v2887_v63  ;;  %vm3063_vm2 = vcmp.eq.f32.partialorder %v3062_v35, 8.507059e+37 }
0x1afa   :  { %v2892_v5 = vadd.f32 %v4086_v57, %v2891_v53 }
0x1afb   :  { %v4090_v2 = vpop.eup %4089 }
0x1afc   :  { %v2896_v9 = vsel %vm2895_vm9, %v4086_v57, %v2892_v5  ;;  %v3052_v21 = vpop.xlane.xlu1 %3051  ;;  %v3054_v23 = vmul.f32 %v4090_v2, %v3049_v19  ;;  %vm3059_vm12 = vweird.f32 %v4090_v2 }
0x1afd   :  { %v2901_v16 = vsel %vm2898_vm10, %v2900_v15, %v2896_v9  ;;  %4091 = vrcp.f32 %v3052_v21  ;;  %vm3060_vm1 = vmor %vm3058_vm13, %vm3059_vm12  ;;  %v3079_v14 = vand.u32 2147483648, %v3052_v21  ;;  %vm3073_vm4 = vweird.f32 %v3052_v21 }
0x1afe   :  { %v2902_v17 = vmul.f32 %v5076_v1, %v2901_v16  ;;  %v3055_v60 = vsub.f32 1.0, %v3054_v23  ;;  %v3077_v54 = vand.u32 2147483647, %v3052_v21 }
0x1aff   :  { %v3080_v56 = vor.u32 1.1754944e-38, %v3079_v14 }
0x1b00   :  { %3754 = vmatmul.msk.f32.gmra.mxu3 %vm249_vm15, %v2902_v17  ;;  %v3056_v24 = vmul.f32 %v4090_v2, %v3055_v60  ;;  %vm3078_vm7 = vcmp.eq.f32.partialorder %v3077_v54, 8.507059e+37 }
0x1b02   :  { %v3057_v1 = vadd.f32 %v4090_v2, %v3056_v24 }
0x1b03   :  { %3890 = vrot.lane.b32.xlu0 %v5019_v28, %s5309_s23  ;;  %v4092_v12 = vpop.eup %4091 }
0x1b04   :  { %v3069_v27 = vmul.f32 %v4092_v12, %v3052_v21  ;;  %v3061_v36 = vsel %vm3060_vm1, %v4090_v2, %v3057_v1  ;;  %vm3074_vm3 = vweird.f32 %v4092_v12  ;;  %v3920_v1 = vld [vmem:[%s5319_s15 + $0x1] ss:$0 sm:$0xff] }
0x1b05   :  { %v3066_v47 = vsel %vm3063_vm2, %v3065_v45, %v3061_v36  ;;  %vm5114_vm5 = vmor %vm3073_vm4, %vm3074_vm3 }
0x1b06   :  { %v3070_v31 = vsub.f32 1.0, %v3069_v27  ;;  %v3067_v18 = vmul.f32 %v5080_v7, %v3066_v47 }
0x1b08   :  { %v3071_v40 = vmul.f32 %v4092_v12, %v3070_v31 }
0x1b0a   :  { %v3072_v26 = vadd.f32 %v4092_v12, %v3071_v40 }
0x1b0c   :  { %v3076_v42 = vsel %vm5114_vm5, %v4092_v12, %v3072_v26 }
0x1b0d   :  { %v3081_v57 = vsel %vm3078_vm7, %v3080_v56, %v3076_v42 }
0x1b0e   :  { %v3082_v49 = vmul.f32 %v5084_v11, %v3081_v57 }
0x1b10   :  { %3895 = vrot.lane.b32.xlu1 %v5019_v28, %s5310_s24 }
0x1b62   :  { %v3202_v0 = vpop.xlane.xlu0 %3201 }
0x1b63   :  { %4093 = vrcp.f32 %v3202_v0  ;;  %v3217_v7 = vand.u32 2147483648, %v3202_v0  ;;  %vm3211_vm8 = vweird.f32 %v3202_v0  ;;  %v3215_v25 = vand.u32 2147483647, %v3202_v0 }
0x1b65   :  { %v3218_v3 = vor.u32 1.1754944e-38, %v3217_v7  ;;  %vm3216_vm10 = vcmp.eq.f32.partialorder %v3215_v25, 8.507059e+37 }
0x1b69   :  { %v4094_v28 = vpop.eup %4093 }
0x1b6a   :  { %v5109_v59 = vpop.xlane.xlu1 %3204  ;;  %v3207_v8 = vmul.f32 %v4094_v28, %v3202_v0  ;;  %vm3212_vm6 = vweird.f32 %v4094_v28 }
0x1b6b   :  { %4095 = vrcp.f32 %v5109_v59  ;;  %vm3213_vm9 = vmor %vm3211_vm8, %vm3212_vm6  ;;  %v3232_v41 = vand.u32 2147483648, %v5109_v59  ;;  %vm3226_vm13 = vweird.f32 %v5109_v59  ;;  %v3230_v9 = vand.u32 2147483647, %v5109_v59 }
0x1b6c   :  { %v3208_v39 = vsub.f32 1.0, %v3207_v8 }
0x1b6d   :  { %v3233_v16 = vor.u32 1.1754944e-38, %v3232_v41  ;;  %vm3231_vm2 = vcmp.eq.f32.partialorder %v3230_v9, 8.507059e+37 }
0x1b6e   :  { %v3209_v37 = vmul.f32 %v4094_v28, %v3208_v39 }
0x1b70   :  { %v3210_v46 = vadd.f32 %v4094_v28, %v3209_v37 }
0x1b71   :  { %v4096_v43 = vpop.eup %4095 }
0x1b72   :  { %v3222_v48 = vmul.f32 %v4096_v43, %v5109_v59  ;;  %v3214_v61 = vsel %vm3213_vm9, %v4094_v28, %v3210_v46  ;;  %vm3227_vm12 = vweird.f32 %v4096_v43  ;;  %v3779_v46 = vld [vmem:[%s5265_s16 + $0x28] sm:$0xff] }
0x1b73   :  { %v3219_v34 = vsel %vm3216_vm10, %v3218_v3, %v3214_v61  ;;  %vm3228_vm1 = vmor %vm3226_vm13, %vm3227_vm12 }
0x1b74   :  { %v3223_v51 = vsub.f32 1.0, %v3222_v48  ;;  %v3220_v15 = vmul.f32 %v5090_v22, %v3219_v34  ;;  %v3741_v22 = vld [vmem:[%s5263_s14 + $0x30] sm:$0xff] }
0x1b75   :  { %v3891_v44 = vpop.permute.xlu0 %3890  ;;  %3139 = vmatpush.msrb.mxu2 %v3741_v22 }
0x1b76   :  { %v3892_v4 = vunpack.i.l.bf16 %v3891_v44  ;;  %v3893_v52 = vunpack.i.h.bf16 %v3891_v44  ;;  %v3224_v29 = vmul.f32 %v4096_v43, %v3223_v51  ;;  %v3778_v51 = vld [vmem:[%s5265_s16 + $0x20] sm:$0xff] }
0x1b78   :  { %3109 = vmatpush.msrb.mxu3 %v3892_v4  ;;  %v3225_v53 = vadd.f32 %v4096_v43, %v3224_v29 }
0x1b7a   :  { %3110 = vmatpush.msrb.mxu3 %v3893_v52  ;;  %v3229_v11 = vsel %vm3228_vm1, %v4096_v43, %v3225_v53 }
0x1b7b   :  { %v2932_v30 = vpop.f32.mrf.mxu3  ;;  %3763 = vmatmul.msk.f32.vlgmr.msrb.gmra.mxu3 %vm249_vm15, %v3067_v18  ;;  %v3234_v17 = vsel %vm3231_vm2, %v3233_v16, %v3229_v11  ;;  %v3792_v11 = vld [vmem:[%s5267_s18 + $0x78] sm:$0xff]  ;;  %v3791_v16 = vld [vmem:[%s5267_s18 + $0x70] sm:$0xff] }
0x1b7c   :  { %3755 = vmatmul.msk.f32.vlgmr.msra.gmra.mxu2 %vm217_vm14, %v2932_v30  ;;  %v3235_v19 = vmul.f32 %v5094_v58, %v3234_v17  ;;  %3292 = vmatpush.msra.mxu3 %v3742_v20  ;;  %v3780_v30 = vld [vmem:[%s5265_s16 + $0x30] sm:$0xff] }
0x1b7d   :  { %3429 = vmatpush.msra.mxu2 %v3781_v55  ;;  %3465 = vmatpush.msra.mxu0 %v3792_v11 }
0x1b7f   :  { %3430 = vmatpush.msra.mxu2 %v3780_v30  ;;  %3466 = vmatpush.msra.mxu0 %v3791_v16  ;;  %v3787_v30 = vld [vmem:[%s5267_s18 + $0x50] sm:$0xff] }
0x1b81   :  { %3431 = vmatpush.msra.mxu2 %v3779_v46  ;;  %v3786_v46 = vld [vmem:[%s5267_s18 + $0x48] sm:$0xff] }
0x1b82   :  { %v3896_v6 = vpop.permute.xlu1 %3895 }
0x1b83   :  { %v3897_v63 = vunpack.i.l.bf16 %v3896_v6  ;;  %v2935_v33 = vpop.f32.mrf.mxu3  ;;  %3764 = vmatmul.msk.f32.gmra.mxu3 %vm249_vm15, %v3082_v49  ;;  %v3898_v5 = vunpack.i.h.bf16 %v3896_v6  ;;  %3432 = vmatpush.msra.mxu2 %v3778_v51  ;;  %v3785_v51 = vld [vmem:[%s5267_s18 + $0x40] sm:$0xff] }
0x1b84   :  { %3756 = vmatmul.msk.f32.gmra.mxu2 %vm217_vm14, %v2935_v33 }
0x1b85   :  { %3262 = vmatpush.msra.mxu1 %v3897_v63 }
0x1b87   :  { %3263 = vmatpush.msra.mxu1 %v3898_v5 }
0x1b88   :  { %3771 = vmatmul.msk.f32.vlgmr.msra.gmra.mxu1 %vm249_vm15, %v3220_v15 }
0x1b90   :  { %3772 = vmatmul.msk.f32.gmra.mxu1 %vm249_vm15, %v3235_v19  ;;  %v3790_v19 = vld [vmem:[%s5267_s18 + $0x68] sm:$0xff] }
0x1b91   :  { %3467 = vmatpush.msra.mxu0 %v3790_v19 }
0x1bfe   :  { %v3112_v21 = vpop.f32.mrf.mxu3 }
0x1bff   :  { %3765 = vmatmul.msk.f32.vlgmr.msrb.gmra.mxu2 %vm217_vm14, %v3112_v21  ;;  %v2961_v0 = vpop.f32.mrf.mxu2  ;;  %v3789_v21 = vld [vmem:[%s5267_s18 + $0x60] sm:$0xff] }
0x1c00   :  { %v2991_v24 = vadd.f32 %v5064_v13, %v2961_v0  ;;  %3468 = vmatpush.msra.mxu0 %v3789_v21 }
0x1c05   :  { %v3265_v2 = vpop.f32.mrf.mxu1 }
0x1c06   :  { %3773 = vmatmul.msk.f32.vlgmr.msra.gmra.mxu3 %vm217_vm14, %v3265_v2  ;;  %v3115_v23 = vpop.f32.mrf.mxu3 }
0x1c07   :  { %3766 = vmatmul.msk.f32.gmra.mxu2 %vm217_vm14, %v3115_v23  ;;  %v2964_v60 = vpop.f32.mrf.mxu2 }
0x1c08   :  { %v2994_v32 = vadd.f32 %v5066_v62, %v2964_v60 }
0x1c0d   :  { %v3268_v58 = vpop.f32.mrf.mxu1 }
0x1c0e   :  { %3774 = vmatmul.msk.f32.gmra.mxu3 %vm217_vm14, %v3268_v58  ;;  %v3788_v58 = vld [vmem:[%s5267_s18 + $0x58] sm:$0xff] }
0x1c0f   :  { %3469 = vmatpush.msra.mxu0 %v3788_v58 }
0x1c11   :  { %3470 = vmatpush.msra.mxu0 %v3787_v30 }
0x1c13   :  { %3471 = vmatpush.msra.mxu0 %v3786_v46 }
0x1c15   :  { %3472 = vmatpush.msra.mxu0 %v3785_v51  ;;  %v3925_v51 = vld [vmem:[%s5302_s1 + $0x6] ss:$0 sm:$0xff] }
0x1c82   :  { %v3141_v12 = vpop.f32.mrf.mxu2 }
0x1c83   :  { %v3147_v27 = vadd.f32 %v3141_v12, %v2991_v24 }
0x1c89   :  { %v3294_v59 = vpop.f32.mrf.mxu3 }
0x1c8a   :  { %v3300_v28 = vadd.f32 %v3294_v59, %v3147_v27  ;;  %v3144_v8 = vpop.f32.mrf.mxu2 }
0x1c8b   :  { %v3148_v36 = vadd.f32 %v3144_v8, %v2994_v32 }
0x1c8c   :  { %v3302_v31 = vadd.f32 %v3300_v28, %v4930_v38 }
0x1c8e   :  { %v5148_v35 = vadd.f32 %v3920_v1, %v3302_v31 }
0x1c90   :  { %v3315_v40 = vsel %vm76_vm0, %v5148_v35, 0.0 }
0x1c91   :  { %3316 = vadd.xlane.f32.xlu2 %v3315_v40  ;;  %v3297_v13 = vpop.f32.mrf.mxu3 }
0x1c92   :  { %v3301_v39 = vadd.f32 %v3297_v13, %v3148_v36  ;;  %v3921_v36 = vld [vmem:[%s5302_s1 + $0x5] ss:$0 sm:$0xff]  ;;  %s4157_s1 = smov [#allocation2]  }
0x1c93   :  { %s3585_s9 = sshll.u32 %s4157_s1, 4  ;;  %s3586_s9 = int_to_ptr.vmem [resolvable:$true] %s3585_s9 }
0x1c94   :  { %v3303_v43 = vadd.f32 %v3301_v39, %v4935_v50 }
0x1c96   :  { %v5153_v45 = vadd.f32 %v3920_v1, %v3303_v43  ;;  %v3922_v43 = vld [vmem:[%s5254_s5 + $0x5] ss:$0 sm:$0xff] }
0x1c98   :  { %v3318_v44 = vsel %vm76_vm0, %v5153_v45, 0.0 }
0x1c99   :  { %3319 = vadd.xlane.f32.xlu0 %v3318_v44 }
0x1d04   :  { %v3317_v38 = vpop.xlane.xlu2 %3316 }
0x1d05   :  { %v3321_v62 = vmul.f32 %v3317_v38, %v4279_v10 }
0x1d07   :  { %v5159_v47 = vsub.f32 %v5148_v35, %v3321_v62 }
0x1d09   :  { %v3325_v4 = vmul.f32 %v5159_v47, %v5159_v47 }
0x1d0b   :  { %v3327_v26 = vsel %vm76_vm0, %v3325_v4, 0.0 }
0x1d0c   :  { %3328 = vadd.xlane.f32.xlu1 %v3327_v26  ;;  %v3320_v37 = vpop.xlane.xlu0 %3319 }
0x1d0d   :  { %v3322_v50 = vmul.f32 %v3320_v37, %v4279_v10 }
0x1d0f   :  { %v5166_v48 = vsub.f32 %v5153_v45, %v3322_v50 }
0x1d11   :  { %v3326_v14 = vmul.f32 %v5166_v48, %v5166_v48 }
0x1d13   :  { %v3330_v52 = vsel %vm76_vm0, %v3326_v14, 0.0 }
0x1d14   :  { %3331 = vadd.xlane.f32.xlu2 %v3330_v52 }
0x1d7f   :  { %v3329_v18 = vpop.xlane.xlu1 %3328 }
0x1d80   :  { %v3333_v54 = vmul.f32 0.032258064, %v3329_v18 }
0x1d82   :  { %4097 = vrsqrt.f32 %v3333_v54  ;;  %vm3342_vm14 = vcmp.eq.f32.partialorder %v3333_v54, inf  ;;  %v3345_v53 = vand.u32 2147483648, %v3333_v54  ;;  %vm3344_vm15 = vcmp.eq.f32.partialorder %v3333_v54, 0.0 }
0x1d87   :  { %v3332_v42 = vpop.xlane.xlu2 %3331 }
0x1d88   :  { %v4098_v56 = vpop.eup %4097  ;;  %v3334_v7 = vmul.f32 0.032258064, %v3332_v42 }
0x1d89   :  { %v3336_v25 = vmul.f32 %v4098_v56, %v3333_v54 }
0x1d8a   :  { %4099 = vrsqrt.f32 %v3334_v7  ;;  %vm3354_vm3 = vcmp.eq.f32.partialorder %v3334_v7, inf  ;;  %v3357_v20 = vand.u32 2147483648, %v3334_v7  ;;  %vm3356_vm4 = vcmp.eq.f32.partialorder %v3334_v7, 0.0 }
0x1d8b   :  { %v3337_v57 = vmul.f32 %v4098_v56, %v3336_v25 }
0x1d8d   :  { %v3338_v61 = vmul.f32 0.5, %v3337_v57 }
0x1d8f   :  { %v3339_v29 = vsub.f32 1.5, %v3338_v61 }
0x1d90   :  { %v4100_v3 = vpop.eup %4099 }
0x1d91   :  { %v3340_v6 = vmul.f32 %v4098_v56, %v3339_v29  ;;  %v3348_v49 = vmul.f32 %v4100_v3, %v3334_v7  ;;  %v3924_v29 = vld [vmem:[%s5268_s19 + $0x1] ss:$0 sm:$0xff] }
0x1d93   :  { %v3341_v34 = vmul.f32 %v3340_v6, %v3333_v54  ;;  %v3349_v63 = vmul.f32 %v4100_v3, %v3348_v49 }
0x1d95   :  { %v3343_v33 = vsel %vm3342_vm14, %v3333_v54, %v3341_v34  ;;  %v3350_v41 = vmul.f32 0.5, %v3349_v63 }
0x1d96   :  { %v3346_v5 = vsel %vm3344_vm15, %v3345_v53, %v3343_v33 }
0x1d97   :  { %v3359_v15 = vadd.f32 1e-06, %v3346_v5  ;;  %v3351_v9 = vsub.f32 1.5, %v3350_v41 }
0x1d99   :  { %4101 = vrcp.f32 %v3359_v15  ;;  %v3352_v17 = vmul.f32 %v4100_v3, %v3351_v9  ;;  %v3372_v27 = vand.u32 2147483648, %v3359_v15  ;;  %v3370_v28 = vand.u32 2147483647, %v3359_v15 }
0x1d9a   :  { %vm3366_vm6 = vweird.f32 %v3359_v15 }
0x1d9b   :  { %v3353_v22 = vmul.f32 %v3352_v17, %v3334_v7  ;;  %v3373_v8 = vor.u32 1.1754944e-38, %v3372_v27  ;;  %vm3371_vm8 = vcmp.eq.f32.partialorder %v3370_v28, 8.507059e+37 }
0x1d9d   :  { %v3355_v2 = vsel %vm3354_vm3, %v3334_v7, %v3353_v22 }
0x1d9e   :  { %v3358_v23 = vsel %vm3356_vm4, %v3357_v20, %v3355_v2 }
0x1d9f   :  { %v4102_v0 = vpop.eup %4101  ;;  %v3360_v60 = vadd.f32 1e-06, %v3358_v23 }
0x1da0   :  { %v3362_v12 = vmul.f32 %v4102_v0, %v3359_v15  ;;  %vm3367_vm5 = vweird.f32 %v4102_v0 }
0x1da1   :  { %4103 = vrcp.f32 %v3360_v60  ;;  %vm3368_vm7 = vmor %vm3366_vm6, %vm3367_vm5  ;;  %v3387_v38 = vand.u32 2147483648, %v3360_v60  ;;  %v3385_v26 = vand.u32 2147483647, %v3360_v60  ;;  %vm3381_vm10 = vweird.f32 %v3360_v60 }
0x1da2   :  { %v3363_v24 = vsub.f32 1.0, %v3362_v12 }
0x1da3   :  { %v3388_v14 = vor.u32 1.1754944e-38, %v3387_v38  ;;  %vm3386_vm13 = vcmp.eq.f32.partialorder %v3385_v26, 8.507059e+37 }
0x1da4   :  { %v3364_v59 = vmul.f32 %v4102_v0, %v3363_v24 }
0x1da6   :  { %v3365_v1 = vadd.f32 %v4102_v0, %v3364_v59 }
0x1da7   :  { %v4104_v31 = vpop.eup %4103 }
0x1da8   :  { %v3369_v32 = vsel %vm3368_vm7, %v4102_v0, %v3365_v1  ;;  %v3377_v40 = vmul.f32 %v4104_v31, %v3360_v60  ;;  %vm3382_vm9 = vweird.f32 %v4104_v31 }
0x1da9   :  { %v3374_v13 = vsel %vm3371_vm8, %v3373_v8, %v3369_v32  ;;  %vm3383_vm12 = vmor %vm3381_vm10, %vm3382_vm9 }
0x1daa   :  { %v3375_v39 = vmul.f32 %v3374_v13, %v5159_v47  ;;  %v3378_v44 = vsub.f32 1.0, %v3377_v40 }
0x1dac   :  { %v3394_v62 = vmul.f32 %v3921_v36, %v3375_v39  ;;  %v3379_v4 = vmul.f32 %v4104_v31, %v3378_v44 }
0x1dae   :  { %v3399_v37 = vadd.f32 %v3922_v43, %v3394_v62  ;;  %v3380_v50 = vadd.f32 %v4104_v31, %v3379_v4 }
0x1db0   :  { %3783 = vmatmul.msk.f32.vlgmr.msra.gmra.mxu2 %vm76_vm0, %v3399_v37  ;;  %v3384_v52 = vsel %vm3383_vm12, %v4104_v31, %v3380_v50 }
0x1db1   :  { %v3389_v47 = vsel %vm3386_vm13, %v3388_v14, %v3384_v52 }
0x1db2   :  { %v3390_v18 = vmul.f32 %v3389_v47, %v5166_v48  ;;  %v3923_v48 = vld [vmem:[%s5266_s17 + $0x1] ss:$0 sm:$0xff] }
0x1db4   :  { %v3395_v54 = vmul.f32 %v3921_v36, %v3390_v18 }
0x1db6   :  { %v3400_v55 = vadd.f32 %v3922_v43, %v3395_v54 }
0x1db8   :  { %3784 = vmatmul.msk.f32.gmra.mxu2 %vm76_vm0, %v3400_v55 }
0x1e33   :  { %v3434_v42 = vpop.f32.mrf.mxu2 }
0x1e34   :  { %v3435_v56 = vadd.f32 %v3923_v48, %v3434_v42 }
0x1e36   :  { %v3440_v7 = vmax.f32 %v3435_v56, 0.0 }
0x1e38   :  { %3793 = vmatmul.msk.f32.vlgmr.msra.gmra.mxu0 %vm1744_vm11, %v3440_v7  ;;  %v3926_v7 = vld [vmem:[%s5254_s5 + $0x6] ss:$0 sm:$0xff] }
0x1e3b   :  { %v3437_v25 = vpop.f32.mrf.mxu2 }
0x1e3c   :  { %v3438_v57 = vadd.f32 %v3923_v48, %v3437_v25 }
0x1e3e   :  { %v3441_v61 = vmax.f32 %v3438_v57, 0.0 }
0x1e40   :  { %3794 = vmatmul.msk.f32.gmra.mxu0 %vm1744_vm11, %v3441_v61 }
0x1eb5   :  { %v3474_v3 = vpop.f32.mrf.mxu0 }
0x1eb6   :  { %v3480_v6 = vadd.f32 %v3474_v3, %v5148_v35 }
0x1eb8   :  { %v3487_v49 = vadd.f32 %v3924_v29, %v3480_v6 }
0x1eba   :  { %v3493_v34 = vsel %vm76_vm0, %v3487_v49, 0.0 }
0x1ebb   :  { %3494 = vadd.xlane.f32.xlu2 %v3493_v34 }
0x1ebd   :  { %v3477_v63 = vpop.f32.mrf.mxu0 }
0x1ebe   :  { %v3481_v53 = vadd.f32 %v3477_v63, %v5153_v45 }
0x1ec0   :  { %v3488_v33 = vadd.f32 %v3924_v29, %v3481_v53 }
0x1ec2   :  { %v3496_v41 = vsel %vm76_vm0, %v3488_v33, 0.0 }
0x1ec3   :  { %3497 = vadd.xlane.f32.xlu0 %v3496_v41 }
0x1f2e   :  { %v3495_v5 = vpop.xlane.xlu2 %3494 }
0x1f2f   :  { %v3499_v15 = vmul.f32 %v3495_v5, %v4279_v10 }
0x1f31   :  { %v3501_v9 = vsub.f32 %v3487_v49, %v3499_v15 }
0x1f33   :  { %v3503_v11 = vmul.f32 %v3501_v9, %v3501_v9 }
0x1f35   :  { %v3505_v16 = vsel %vm76_vm0, %v3503_v11, 0.0 }
0x1f36   :  { %v3498_v17 = vpop.xlane.xlu0 %3497  ;;  %3506 = vadd.xlane.f32.xlu2 %v3505_v16 }
0x1f37   :  { %v3500_v35 = vmul.f32 %v3498_v17, %v4279_v10 }
0x1f39   :  { %v5232_v19 = vsub.f32 %v3488_v33, %v3500_v35 }
0x1f3b   :  { %v3504_v45 = vmul.f32 %v5232_v19, %v5232_v19 }
0x1f3d   :  { %v3508_v22 = vsel %vm76_vm0, %v3504_v45, 0.0 }
0x1f3e   :  { %3509 = vadd.xlane.f32.xlu0 %v3508_v22 }
0x1fa9   :  { %v3507_v20 = vpop.xlane.xlu2 %3506 }
0x1faa   :  { %v3511_v21 = vmul.f32 0.032258064, %v3507_v20 }
0x1fac   :  { %4105 = vrsqrt.f32 %v3511_v21  ;;  %vm3520_vm11 = vcmp.eq.f32.partialorder %v3511_v21, inf  ;;  %v3523_v31 = vand.u32 2147483648, %v3511_v21  ;;  %vm3522_vm1 = vcmp.eq.f32.partialorder %v3511_v21, 0.0 }
0x1fb1   :  { %v3510_v2 = vpop.xlane.xlu0 %3509 }
0x1fb2   :  { %v4106_v23 = vpop.eup %4105  ;;  %v3512_v58 = vmul.f32 0.032258064, %v3510_v2 }
0x1fb3   :  { %v3514_v0 = vmul.f32 %v4106_v23, %v3511_v21 }
0x1fb4   :  { %4107 = vrsqrt.f32 %v3512_v58  ;;  %vm3532_vm2 = vcmp.eq.f32.partialorder %v3512_v58, inf  ;;  %v3535_v44 = vand.u32 2147483648, %v3512_v58  ;;  %vm3534_vm14 = vcmp.eq.f32.partialorder %v3512_v58, 0.0 }
0x1fb5   :  { %v3515_v60 = vmul.f32 %v4106_v23, %v3514_v0 }
0x1fb7   :  { %v3516_v12 = vmul.f32 0.5, %v3515_v60 }
0x1fb9   :  { %v3517_v24 = vsub.f32 1.5, %v3516_v12 }
0x1fba   :  { %v4108_v10 = vpop.eup %4107 }
0x1fbb   :  { %v3518_v27 = vmul.f32 %v4106_v23, %v3517_v24  ;;  %v3526_v59 = vmul.f32 %v4108_v10, %v3512_v58 }
0x1fbd   :  { %v3519_v28 = vmul.f32 %v3518_v27, %v3511_v21  ;;  %v3527_v1 = vmul.f32 %v4108_v10, %v3526_v59 }
0x1fbf   :  { %v3521_v8 = vsel %vm3520_vm11, %v3511_v21, %v3519_v28  ;;  %v3528_v32 = vmul.f32 0.5, %v3527_v1 }
0x1fc0   :  { %v3524_v36 = vsel %vm3522_vm1, %v3523_v31, %v3521_v8 }
0x1fc1   :  { %v3537_v40 = vadd.f32 1e-06, %v3524_v36  ;;  %v3529_v13 = vsub.f32 1.5, %v3528_v32 }
0x1fc3   :  { %4109 = vrcp.f32 %v3537_v40  ;;  %v3530_v39 = vmul.f32 %v4108_v10, %v3529_v13  ;;  %v3550_v14 = vand.u32 2147483648, %v3537_v40  ;;  %v3548_v47 = vand.u32 2147483647, %v3537_v40 }
0x1fc4   :  { %vm3544_vm3 = vweird.f32 %v3537_v40 }
0x1fc5   :  { %v3531_v43 = vmul.f32 %v3530_v39, %v3512_v58  ;;  %v3551_v55 = vor.u32 1.1754944e-38, %v3550_v14  ;;  %vm3549_vm5 = vcmp.eq.f32.partialorder %v3548_v47, 8.507059e+37 }
0x1fc7   :  { %v3533_v38 = vsel %vm3532_vm2, %v3512_v58, %v3531_v43 }
0x1fc8   :  { %v3536_v62 = vsel %vm3534_vm14, %v3535_v44, %v3533_v38 }
0x1fc9   :  { %v4110_v4 = vpop.eup %4109  ;;  %v3538_v26 = vadd.f32 1e-06, %v3536_v62 }
0x1fca   :  { %v3540_v37 = vmul.f32 %v4110_v4, %v3537_v40  ;;  %vm3545_vm15 = vweird.f32 %v4110_v4 }
0x1fcb   :  { %4111 = vrcp.f32 %v3538_v26  ;;  %vm3546_vm4 = vmor %vm3544_vm3, %vm3545_vm15  ;;  %v3565_v25 = vand.u32 2147483648, %v3538_v26  ;;  %v3563_v61 = vand.u32 2147483647, %v3538_v26  ;;  %vm3559_vm7 = vweird.f32 %v3538_v26 }
0x1fcc   :  { %v3541_v50 = vsub.f32 1.0, %v3540_v37 }
0x1fcd   :  { %v3566_v49 = vor.u32 1.1754944e-38, %v3565_v25  ;;  %vm3564_vm9 = vcmp.eq.f32.partialorder %v3563_v61, 8.507059e+37 }
0x1fce   :  { %v3542_v52 = vmul.f32 %v4110_v4, %v3541_v50 }
0x1fd0   :  { %v3543_v18 = vadd.f32 %v4110_v4, %v3542_v52 }
0x1fd1   :  { %v4112_v54 = vpop.eup %4111 }
0x1fd2   :  { %v3547_v30 = vsel %vm3546_vm4, %v4110_v4, %v3543_v18  ;;  %v3555_v46 = vmul.f32 %v4112_v54, %v3538_v26  ;;  %vm3560_vm6 = vweird.f32 %v4112_v54 }
0x1fd3   :  { %v3552_v48 = vsel %vm3549_vm5, %v3551_v55, %v3547_v30  ;;  %vm3561_vm8 = vmor %vm3559_vm7, %vm3560_vm6 }
0x1fd4   :  { %v3553_v42 = vmul.f32 %v3552_v48, %v3501_v9  ;;  %v3556_v56 = vsub.f32 1.0, %v3555_v46 }
0x1fd6   :  { %v3557_v57 = vmul.f32 %v4112_v54, %v3556_v56  ;;  %v3572_v29 = vmul.f32 %v3925_v51, %v3553_v42 }
0x1fd8   :  { %v3558_v3 = vadd.f32 %v4112_v54, %v3557_v57  ;;  %v3577_v6 = vadd.f32 %v3926_v7, %v3572_v29 }
0x1fda   :  { %v3562_v34 = vsel %vm3561_vm8, %v4112_v54, %v3558_v3  ;;  %3579 = vst.msk [vmem:[#allocation2] sm:$0xff] %vm76_vm0, %v3577_v6 }
0x1fdb   :  { %v3567_v63 = vsel %vm3564_vm9, %v3566_v49, %v3562_v34 }
0x1fdc   :  { %v3568_v53 = vmul.f32 %v3567_v63, %v5232_v19 }
0x1fde   :  { %v3573_v33 = vmul.f32 %v3925_v51, %v3568_v53 }
0x1fe0   :  { %v3578_v41 = vadd.f32 %v3926_v7, %v3573_v33 }
0x1fe2   :  { %3580 = vst.msk [vmem:[#allocation2 + $0x8] sm:$0xff] %vm76_vm0, %v3578_v41 }
0x1fe3   :  { %3593 = dma.vmem_to_hbm [thread:$0]  %s3586_s9, 256, %s3588_s26, [#allocation3], %s4158_s13, %s4158_s13, %s4159_s7  }
0x1fe4   :  { %4143 = dma.done.wait [#allocation3], 256  }
0x1fe5   :  { %4144 = vsyncadd [#allocation3], 4294967040 }
0x1fe6   :  { %3598 = vsyncpa [#allocation3], 1 }

</bundles_post_ra>
